<compile_context>
chip_gen: v6e
topology: v6e:2x2x1
jax: 0.10.0
libtpu: 0.0.40
codegen_flags: <defaults>
</compile_context>

<pallas_src>
import jax
import jax.numpy as jnp
from jax.experimental import pallas as pl
from jax.experimental.pallas import tpu as pltpu

EPS = 1e-8

# bf16 weight storage + bf16 MXU matmuls (preferred_element_type=f32) halve
# weight DMA/VMEM and are recommended for production; kept f32 here so the
# demo's tight reference check stays comfortable.
MATMUL_DTYPE = jnp.float32


# ----------------------------------------------------------------------------
# Fused whole-TCN kernel (one batch element per grid step)
# ----------------------------------------------------------------------------
def make_tcn_kernel(dilations, T, BN, H):
    L = len(dilations)

    def kernel(x_ref, ln_g_ref, ln_b_ref, bn_w_ref, bn_b_ref,
               conv_w_ref, conv_b_ref, a1_ref, g1_ref, b1_ref,
               dconv_w_ref, dconv_b_ref, a2_ref, g2_ref, b2_ref,
               rs_w_ref, rs_b_ref, out_a_ref, out_w_ref, out_b_ref,
               o_ref):
        # ---- constants, hoisted out of the layer loop (built once per step) --
        # all-ones (T, 128): lane-dim reductions done on the (idle) MXU.
        ones_cols = jnp.ones((T, 128), jnp.float32)
        # shifted-identity matrices per distinct dilation:
        #   (h @ s_left )[c, t] = h[c, t - d]  (0 outside [0, T))
        #   (h @ s_right)[c, t] = h[c, t + d]  (0 outside [0, T))
        row = jax.lax.broadcasted_iota(jnp.int32, (T, T), 0)
        col = jax.lax.broadcasted_iota(jnp.int32, (T, T), 1)
        shift_mats = {}
        for d in sorted(set(dilations)):
            shift_mats[d] = ((col - row == d).astype(jnp.float32),
                             (row - col == d).astype(jnp.float32))

        def _gn(v, g, b, inv_n):
            # GroupNorm(1, C): scalar mean/var over the whole (C, T) slab.
            # Lane reduction on the MXU; tiny (C,1) sublane reduce on the XLU.
            row_s = jnp.dot(v, ones_cols,
                            preferred_element_type=jnp.float32)[:, 0:1]   # (C,1)
            row_ss = jnp.dot(v * v, ones_cols,
                             preferred_element_type=jnp.float32)[:, 0:1]  # (C,1)
            s = jnp.sum(row_s, keepdims=True)                             # (1,1)
            ss = jnp.sum(row_ss, keepdims=True)                           # (1,1)
            mean = s * inv_n
            # TODO(synk): single-pass variance (E[x^2]-E[x]^2, clamped); switch
            # to two-pass if activations move to bf16 / large-mean inputs.
            var = jnp.maximum(ss * inv_n - mean * mean, 0.0)
            scale = g * jax.lax.rsqrt(var + EPS)       # (C,1) folded affine
            shift = b - mean * scale                   # (C,1)
            return v * scale + shift                   # 2 VPU passes

        def _prelu(v, a):                              # a: SMEM scalar
            return jnp.maximum(v, 0.0) + a * jnp.minimum(v, 0.0)

        def _mm(w, v, b):                              # 1x1 conv == MXU matmul
            return jnp.dot(w.astype(MATMUL_DTYPE), v.astype(MATMUL_DTYPE),
                           preferred_element_type=jnp.float32) + b

        x = x_ref[0]                                                # (Cin, T)
        Cin = x.shape[0]

        # LN (GroupNorm over all channels) + bottleneck 1x1 conv
        xn = _gn(x, ln_g_ref[...], ln_b_ref[...], 1.0 / (Cin * T))
        out = _mm(bn_w_ref[...], xn, bn_b_ref[...])                 # (BN, T)
        skip = jnp.zeros_like(out)

        inv_nh = 1.0 / (H * T)
        for li in range(L):                                         # static unroll
            d = dilations[li]                                       # python int

            # 1x1 conv -> PReLU -> GroupNorm
            h = _mm(conv_w_ref[li], out, conv_b_ref[li])            # (H, T)
            h = _gn(_prelu(h, a1_ref[li]), g1_ref[li], b1_ref[li], inv_nh)

            # depthwise dilated conv (k=3): halo via MXU shifted-identity
            s_left, s_right = shift_mats[d]
            left = jnp.dot(h, s_left, preferred_element_type=jnp.float32)
            right = jnp.dot(h, s_right, preferred_element_type=jnp.float32)
            y = (dconv_w_ref[li, 0] * left
                 + dconv_w_ref[li, 1] * h
                 + dconv_w_ref[li, 2] * right
                 + dconv_b_ref[li])

            # PReLU -> GroupNorm -> merged res/skip 1x1 conv
            y = _gn(_prelu(y, a2_ref[li]), g2_ref[li], b2_ref[li], inv_nh)
            rs = _mm(rs_w_ref[li], y, rs_b_ref[li])                 # (2*BN, T)
            out = out + rs[:BN]
            skip = skip + rs[BN:]

        # output head: PReLU + 1x1 conv on the accumulated skip connection
        f = _prelu(skip, out_a_ref[0])
        o_ref[0] = _mm(out_w_ref[...], f, out_b_ref[...])

    return kernel


def tcn_forward(x, params):
    B, Cin, T = x.shape
    L, H, BN = params["conv_w"].shape
    O = params["out_w"].shape[0]
    dil = tuple(params["dilations"])

    names = ["ln_g", "ln_b", "bn_w", "bn_b",
             "conv_w", "conv_b", "a1", "g1", "b1",
             "dconv_w", "dconv_b", "a2", "g2", "b2",
             "rs_w", "rs_b", "out_a", "out_w", "out_b"]
    smem_names = {"a1", "a2", "out_a"}        # per-layer PReLU scalars -> SMEM
    arrays = [params[n] for n in names]

    def _spec(name, a):
        if name in smem_names:
            return pl.BlockSpec(memory_space=pltpu.MemorySpace.SMEM)
        return pl.BlockSpec(a.shape, lambda b, _n=a.ndim: (0,) * _n)

    kernel = make_tcn_kernel(dil, T, BN, H)
    return pl.pallas_call(
        kernel,
        out_shape=jax.ShapeDtypeStruct((B, O, T), jnp.float32),
        grid=(B,),
        in_specs=[pl.BlockSpec((1, Cin, T), lambda b: (b, 0, 0))]
                 + [_spec(n, a) for n, a in zip(names, arrays)],
        out_specs=pl.BlockSpec((1, O, T), lambda b: (b, 0, 0)),
        compiler_params=pltpu.CompilerParams(
            dimension_semantics=("parallel",)),
    )(x, *arrays)


# ----------------------------------------------------------------------------
# Pure-JAX reference (mirrors the PyTorch module) for numerical check
# ----------------------------------------------------------------------------
def _ref_gn(x, g, b):
    mean = x.mean(axis=(1, 2), keepdims=True)
    var = ((x - mean) ** 2).mean(axis=(1, 2), keepdims=True)
    return (x - mean) / jnp.sqrt(var + EPS) * g[None] + b[None]


def _ref_prelu(x, a):          # a: scalar
    return jnp.where(x >= 0, x, a * x)


def _ref_conv1x1(x, w, b):
    return jnp.einsum("oc,bct->bot", w, x) + b[None]


def tcn_forward_ref(x, params):
    out = _ref_conv1x1(_ref_gn(x, params["ln_g"], params["ln_b"]),
                       params["bn_w"], params["bn_b"])
    B, BN, T = out.shape
    skip = jnp.zeros_like(out)
    L = params["conv_w"].shape[0]
    for li in range(L):
        d = params["dilations"][li]
        h = _ref_gn(_ref_prelu(_ref_conv1x1(out, params["conv_w"][li],
                                            params["conv_b"][li]),
                               params["a1"][li]),
                    params["g1"][li], params["b1"][li])
        hp = jnp.pad(h, ((0, 0), (0, 0), (d, d)))
        wd = params["dconv_w"][li]                  # (3, H, 1)
        y = (wd[0][None] * hp[:, :, 0:T]
             + wd[1][None] * hp[:, :, d:d + T]
             + wd[2][None] * hp[:, :, 2 * d:2 * d + T]
             + params["dconv_b"][li][None])
        y = _ref_gn(_ref_prelu(y, params["a2"][li]),
                    params["g2"][li], params["b2"][li])
        rs = _ref_conv1x1(y, params["rs_w"][li], params["rs_b"][li])
        out = out + rs[:, :BN]
        skip = skip + rs[:, BN:]
    return _ref_conv1x1(_ref_prelu(skip, params["out_a"][0]),
                        params["out_w"], params["out_b"])


# ----------------------------------------------------------------------------
# Deterministic parameter construction (stacked across layers)
# ----------------------------------------------------------------------------
def init_params(key, input_dim, output_dim, BN_dim, hidden_dim, layer, stack):
    L = layer * stack
    keys = iter(jax.random.split(key, 4 + 8 * L))

    def nrm(shape, scale=0.1):
        return scale * jax.random.normal(next(keys), shape, dtype=jnp.float32)

    params = {
        "ln_g": jnp.ones((input_dim, 1), jnp.float32),
        "ln_b": jnp.zeros((input_dim, 1), jnp.float32),
        "bn_w": nrm((BN_dim, input_dim)),
        "bn_b": nrm((BN_dim, 1)),
        # PReLU scalars (nn.PReLU default 0.25), stored flat for SMEM placement
        "a1": jnp.full((L,), 0.25, jnp.float32),
        "a2": jnp.full((L,), 0.25, jnp.float32),
        "out_a": jnp.full((1,), 0.25, jnp.float32),
        "out_w": nrm((output_dim, BN_dim)),
        "out_b": nrm((output_dim, 1)),
    }

    conv_w, conv_b, g1, b1 = [], [], [], []
    dconv_w, dconv_b, g2, b2 = [], [], [], []
    rs_w, rs_b, dils = [], [], []
    for _s in range(stack):
        for i in range(layer):
            d = 2 ** i                               # dilated=True
            dils.append(d)
            conv_w.append(nrm((hidden_dim, BN_dim)))
            conv_b.append(nrm((hidden_dim, 1)))
            g1.append(jnp.ones((hidden_dim, 1), jnp.float32))
            b1.append(jnp.zeros((hidden_dim, 1), jnp.float32))
            wd = nrm((hidden_dim, 3))                # (H, kernel)
            dconv_w.append(jnp.transpose(wd)[:, :, None])   # (3, H, 1)
            dconv_b.append(nrm((hidden_dim, 1)))
            g2.append(jnp.ones((hidden_dim, 1), jnp.float32))
            b2.append(jnp.zeros((hidden_dim, 1), jnp.float32))
            res_w, res_b = nrm((BN_dim, hidden_dim)), nrm((BN_dim, 1))
            skip_w, skip_b = nrm((BN_dim, hidden_dim)), nrm((BN_dim, 1))
            rs_w.append(jnp.concatenate([res_w, skip_w], axis=0))   # (2*BN, H)
            rs_b.append(jnp.concatenate([res_b, skip_b], axis=0))   # (2*BN, 1)

    params.update({
        "conv_w": jnp.stack(conv_w), "conv_b": jnp.stack(conv_b),
        "g1": jnp.stack(g1), "b1": jnp.stack(b1),
        "dconv_w": jnp.stack(dconv_w), "dconv_b": jnp.stack(dconv_b),
        "g2": jnp.stack(g2), "b2": jnp.stack(b2),
        "rs_w": jnp.stack(rs_w), "rs_b": jnp.stack(rs_b),
        "dilations": tuple(dils),
    })
    return params


if __name__ == "__main__":
    # Small shapes consistent with the module: input (B, input_dim, T).
    # T=128 keeps the time axis lane-dense; B=2 keeps both v7x cores busy.
    B, input_dim, output_dim, BN_dim, hidden_dim = 2, 16, 8, 16, 32
    layer, stack, T = 2, 2, 128

    key = jax.random.PRNGKey(0)
    kx, kp = jax.random.split(key)
    x = jax.random.normal(kx, (B, input_dim, T), dtype=jnp.float32)
    params = init_params(kp, input_dim, output_dim, BN_dim, hidden_dim, layer, stack)

    out = jax.block_until_ready(tcn_forward(x, params))
    ref = tcn_forward_ref(x, params)

    assert out.shape == (B, output_dim, T)
    # Tolerance covers differing matmul accumulation orders / precision paths
    # between the in-kernel MXU ops and the XLA reference.
    assert jnp.allclose(out, ref, atol=2e-3, rtol=2e-3), "mismatch vs reference"

    print("KERNEL_OK")
</pallas_src>

<mosaic_0001>
module attributes {stable_mosaic.version = 11 : i64} {
  func.func @kernel(%arg0: i32, %arg1: memref<1x16x128xf32, #tpu.memory_space<vmem>>, %arg2: memref<16x1xf32, #tpu.memory_space<vmem>>, %arg3: memref<16x1xf32, #tpu.memory_space<vmem>>, %arg4: memref<16x16xf32, #tpu.memory_space<vmem>>, %arg5: memref<16x1xf32, #tpu.memory_space<vmem>>, %arg6: memref<4x32x16xf32, #tpu.memory_space<vmem>>, %arg7: memref<4x32x1xf32, #tpu.memory_space<vmem>>, %arg8: memref<4xf32, #tpu.memory_space<smem>>, %arg9: memref<4x32x1xf32, #tpu.memory_space<vmem>>, %arg10: memref<4x32x1xf32, #tpu.memory_space<vmem>>, %arg11: memref<4x3x32x1xf32, #tpu.memory_space<vmem>>, %arg12: memref<4x32x1xf32, #tpu.memory_space<vmem>>, %arg13: memref<4xf32, #tpu.memory_space<smem>>, %arg14: memref<4x32x1xf32, #tpu.memory_space<vmem>>, %arg15: memref<4x32x1xf32, #tpu.memory_space<vmem>>, %arg16: memref<4x32x32xf32, #tpu.memory_space<vmem>>, %arg17: memref<4x32x1xf32, #tpu.memory_space<vmem>>, %arg18: memref<1xf32, #tpu.memory_space<smem>>, %arg19: memref<8x16xf32, #tpu.memory_space<vmem>>, %arg20: memref<8x1xf32, #tpu.memory_space<vmem>>, %arg21: memref<1x8x128xf32, #tpu.memory_space<vmem>>) attributes {dimension_semantics = [#tpu.dimension_semantics<parallel>], iteration_bounds = array<i64: 2>, scalar_prefetch = 0 : i64, scratch_operands = 0 : i64, tpu.core_type = #tpu.core_type<tc>, window_params = [{transform_indices = @transform_0, window_bounds = array<i64: 1, 16, 128>}, {pipeline_mode = #tpu.pipeline_mode<synchronous>, transform_indices = @transform_1, window_bounds = array<i64: 16, 1>}, {pipeline_mode = #tpu.pipeline_mode<synchronous>, transform_indices = @transform_2, window_bounds = array<i64: 16, 1>}, {pipeline_mode = #tpu.pipeline_mode<synchronous>, transform_indices = @transform_3, window_bounds = array<i64: 16, 16>}, {pipeline_mode = #tpu.pipeline_mode<synchronous>, transform_indices = @transform_4, window_bounds = array<i64: 16, 1>}, {pipeline_mode = #tpu.pipeline_mode<synchronous>, transform_indices = @transform_5, window_bounds = array<i64: 4, 32, 16>}, {pipeline_mode = #tpu.pipeline_mode<synchronous>, transform_indices = @transform_6, window_bounds = array<i64: 4, 32, 1>}, {transform_indices = @transform_7, window_bounds = array<i64: 4>}, {pipeline_mode = #tpu.pipeline_mode<synchronous>, transform_indices = @transform_8, window_bounds = array<i64: 4, 32, 1>}, {pipeline_mode = #tpu.pipeline_mode<synchronous>, transform_indices = @transform_9, window_bounds = array<i64: 4, 32, 1>}, {pipeline_mode = #tpu.pipeline_mode<synchronous>, transform_indices = @transform_10, window_bounds = array<i64: 4, 3, 32, 1>}, {pipeline_mode = #tpu.pipeline_mode<synchronous>, transform_indices = @transform_11, window_bounds = array<i64: 4, 32, 1>}, {transform_indices = @transform_12, window_bounds = array<i64: 4>}, {pipeline_mode = #tpu.pipeline_mode<synchronous>, transform_indices = @transform_13, window_bounds = array<i64: 4, 32, 1>}, {pipeline_mode = #tpu.pipeline_mode<synchronous>, transform_indices = @transform_14, window_bounds = array<i64: 4, 32, 1>}, {pipeline_mode = #tpu.pipeline_mode<synchronous>, transform_indices = @transform_15, window_bounds = array<i64: 4, 32, 32>}, {pipeline_mode = #tpu.pipeline_mode<synchronous>, transform_indices = @transform_16, window_bounds = array<i64: 4, 32, 1>}, {transform_indices = @transform_17, window_bounds = array<i64: 1>}, {pipeline_mode = #tpu.pipeline_mode<synchronous>, transform_indices = @transform_18, window_bounds = array<i64: 8, 16>}, {pipeline_mode = #tpu.pipeline_mode<synchronous>, transform_indices = @transform_19, window_bounds = array<i64: 8, 1>}, {transform_indices = @transform_20, window_bounds = array<i64: 1, 8, 128>}]} {
    %cst = arith.constant 1.000000e+00 : f32
    %0 = vector.broadcast %cst : f32 to vector<128x128xf32>
    %1 = tpu.iota {dimensions = array<i32: 0>} : vector<128x128xi32>
    %2 = tpu.iota {dimensions = array<i32: 1>} : vector<128x128xi32>
    %3 = arith.subi %2, %1 : vector<128x128xi32>
    %c1_i32 = arith.constant 1 : i32
    %4 = vector.broadcast %c1_i32 : i32 to vector<128x128xi32>
    %5 = arith.cmpi eq, %3, %4 : vector<128x128xi32>
    %6 = arith.extui %5 : vector<128x128xi1> to vector<128x128xi32>
    %7 = arith.sitofp %6 : vector<128x128xi32> to vector<128x128xf32>
    %8 = arith.subi %1, %2 : vector<128x128xi32>
    %c1_i32_0 = arith.constant 1 : i32
    %9 = vector.broadcast %c1_i32_0 : i32 to vector<128x128xi32>
    %10 = arith.cmpi eq, %8, %9 : vector<128x128xi32>
    %11 = arith.extui %10 : vector<128x128xi1> to vector<128x128xi32>
    %12 = arith.sitofp %11 : vector<128x128xi32> to vector<128x128xf32>
    %13 = arith.subi %2, %1 : vector<128x128xi32>
    %c2_i32 = arith.constant 2 : i32
    %14 = vector.broadcast %c2_i32 : i32 to vector<128x128xi32>
    %15 = arith.cmpi eq, %13, %14 : vector<128x128xi32>
    %16 = arith.extui %15 : vector<128x128xi1> to vector<128x128xi32>
    %17 = arith.sitofp %16 : vector<128x128xi32> to vector<128x128xf32>
    %18 = arith.subi %1, %2 : vector<128x128xi32>
    %c2_i32_1 = arith.constant 2 : i32
    %19 = vector.broadcast %c2_i32_1 : i32 to vector<128x128xi32>
    %20 = arith.cmpi eq, %18, %19 : vector<128x128xi32>
    %21 = arith.extui %20 : vector<128x128xi1> to vector<128x128xi32>
    %22 = arith.sitofp %21 : vector<128x128xi32> to vector<128x128xf32>
    %c0 = arith.constant 0 : index
    %c0_2 = arith.constant 0 : index
    %c0_3 = arith.constant 0 : index
    %23 = vector.load %arg1[%c0, %c0_2, %c0_3] : memref<1x16x128xf32, #tpu.memory_space<vmem>>, vector<1x16x128xf32>
    %24 = vector.shape_cast %23 : vector<1x16x128xf32> to vector<16x128xf32>
    %c0_4 = arith.constant 0 : index
    %c0_5 = arith.constant 0 : index
    %25 = vector.load %arg2[%c0_4, %c0_5] : memref<16x1xf32, #tpu.memory_space<vmem>>, vector<16x1xf32>
    %c0_6 = arith.constant 0 : index
    %c0_7 = arith.constant 0 : index
    %26 = vector.load %arg3[%c0_6, %c0_7] : memref<16x1xf32, #tpu.memory_space<vmem>>, vector<16x1xf32>
    %cst_8 = arith.constant dense<0.000000e+00> : vector<16x128xf32>
    %27 = tpu.matmul %24, %0, %cst_8 {dimension_numbers = #tpu.dot_dimension_numbers<[1], [0], [0], [1], [0, 0, 1, 1], [], []>} : vector<16x128xf32>, vector<128x128xf32>, vector<16x128xf32> -> vector<16x128xf32>
    %28 = vector.extract_strided_slice %27 {offsets = [0, 0], sizes = [16, 1], strides = [1, 1]} : vector<16x128xf32> to vector<16x1xf32>
    %29 = arith.mulf %24, %24 : vector<16x128xf32>
    %cst_9 = arith.constant dense<0.000000e+00> : vector<16x128xf32>
    %30 = tpu.matmul %29, %0, %cst_9 {dimension_numbers = #tpu.dot_dimension_numbers<[1], [0], [0], [1], [0, 0, 1, 1], [], []>} : vector<16x128xf32>, vector<128x128xf32>, vector<16x128xf32> -> vector<16x128xf32>
    %31 = vector.extract_strided_slice %30 {offsets = [0, 0], sizes = [16, 1], strides = [1, 1]} : vector<16x128xf32> to vector<16x1xf32>
    %32 = vector.shape_cast %28 : vector<16x1xf32> to vector<1x16x1xf32>
    %cst_10 = arith.constant dense<0.000000e+00> : vector<1xf32>
    %33 = vector.multi_reduction <add>, %32, %cst_10 [1, 2] : vector<1x16x1xf32> to vector<1xf32>
    %34 = vector.shape_cast %33 : vector<1xf32> to vector<1x1x1xf32>
    %35 = vector.extract %34[0, 0, 0] : f32 from vector<1x1x1xf32>
    %36 = vector.broadcast %35 : f32 to vector<1x1xf32>
    %37 = vector.shape_cast %31 : vector<16x1xf32> to vector<1x16x1xf32>
    %cst_11 = arith.constant dense<0.000000e+00> : vector<1xf32>
    %38 = vector.multi_reduction <add>, %37, %cst_11 [1, 2] : vector<1x16x1xf32> to vector<1xf32>
    %39 = vector.shape_cast %38 : vector<1xf32> to vector<1x1x1xf32>
    %40 = vector.extract %39[0, 0, 0] : f32 from vector<1x1x1xf32>
    %41 = vector.broadcast %40 : f32 to vector<1x1xf32>
    %cst_12 = arith.constant 4.8828125E-4 : f32
    %42 = vector.broadcast %cst_12 : f32 to vector<1x1xf32>
    %43 = arith.mulf %36, %42 : vector<1x1xf32>
    %cst_13 = arith.constant 4.8828125E-4 : f32
    %44 = vector.broadcast %cst_13 : f32 to vector<1x1xf32>
    %45 = arith.mulf %41, %44 : vector<1x1xf32>
    %46 = arith.mulf %43, %43 : vector<1x1xf32>
    %47 = arith.subf %45, %46 : vector<1x1xf32>
    %cst_14 = arith.constant 0.000000e+00 : f32
    %48 = vector.broadcast %cst_14 : f32 to vector<1x1xf32>
    %49 = arith.maximumf %47, %48 : vector<1x1xf32>
    %cst_15 = arith.constant 9.99999993E-9 : f32
    %50 = vector.broadcast %cst_15 : f32 to vector<1x1xf32>
    %51 = arith.addf %49, %50 : vector<1x1xf32>
    %52 = math.rsqrt %51 : vector<1x1xf32>
    %53 = vector.broadcast %52 : vector<1x1xf32> to vector<16x1xf32>
    %54 = arith.mulf %25, %53 : vector<16x1xf32>
    %55 = vector.broadcast %43 : vector<1x1xf32> to vector<16x1xf32>
    %56 = arith.mulf %55, %54 : vector<16x1xf32>
    %57 = arith.subf %26, %56 : vector<16x1xf32>
    %58 = vector.broadcast %54 : vector<16x1xf32> to vector<16x128xf32>
    %59 = arith.mulf %24, %58 : vector<16x128xf32>
    %60 = vector.broadcast %57 : vector<16x1xf32> to vector<16x128xf32>
    %61 = arith.addf %59, %60 : vector<16x128xf32>
    %c0_16 = arith.constant 0 : index
    %c0_17 = arith.constant 0 : index
    %62 = vector.load %arg4[%c0_16, %c0_17] : memref<16x16xf32, #tpu.memory_space<vmem>>, vector<16x16xf32>
    %c0_18 = arith.constant 0 : index
    %c0_19 = arith.constant 0 : index
    %63 = vector.load %arg5[%c0_18, %c0_19] : memref<16x1xf32, #tpu.memory_space<vmem>>, vector<16x1xf32>
    %cst_20 = arith.constant dense<0.000000e+00> : vector<16x128xf32>
    %64 = tpu.matmul %62, %61, %cst_20 {dimension_numbers = #tpu.dot_dimension_numbers<[1], [0], [0], [1], [0, 0, 1, 1], [], []>} : vector<16x16xf32>, vector<16x128xf32>, vector<16x128xf32> -> vector<16x128xf32>
    %65 = vector.broadcast %63 : vector<16x1xf32> to vector<16x128xf32>
    %66 = arith.addf %64, %65 : vector<16x128xf32>
    %cst_21 = arith.constant 0.000000e+00 : f32
    %67 = vector.broadcast %cst_21 : f32 to vector<16x128xf32>
    %c0_22 = arith.constant 0 : index
    %c0_23 = arith.constant 0 : index
    %c0_24 = arith.constant 0 : index
    %68 = vector.load %arg6[%c0_22, %c0_23, %c0_24] : memref<4x32x16xf32, #tpu.memory_space<vmem>>, vector<1x32x16xf32>
    %69 = vector.shape_cast %68 : vector<1x32x16xf32> to vector<32x16xf32>
    %c0_25 = arith.constant 0 : index
    %c0_26 = arith.constant 0 : index
    %c0_27 = arith.constant 0 : index
    %70 = vector.load %arg7[%c0_25, %c0_26, %c0_27] : memref<4x32x1xf32, #tpu.memory_space<vmem>>, vector<1x32x1xf32>
    %71 = vector.shape_cast %70 : vector<1x32x1xf32> to vector<32x1xf32>
    %cst_28 = arith.constant dense<0.000000e+00> : vector<32x128xf32>
    %72 = tpu.matmul %69, %66, %cst_28 {dimension_numbers = #tpu.dot_dimension_numbers<[1], [0], [0], [1], [0, 0, 1, 1], [], []>} : vector<32x16xf32>, vector<16x128xf32>, vector<32x128xf32> -> vector<32x128xf32>
    %73 = vector.broadcast %71 : vector<32x1xf32> to vector<32x128xf32>
    %74 = arith.addf %72, %73 : vector<32x128xf32>
    %c0_29 = arith.constant 0 : index
    %75 = memref.load %arg8[%c0_29] : memref<4xf32, #tpu.memory_space<smem>>
    %cst_30 = arith.constant 0.000000e+00 : f32
    %76 = vector.broadcast %cst_30 : f32 to vector<32x128xf32>
    %77 = arith.maximumf %74, %76 : vector<32x128xf32>
    %cst_31 = arith.constant 0.000000e+00 : f32
    %78 = vector.broadcast %cst_31 : f32 to vector<32x128xf32>
    %79 = arith.minimumf %74, %78 : vector<32x128xf32>
    %80 = vector.broadcast %75 : f32 to vector<32x128xf32>
    %81 = arith.mulf %80, %79 : vector<32x128xf32>
    %82 = arith.addf %77, %81 : vector<32x128xf32>
    %c0_32 = arith.constant 0 : index
    %c0_33 = arith.constant 0 : index
    %c0_34 = arith.constant 0 : index
    %83 = vector.load %arg9[%c0_32, %c0_33, %c0_34] : memref<4x32x1xf32, #tpu.memory_space<vmem>>, vector<1x32x1xf32>
    %84 = vector.shape_cast %83 : vector<1x32x1xf32> to vector<32x1xf32>
    %c0_35 = arith.constant 0 : index
    %c0_36 = arith.constant 0 : index
    %c0_37 = arith.constant 0 : index
    %85 = vector.load %arg10[%c0_35, %c0_36, %c0_37] : memref<4x32x1xf32, #tpu.memory_space<vmem>>, vector<1x32x1xf32>
    %86 = vector.shape_cast %85 : vector<1x32x1xf32> to vector<32x1xf32>
    %cst_38 = arith.constant dense<0.000000e+00> : vector<32x128xf32>
    %87 = tpu.matmul %82, %0, %cst_38 {dimension_numbers = #tpu.dot_dimension_numbers<[1], [0], [0], [1], [0, 0, 1, 1], [], []>} : vector<32x128xf32>, vector<128x128xf32>, vector<32x128xf32> -> vector<32x128xf32>
    %88 = vector.extract_strided_slice %87 {offsets = [0, 0], sizes = [32, 1], strides = [1, 1]} : vector<32x128xf32> to vector<32x1xf32>
    %89 = arith.mulf %82, %82 : vector<32x128xf32>
    %cst_39 = arith.constant dense<0.000000e+00> : vector<32x128xf32>
    %90 = tpu.matmul %89, %0, %cst_39 {dimension_numbers = #tpu.dot_dimension_numbers<[1], [0], [0], [1], [0, 0, 1, 1], [], []>} : vector<32x128xf32>, vector<128x128xf32>, vector<32x128xf32> -> vector<32x128xf32>
    %91 = vector.extract_strided_slice %90 {offsets = [0, 0], sizes = [32, 1], strides = [1, 1]} : vector<32x128xf32> to vector<32x1xf32>
    %92 = vector.shape_cast %88 : vector<32x1xf32> to vector<1x32x1xf32>
    %cst_40 = arith.constant dense<0.000000e+00> : vector<1xf32>
    %93 = vector.multi_reduction <add>, %92, %cst_40 [1, 2] : vector<1x32x1xf32> to vector<1xf32>
    %94 = vector.shape_cast %93 : vector<1xf32> to vector<1x1x1xf32>
    %95 = vector.extract %94[0, 0, 0] : f32 from vector<1x1x1xf32>
    %96 = vector.broadcast %95 : f32 to vector<1x1xf32>
    %97 = vector.shape_cast %91 : vector<32x1xf32> to vector<1x32x1xf32>
    %cst_41 = arith.constant dense<0.000000e+00> : vector<1xf32>
    %98 = vector.multi_reduction <add>, %97, %cst_41 [1, 2] : vector<1x32x1xf32> to vector<1xf32>
    %99 = vector.shape_cast %98 : vector<1xf32> to vector<1x1x1xf32>
    %100 = vector.extract %99[0, 0, 0] : f32 from vector<1x1x1xf32>
    %101 = vector.broadcast %100 : f32 to vector<1x1xf32>
    %cst_42 = arith.constant 2.44140625E-4 : f32
    %102 = vector.broadcast %cst_42 : f32 to vector<1x1xf32>
    %103 = arith.mulf %96, %102 : vector<1x1xf32>
    %cst_43 = arith.constant 2.44140625E-4 : f32
    %104 = vector.broadcast %cst_43 : f32 to vector<1x1xf32>
    %105 = arith.mulf %101, %104 : vector<1x1xf32>
    %106 = arith.mulf %103, %103 : vector<1x1xf32>
    %107 = arith.subf %105, %106 : vector<1x1xf32>
    %cst_44 = arith.constant 0.000000e+00 : f32
    %108 = vector.broadcast %cst_44 : f32 to vector<1x1xf32>
    %109 = arith.maximumf %107, %108 : vector<1x1xf32>
    %cst_45 = arith.constant 9.99999993E-9 : f32
    %110 = vector.broadcast %cst_45 : f32 to vector<1x1xf32>
    %111 = arith.addf %109, %110 : vector<1x1xf32>
    %112 = math.rsqrt %111 : vector<1x1xf32>
    %113 = vector.broadcast %112 : vector<1x1xf32> to vector<32x1xf32>
    %114 = arith.mulf %84, %113 : vector<32x1xf32>
    %115 = vector.broadcast %103 : vector<1x1xf32> to vector<32x1xf32>
    %116 = arith.mulf %115, %114 : vector<32x1xf32>
    %117 = arith.subf %86, %116 : vector<32x1xf32>
    %118 = vector.broadcast %114 : vector<32x1xf32> to vector<32x128xf32>
    %119 = arith.mulf %82, %118 : vector<32x128xf32>
    %120 = vector.broadcast %117 : vector<32x1xf32> to vector<32x128xf32>
    %121 = arith.addf %119, %120 : vector<32x128xf32>
    %cst_46 = arith.constant dense<0.000000e+00> : vector<32x128xf32>
    %122 = tpu.matmul %121, %7, %cst_46 {dimension_numbers = #tpu.dot_dimension_numbers<[1], [0], [0], [1], [0, 0, 1, 1], [], []>} : vector<32x128xf32>, vector<128x128xf32>, vector<32x128xf32> -> vector<32x128xf32>
    %cst_47 = arith.constant dense<0.000000e+00> : vector<32x128xf32>
    %123 = tpu.matmul %121, %12, %cst_47 {dimension_numbers = #tpu.dot_dimension_numbers<[1], [0], [0], [1], [0, 0, 1, 1], [], []>} : vector<32x128xf32>, vector<128x128xf32>, vector<32x128xf32> -> vector<32x128xf32>
    %c0_48 = arith.constant 0 : index
    %c0_49 = arith.constant 0 : index
    %c0_50 = arith.constant 0 : index
    %c0_51 = arith.constant 0 : index
    %124 = vector.load %arg11[%c0_48, %c0_49, %c0_50, %c0_51] : memref<4x3x32x1xf32, #tpu.memory_space<vmem>>, vector<1x1x32x1xf32>
    %125 = vector.shape_cast %124 : vector<1x1x32x1xf32> to vector<32x1xf32>
    %126 = vector.broadcast %125 : vector<32x1xf32> to vector<32x128xf32>
    %127 = arith.mulf %126, %122 : vector<32x128xf32>
    %c0_52 = arith.constant 0 : index
    %c1 = arith.constant 1 : index
    %c0_53 = arith.constant 0 : index
    %c0_54 = arith.constant 0 : index
    %128 = vector.load %arg11[%c0_52, %c1, %c0_53, %c0_54] : memref<4x3x32x1xf32, #tpu.memory_space<vmem>>, vector<1x1x32x1xf32>
    %129 = vector.shape_cast %128 : vector<1x1x32x1xf32> to vector<32x1xf32>
    %130 = vector.broadcast %129 : vector<32x1xf32> to vector<32x128xf32>
    %131 = arith.mulf %130, %121 : vector<32x128xf32>
    %132 = arith.addf %127, %131 : vector<32x128xf32>
    %c0_55 = arith.constant 0 : index
    %c2 = arith.constant 2 : index
    %c0_56 = arith.constant 0 : index
    %c0_57 = arith.constant 0 : index
    %133 = vector.load %arg11[%c0_55, %c2, %c0_56, %c0_57] : memref<4x3x32x1xf32, #tpu.memory_space<vmem>>, vector<1x1x32x1xf32>
    %134 = vector.shape_cast %133 : vector<1x1x32x1xf32> to vector<32x1xf32>
    %135 = vector.broadcast %134 : vector<32x1xf32> to vector<32x128xf32>
    %136 = arith.mulf %135, %123 : vector<32x128xf32>
    %137 = arith.addf %132, %136 : vector<32x128xf32>
    %c0_58 = arith.constant 0 : index
    %c0_59 = arith.constant 0 : index
    %c0_60 = arith.constant 0 : index
    %138 = vector.load %arg12[%c0_58, %c0_59, %c0_60] : memref<4x32x1xf32, #tpu.memory_space<vmem>>, vector<1x32x1xf32>
    %139 = vector.shape_cast %138 : vector<1x32x1xf32> to vector<32x1xf32>
    %140 = vector.broadcast %139 : vector<32x1xf32> to vector<32x128xf32>
    %141 = arith.addf %137, %140 : vector<32x128xf32>
    %c0_61 = arith.constant 0 : index
    %142 = memref.load %arg13[%c0_61] : memref<4xf32, #tpu.memory_space<smem>>
    %cst_62 = arith.constant 0.000000e+00 : f32
    %143 = vector.broadcast %cst_62 : f32 to vector<32x128xf32>
    %144 = arith.maximumf %141, %143 : vector<32x128xf32>
    %cst_63 = arith.constant 0.000000e+00 : f32
    %145 = vector.broadcast %cst_63 : f32 to vector<32x128xf32>
    %146 = arith.minimumf %141, %145 : vector<32x128xf32>
    %147 = vector.broadcast %142 : f32 to vector<32x128xf32>
    %148 = arith.mulf %147, %146 : vector<32x128xf32>
    %149 = arith.addf %144, %148 : vector<32x128xf32>
    %c0_64 = arith.constant 0 : index
    %c0_65 = arith.constant 0 : index
    %c0_66 = arith.constant 0 : index
    %150 = vector.load %arg14[%c0_64, %c0_65, %c0_66] : memref<4x32x1xf32, #tpu.memory_space<vmem>>, vector<1x32x1xf32>
    %151 = vector.shape_cast %150 : vector<1x32x1xf32> to vector<32x1xf32>
    %c0_67 = arith.constant 0 : index
    %c0_68 = arith.constant 0 : index
    %c0_69 = arith.constant 0 : index
    %152 = vector.load %arg15[%c0_67, %c0_68, %c0_69] : memref<4x32x1xf32, #tpu.memory_space<vmem>>, vector<1x32x1xf32>
    %153 = vector.shape_cast %152 : vector<1x32x1xf32> to vector<32x1xf32>
    %cst_70 = arith.constant dense<0.000000e+00> : vector<32x128xf32>
    %154 = tpu.matmul %149, %0, %cst_70 {dimension_numbers = #tpu.dot_dimension_numbers<[1], [0], [0], [1], [0, 0, 1, 1], [], []>} : vector<32x128xf32>, vector<128x128xf32>, vector<32x128xf32> -> vector<32x128xf32>
    %155 = vector.extract_strided_slice %154 {offsets = [0, 0], sizes = [32, 1], strides = [1, 1]} : vector<32x128xf32> to vector<32x1xf32>
    %156 = arith.mulf %149, %149 : vector<32x128xf32>
    %cst_71 = arith.constant dense<0.000000e+00> : vector<32x128xf32>
    %157 = tpu.matmul %156, %0, %cst_71 {dimension_numbers = #tpu.dot_dimension_numbers<[1], [0], [0], [1], [0, 0, 1, 1], [], []>} : vector<32x128xf32>, vector<128x128xf32>, vector<32x128xf32> -> vector<32x128xf32>
    %158 = vector.extract_strided_slice %157 {offsets = [0, 0], sizes = [32, 1], strides = [1, 1]} : vector<32x128xf32> to vector<32x1xf32>
    %159 = vector.shape_cast %155 : vector<32x1xf32> to vector<1x32x1xf32>
    %cst_72 = arith.constant dense<0.000000e+00> : vector<1xf32>
    %160 = vector.multi_reduction <add>, %159, %cst_72 [1, 2] : vector<1x32x1xf32> to vector<1xf32>
    %161 = vector.shape_cast %160 : vector<1xf32> to vector<1x1x1xf32>
    %162 = vector.extract %161[0, 0, 0] : f32 from vector<1x1x1xf32>
    %163 = vector.broadcast %162 : f32 to vector<1x1xf32>
    %164 = vector.shape_cast %158 : vector<32x1xf32> to vector<1x32x1xf32>
    %cst_73 = arith.constant dense<0.000000e+00> : vector<1xf32>
    %165 = vector.multi_reduction <add>, %164, %cst_73 [1, 2] : vector<1x32x1xf32> to vector<1xf32>
    %166 = vector.shape_cast %165 : vector<1xf32> to vector<1x1x1xf32>
    %167 = vector.extract %166[0, 0, 0] : f32 from vector<1x1x1xf32>
    %168 = vector.broadcast %167 : f32 to vector<1x1xf32>
    %cst_74 = arith.constant 2.44140625E-4 : f32
    %169 = vector.broadcast %cst_74 : f32 to vector<1x1xf32>
    %170 = arith.mulf %163, %169 : vector<1x1xf32>
    %cst_75 = arith.constant 2.44140625E-4 : f32
    %171 = vector.broadcast %cst_75 : f32 to vector<1x1xf32>
    %172 = arith.mulf %168, %171 : vector<1x1xf32>
    %173 = arith.mulf %170, %170 : vector<1x1xf32>
    %174 = arith.subf %172, %173 : vector<1x1xf32>
    %cst_76 = arith.constant 0.000000e+00 : f32
    %175 = vector.broadcast %cst_76 : f32 to vector<1x1xf32>
    %176 = arith.maximumf %174, %175 : vector<1x1xf32>
    %cst_77 = arith.constant 9.99999993E-9 : f32
    %177 = vector.broadcast %cst_77 : f32 to vector<1x1xf32>
    %178 = arith.addf %176, %177 : vector<1x1xf32>
    %179 = math.rsqrt %178 : vector<1x1xf32>
    %180 = vector.broadcast %179 : vector<1x1xf32> to vector<32x1xf32>
    %181 = arith.mulf %151, %180 : vector<32x1xf32>
    %182 = vector.broadcast %170 : vector<1x1xf32> to vector<32x1xf32>
    %183 = arith.mulf %182, %181 : vector<32x1xf32>
    %184 = arith.subf %153, %183 : vector<32x1xf32>
    %185 = vector.broadcast %181 : vector<32x1xf32> to vector<32x128xf32>
    %186 = arith.mulf %149, %185 : vector<32x128xf32>
    %187 = vector.broadcast %184 : vector<32x1xf32> to vector<32x128xf32>
    %188 = arith.addf %186, %187 : vector<32x128xf32>
    %c0_78 = arith.constant 0 : index
    %c0_79 = arith.constant 0 : index
    %c0_80 = arith.constant 0 : index
    %189 = vector.load %arg16[%c0_78, %c0_79, %c0_80] : memref<4x32x32xf32, #tpu.memory_space<vmem>>, vector<1x32x32xf32>
    %190 = vector.shape_cast %189 : vector<1x32x32xf32> to vector<32x32xf32>
    %c0_81 = arith.constant 0 : index
    %c0_82 = arith.constant 0 : index
    %c0_83 = arith.constant 0 : index
    %191 = vector.load %arg17[%c0_81, %c0_82, %c0_83] : memref<4x32x1xf32, #tpu.memory_space<vmem>>, vector<1x32x1xf32>
    %192 = vector.shape_cast %191 : vector<1x32x1xf32> to vector<32x1xf32>
    %cst_84 = arith.constant dense<0.000000e+00> : vector<32x128xf32>
    %193 = tpu.matmul %190, %188, %cst_84 {dimension_numbers = #tpu.dot_dimension_numbers<[1], [0], [0], [1], [0, 0, 1, 1], [], []>} : vector<32x32xf32>, vector<32x128xf32>, vector<32x128xf32> -> vector<32x128xf32>
    %194 = vector.broadcast %192 : vector<32x1xf32> to vector<32x128xf32>
    %195 = arith.addf %193, %194 : vector<32x128xf32>
    %196 = vector.extract_strided_slice %195 {offsets = [0, 0], sizes = [16, 128], strides = [1, 1]} : vector<32x128xf32> to vector<16x128xf32>
    %197 = arith.addf %66, %196 : vector<16x128xf32>
    %198 = vector.extract_strided_slice %195 {offsets = [16, 0], sizes = [16, 128], strides = [1, 1]} : vector<32x128xf32> to vector<16x128xf32>
    %199 = arith.addf %67, %198 : vector<16x128xf32>
    %c1_85 = arith.constant 1 : index
    %c0_86 = arith.constant 0 : index
    %c0_87 = arith.constant 0 : index
    %200 = vector.load %arg6[%c1_85, %c0_86, %c0_87] : memref<4x32x16xf32, #tpu.memory_space<vmem>>, vector<1x32x16xf32>
    %201 = vector.shape_cast %200 : vector<1x32x16xf32> to vector<32x16xf32>
    %c1_88 = arith.constant 1 : index
    %c0_89 = arith.constant 0 : index
    %c0_90 = arith.constant 0 : index
    %202 = vector.load %arg7[%c1_88, %c0_89, %c0_90] : memref<4x32x1xf32, #tpu.memory_space<vmem>>, vector<1x32x1xf32>
    %203 = vector.shape_cast %202 : vector<1x32x1xf32> to vector<32x1xf32>
    %cst_91 = arith.constant dense<0.000000e+00> : vector<32x128xf32>
    %204 = tpu.matmul %201, %197, %cst_91 {dimension_numbers = #tpu.dot_dimension_numbers<[1], [0], [0], [1], [0, 0, 1, 1], [], []>} : vector<32x16xf32>, vector<16x128xf32>, vector<32x128xf32> -> vector<32x128xf32>
    %205 = vector.broadcast %203 : vector<32x1xf32> to vector<32x128xf32>
    %206 = arith.addf %204, %205 : vector<32x128xf32>
    %c1_92 = arith.constant 1 : index
    %207 = memref.load %arg8[%c1_92] : memref<4xf32, #tpu.memory_space<smem>>
    %cst_93 = arith.constant 0.000000e+00 : f32
    %208 = vector.broadcast %cst_93 : f32 to vector<32x128xf32>
    %209 = arith.maximumf %206, %208 : vector<32x128xf32>
    %cst_94 = arith.constant 0.000000e+00 : f32
    %210 = vector.broadcast %cst_94 : f32 to vector<32x128xf32>
    %211 = arith.minimumf %206, %210 : vector<32x128xf32>
    %212 = vector.broadcast %207 : f32 to vector<32x128xf32>
    %213 = arith.mulf %212, %211 : vector<32x128xf32>
    %214 = arith.addf %209, %213 : vector<32x128xf32>
    %c1_95 = arith.constant 1 : index
    %c0_96 = arith.constant 0 : index
    %c0_97 = arith.constant 0 : index
    %215 = vector.load %arg9[%c1_95, %c0_96, %c0_97] : memref<4x32x1xf32, #tpu.memory_space<vmem>>, vector<1x32x1xf32>
    %216 = vector.shape_cast %215 : vector<1x32x1xf32> to vector<32x1xf32>
    %c1_98 = arith.constant 1 : index
    %c0_99 = arith.constant 0 : index
    %c0_100 = arith.constant 0 : index
    %217 = vector.load %arg10[%c1_98, %c0_99, %c0_100] : memref<4x32x1xf32, #tpu.memory_space<vmem>>, vector<1x32x1xf32>
    %218 = vector.shape_cast %217 : vector<1x32x1xf32> to vector<32x1xf32>
    %cst_101 = arith.constant dense<0.000000e+00> : vector<32x128xf32>
    %219 = tpu.matmul %214, %0, %cst_101 {dimension_numbers = #tpu.dot_dimension_numbers<[1], [0], [0], [1], [0, 0, 1, 1], [], []>} : vector<32x128xf32>, vector<128x128xf32>, vector<32x128xf32> -> vector<32x128xf32>
    %220 = vector.extract_strided_slice %219 {offsets = [0, 0], sizes = [32, 1], strides = [1, 1]} : vector<32x128xf32> to vector<32x1xf32>
    %221 = arith.mulf %214, %214 : vector<32x128xf32>
    %cst_102 = arith.constant dense<0.000000e+00> : vector<32x128xf32>
    %222 = tpu.matmul %221, %0, %cst_102 {dimension_numbers = #tpu.dot_dimension_numbers<[1], [0], [0], [1], [0, 0, 1, 1], [], []>} : vector<32x128xf32>, vector<128x128xf32>, vector<32x128xf32> -> vector<32x128xf32>
    %223 = vector.extract_strided_slice %222 {offsets = [0, 0], sizes = [32, 1], strides = [1, 1]} : vector<32x128xf32> to vector<32x1xf32>
    %224 = vector.shape_cast %220 : vector<32x1xf32> to vector<1x32x1xf32>
    %cst_103 = arith.constant dense<0.000000e+00> : vector<1xf32>
    %225 = vector.multi_reduction <add>, %224, %cst_103 [1, 2] : vector<1x32x1xf32> to vector<1xf32>
    %226 = vector.shape_cast %225 : vector<1xf32> to vector<1x1x1xf32>
    %227 = vector.extract %226[0, 0, 0] : f32 from vector<1x1x1xf32>
    %228 = vector.broadcast %227 : f32 to vector<1x1xf32>
    %229 = vector.shape_cast %223 : vector<32x1xf32> to vector<1x32x1xf32>
    %cst_104 = arith.constant dense<0.000000e+00> : vector<1xf32>
    %230 = vector.multi_reduction <add>, %229, %cst_104 [1, 2] : vector<1x32x1xf32> to vector<1xf32>
    %231 = vector.shape_cast %230 : vector<1xf32> to vector<1x1x1xf32>
    %232 = vector.extract %231[0, 0, 0] : f32 from vector<1x1x1xf32>
    %233 = vector.broadcast %232 : f32 to vector<1x1xf32>
    %cst_105 = arith.constant 2.44140625E-4 : f32
    %234 = vector.broadcast %cst_105 : f32 to vector<1x1xf32>
    %235 = arith.mulf %228, %234 : vector<1x1xf32>
    %cst_106 = arith.constant 2.44140625E-4 : f32
    %236 = vector.broadcast %cst_106 : f32 to vector<1x1xf32>
    %237 = arith.mulf %233, %236 : vector<1x1xf32>
    %238 = arith.mulf %235, %235 : vector<1x1xf32>
    %239 = arith.subf %237, %238 : vector<1x1xf32>
    %cst_107 = arith.constant 0.000000e+00 : f32
    %240 = vector.broadcast %cst_107 : f32 to vector<1x1xf32>
    %241 = arith.maximumf %239, %240 : vector<1x1xf32>
    %cst_108 = arith.constant 9.99999993E-9 : f32
    %242 = vector.broadcast %cst_108 : f32 to vector<1x1xf32>
    %243 = arith.addf %241, %242 : vector<1x1xf32>
    %244 = math.rsqrt %243 : vector<1x1xf32>
    %245 = vector.broadcast %244 : vector<1x1xf32> to vector<32x1xf32>
    %246 = arith.mulf %216, %245 : vector<32x1xf32>
    %247 = vector.broadcast %235 : vector<1x1xf32> to vector<32x1xf32>
    %248 = arith.mulf %247, %246 : vector<32x1xf32>
    %249 = arith.subf %218, %248 : vector<32x1xf32>
    %250 = vector.broadcast %246 : vector<32x1xf32> to vector<32x128xf32>
    %251 = arith.mulf %214, %250 : vector<32x128xf32>
    %252 = vector.broadcast %249 : vector<32x1xf32> to vector<32x128xf32>
    %253 = arith.addf %251, %252 : vector<32x128xf32>
    %cst_109 = arith.constant dense<0.000000e+00> : vector<32x128xf32>
    %254 = tpu.matmul %253, %17, %cst_109 {dimension_numbers = #tpu.dot_dimension_numbers<[1], [0], [0], [1], [0, 0, 1, 1], [], []>} : vector<32x128xf32>, vector<128x128xf32>, vector<32x128xf32> -> vector<32x128xf32>
    %cst_110 = arith.constant dense<0.000000e+00> : vector<32x128xf32>
    %255 = tpu.matmul %253, %22, %cst_110 {dimension_numbers = #tpu.dot_dimension_numbers<[1], [0], [0], [1], [0, 0, 1, 1], [], []>} : vector<32x128xf32>, vector<128x128xf32>, vector<32x128xf32> -> vector<32x128xf32>
    %c1_111 = arith.constant 1 : index
    %c0_112 = arith.constant 0 : index
    %c0_113 = arith.constant 0 : index
    %c0_114 = arith.constant 0 : index
    %256 = vector.load %arg11[%c1_111, %c0_112, %c0_113, %c0_114] : memref<4x3x32x1xf32, #tpu.memory_space<vmem>>, vector<1x1x32x1xf32>
    %257 = vector.shape_cast %256 : vector<1x1x32x1xf32> to vector<32x1xf32>
    %258 = vector.broadcast %257 : vector<32x1xf32> to vector<32x128xf32>
    %259 = arith.mulf %258, %254 : vector<32x128xf32>
    %c1_115 = arith.constant 1 : index
    %c1_116 = arith.constant 1 : index
    %c0_117 = arith.constant 0 : index
    %c0_118 = arith.constant 0 : index
    %260 = vector.load %arg11[%c1_115, %c1_116, %c0_117, %c0_118] : memref<4x3x32x1xf32, #tpu.memory_space<vmem>>, vector<1x1x32x1xf32>
    %261 = vector.shape_cast %260 : vector<1x1x32x1xf32> to vector<32x1xf32>
    %262 = vector.broadcast %261 : vector<32x1xf32> to vector<32x128xf32>
    %263 = arith.mulf %262, %253 : vector<32x128xf32>
    %264 = arith.addf %259, %263 : vector<32x128xf32>
    %c1_119 = arith.constant 1 : index
    %c2_120 = arith.constant 2 : index
    %c0_121 = arith.constant 0 : index
    %c0_122 = arith.constant 0 : index
    %265 = vector.load %arg11[%c1_119, %c2_120, %c0_121, %c0_122] : memref<4x3x32x1xf32, #tpu.memory_space<vmem>>, vector<1x1x32x1xf32>
    %266 = vector.shape_cast %265 : vector<1x1x32x1xf32> to vector<32x1xf32>
    %267 = vector.broadcast %266 : vector<32x1xf32> to vector<32x128xf32>
    %268 = arith.mulf %267, %255 : vector<32x128xf32>
    %269 = arith.addf %264, %268 : vector<32x128xf32>
    %c1_123 = arith.constant 1 : index
    %c0_124 = arith.constant 0 : index
    %c0_125 = arith.constant 0 : index
    %270 = vector.load %arg12[%c1_123, %c0_124, %c0_125] : memref<4x32x1xf32, #tpu.memory_space<vmem>>, vector<1x32x1xf32>
    %271 = vector.shape_cast %270 : vector<1x32x1xf32> to vector<32x1xf32>
    %272 = vector.broadcast %271 : vector<32x1xf32> to vector<32x128xf32>
    %273 = arith.addf %269, %272 : vector<32x128xf32>
    %c1_126 = arith.constant 1 : index
    %274 = memref.load %arg13[%c1_126] : memref<4xf32, #tpu.memory_space<smem>>
    %cst_127 = arith.constant 0.000000e+00 : f32
    %275 = vector.broadcast %cst_127 : f32 to vector<32x128xf32>
    %276 = arith.maximumf %273, %275 : vector<32x128xf32>
    %cst_128 = arith.constant 0.000000e+00 : f32
    %277 = vector.broadcast %cst_128 : f32 to vector<32x128xf32>
    %278 = arith.minimumf %273, %277 : vector<32x128xf32>
    %279 = vector.broadcast %274 : f32 to vector<32x128xf32>
    %280 = arith.mulf %279, %278 : vector<32x128xf32>
    %281 = arith.addf %276, %280 : vector<32x128xf32>
    %c1_129 = arith.constant 1 : index
    %c0_130 = arith.constant 0 : index
    %c0_131 = arith.constant 0 : index
    %282 = vector.load %arg14[%c1_129, %c0_130, %c0_131] : memref<4x32x1xf32, #tpu.memory_space<vmem>>, vector<1x32x1xf32>
    %283 = vector.shape_cast %282 : vector<1x32x1xf32> to vector<32x1xf32>
    %c1_132 = arith.constant 1 : index
    %c0_133 = arith.constant 0 : index
    %c0_134 = arith.constant 0 : index
    %284 = vector.load %arg15[%c1_132, %c0_133, %c0_134] : memref<4x32x1xf32, #tpu.memory_space<vmem>>, vector<1x32x1xf32>
    %285 = vector.shape_cast %284 : vector<1x32x1xf32> to vector<32x1xf32>
    %cst_135 = arith.constant dense<0.000000e+00> : vector<32x128xf32>
    %286 = tpu.matmul %281, %0, %cst_135 {dimension_numbers = #tpu.dot_dimension_numbers<[1], [0], [0], [1], [0, 0, 1, 1], [], []>} : vector<32x128xf32>, vector<128x128xf32>, vector<32x128xf32> -> vector<32x128xf32>
    %287 = vector.extract_strided_slice %286 {offsets = [0, 0], sizes = [32, 1], strides = [1, 1]} : vector<32x128xf32> to vector<32x1xf32>
    %288 = arith.mulf %281, %281 : vector<32x128xf32>
    %cst_136 = arith.constant dense<0.000000e+00> : vector<32x128xf32>
    %289 = tpu.matmul %288, %0, %cst_136 {dimension_numbers = #tpu.dot_dimension_numbers<[1], [0], [0], [1], [0, 0, 1, 1], [], []>} : vector<32x128xf32>, vector<128x128xf32>, vector<32x128xf32> -> vector<32x128xf32>
    %290 = vector.extract_strided_slice %289 {offsets = [0, 0], sizes = [32, 1], strides = [1, 1]} : vector<32x128xf32> to vector<32x1xf32>
    %291 = vector.shape_cast %287 : vector<32x1xf32> to vector<1x32x1xf32>
    %cst_137 = arith.constant dense<0.000000e+00> : vector<1xf32>
    %292 = vector.multi_reduction <add>, %291, %cst_137 [1, 2] : vector<1x32x1xf32> to vector<1xf32>
    %293 = vector.shape_cast %292 : vector<1xf32> to vector<1x1x1xf32>
    %294 = vector.extract %293[0, 0, 0] : f32 from vector<1x1x1xf32>
    %295 = vector.broadcast %294 : f32 to vector<1x1xf32>
    %296 = vector.shape_cast %290 : vector<32x1xf32> to vector<1x32x1xf32>
    %cst_138 = arith.constant dense<0.000000e+00> : vector<1xf32>
    %297 = vector.multi_reduction <add>, %296, %cst_138 [1, 2] : vector<1x32x1xf32> to vector<1xf32>
    %298 = vector.shape_cast %297 : vector<1xf32> to vector<1x1x1xf32>
    %299 = vector.extract %298[0, 0, 0] : f32 from vector<1x1x1xf32>
    %300 = vector.broadcast %299 : f32 to vector<1x1xf32>
    %cst_139 = arith.constant 2.44140625E-4 : f32
    %301 = vector.broadcast %cst_139 : f32 to vector<1x1xf32>
    %302 = arith.mulf %295, %301 : vector<1x1xf32>
    %cst_140 = arith.constant 2.44140625E-4 : f32
    %303 = vector.broadcast %cst_140 : f32 to vector<1x1xf32>
    %304 = arith.mulf %300, %303 : vector<1x1xf32>
    %305 = arith.mulf %302, %302 : vector<1x1xf32>
    %306 = arith.subf %304, %305 : vector<1x1xf32>
    %cst_141 = arith.constant 0.000000e+00 : f32
    %307 = vector.broadcast %cst_141 : f32 to vector<1x1xf32>
    %308 = arith.maximumf %306, %307 : vector<1x1xf32>
    %cst_142 = arith.constant 9.99999993E-9 : f32
    %309 = vector.broadcast %cst_142 : f32 to vector<1x1xf32>
    %310 = arith.addf %308, %309 : vector<1x1xf32>
    %311 = math.rsqrt %310 : vector<1x1xf32>
    %312 = vector.broadcast %311 : vector<1x1xf32> to vector<32x1xf32>
    %313 = arith.mulf %283, %312 : vector<32x1xf32>
    %314 = vector.broadcast %302 : vector<1x1xf32> to vector<32x1xf32>
    %315 = arith.mulf %314, %313 : vector<32x1xf32>
    %316 = arith.subf %285, %315 : vector<32x1xf32>
    %317 = vector.broadcast %313 : vector<32x1xf32> to vector<32x128xf32>
    %318 = arith.mulf %281, %317 : vector<32x128xf32>
    %319 = vector.broadcast %316 : vector<32x1xf32> to vector<32x128xf32>
    %320 = arith.addf %318, %319 : vector<32x128xf32>
    %c1_143 = arith.constant 1 : index
    %c0_144 = arith.constant 0 : index
    %c0_145 = arith.constant 0 : index
    %321 = vector.load %arg16[%c1_143, %c0_144, %c0_145] : memref<4x32x32xf32, #tpu.memory_space<vmem>>, vector<1x32x32xf32>
    %322 = vector.shape_cast %321 : vector<1x32x32xf32> to vector<32x32xf32>
    %c1_146 = arith.constant 1 : index
    %c0_147 = arith.constant 0 : index
    %c0_148 = arith.constant 0 : index
    %323 = vector.load %arg17[%c1_146, %c0_147, %c0_148] : memref<4x32x1xf32, #tpu.memory_space<vmem>>, vector<1x32x1xf32>
    %324 = vector.shape_cast %323 : vector<1x32x1xf32> to vector<32x1xf32>
    %cst_149 = arith.constant dense<0.000000e+00> : vector<32x128xf32>
    %325 = tpu.matmul %322, %320, %cst_149 {dimension_numbers = #tpu.dot_dimension_numbers<[1], [0], [0], [1], [0, 0, 1, 1], [], []>} : vector<32x32xf32>, vector<32x128xf32>, vector<32x128xf32> -> vector<32x128xf32>
    %326 = vector.broadcast %324 : vector<32x1xf32> to vector<32x128xf32>
    %327 = arith.addf %325, %326 : vector<32x128xf32>
    %328 = vector.extract_strided_slice %327 {offsets = [0, 0], sizes = [16, 128], strides = [1, 1]} : vector<32x128xf32> to vector<16x128xf32>
    %329 = arith.addf %197, %328 : vector<16x128xf32>
    %330 = vector.extract_strided_slice %327 {offsets = [16, 0], sizes = [16, 128], strides = [1, 1]} : vector<32x128xf32> to vector<16x128xf32>
    %331 = arith.addf %199, %330 : vector<16x128xf32>
    %c2_150 = arith.constant 2 : index
    %c0_151 = arith.constant 0 : index
    %c0_152 = arith.constant 0 : index
    %332 = vector.load %arg6[%c2_150, %c0_151, %c0_152] : memref<4x32x16xf32, #tpu.memory_space<vmem>>, vector<1x32x16xf32>
    %333 = vector.shape_cast %332 : vector<1x32x16xf32> to vector<32x16xf32>
    %c2_153 = arith.constant 2 : index
    %c0_154 = arith.constant 0 : index
    %c0_155 = arith.constant 0 : index
    %334 = vector.load %arg7[%c2_153, %c0_154, %c0_155] : memref<4x32x1xf32, #tpu.memory_space<vmem>>, vector<1x32x1xf32>
    %335 = vector.shape_cast %334 : vector<1x32x1xf32> to vector<32x1xf32>
    %cst_156 = arith.constant dense<0.000000e+00> : vector<32x128xf32>
    %336 = tpu.matmul %333, %329, %cst_156 {dimension_numbers = #tpu.dot_dimension_numbers<[1], [0], [0], [1], [0, 0, 1, 1], [], []>} : vector<32x16xf32>, vector<16x128xf32>, vector<32x128xf32> -> vector<32x128xf32>
    %337 = vector.broadcast %335 : vector<32x1xf32> to vector<32x128xf32>
    %338 = arith.addf %336, %337 : vector<32x128xf32>
    %c2_157 = arith.constant 2 : index
    %339 = memref.load %arg8[%c2_157] : memref<4xf32, #tpu.memory_space<smem>>
    %cst_158 = arith.constant 0.000000e+00 : f32
    %340 = vector.broadcast %cst_158 : f32 to vector<32x128xf32>
    %341 = arith.maximumf %338, %340 : vector<32x128xf32>
    %cst_159 = arith.constant 0.000000e+00 : f32
    %342 = vector.broadcast %cst_159 : f32 to vector<32x128xf32>
    %343 = arith.minimumf %338, %342 : vector<32x128xf32>
    %344 = vector.broadcast %339 : f32 to vector<32x128xf32>
    %345 = arith.mulf %344, %343 : vector<32x128xf32>
    %346 = arith.addf %341, %345 : vector<32x128xf32>
    %c2_160 = arith.constant 2 : index
    %c0_161 = arith.constant 0 : index
    %c0_162 = arith.constant 0 : index
    %347 = vector.load %arg9[%c2_160, %c0_161, %c0_162] : memref<4x32x1xf32, #tpu.memory_space<vmem>>, vector<1x32x1xf32>
    %348 = vector.shape_cast %347 : vector<1x32x1xf32> to vector<32x1xf32>
    %c2_163 = arith.constant 2 : index
    %c0_164 = arith.constant 0 : index
    %c0_165 = arith.constant 0 : index
    %349 = vector.load %arg10[%c2_163, %c0_164, %c0_165] : memref<4x32x1xf32, #tpu.memory_space<vmem>>, vector<1x32x1xf32>
    %350 = vector.shape_cast %349 : vector<1x32x1xf32> to vector<32x1xf32>
    %cst_166 = arith.constant dense<0.000000e+00> : vector<32x128xf32>
    %351 = tpu.matmul %346, %0, %cst_166 {dimension_numbers = #tpu.dot_dimension_numbers<[1], [0], [0], [1], [0, 0, 1, 1], [], []>} : vector<32x128xf32>, vector<128x128xf32>, vector<32x128xf32> -> vector<32x128xf32>
    %352 = vector.extract_strided_slice %351 {offsets = [0, 0], sizes = [32, 1], strides = [1, 1]} : vector<32x128xf32> to vector<32x1xf32>
    %353 = arith.mulf %346, %346 : vector<32x128xf32>
    %cst_167 = arith.constant dense<0.000000e+00> : vector<32x128xf32>
    %354 = tpu.matmul %353, %0, %cst_167 {dimension_numbers = #tpu.dot_dimension_numbers<[1], [0], [0], [1], [0, 0, 1, 1], [], []>} : vector<32x128xf32>, vector<128x128xf32>, vector<32x128xf32> -> vector<32x128xf32>
    %355 = vector.extract_strided_slice %354 {offsets = [0, 0], sizes = [32, 1], strides = [1, 1]} : vector<32x128xf32> to vector<32x1xf32>
    %356 = vector.shape_cast %352 : vector<32x1xf32> to vector<1x32x1xf32>
    %cst_168 = arith.constant dense<0.000000e+00> : vector<1xf32>
    %357 = vector.multi_reduction <add>, %356, %cst_168 [1, 2] : vector<1x32x1xf32> to vector<1xf32>
    %358 = vector.shape_cast %357 : vector<1xf32> to vector<1x1x1xf32>
    %359 = vector.extract %358[0, 0, 0] : f32 from vector<1x1x1xf32>
    %360 = vector.broadcast %359 : f32 to vector<1x1xf32>
    %361 = vector.shape_cast %355 : vector<32x1xf32> to vector<1x32x1xf32>
    %cst_169 = arith.constant dense<0.000000e+00> : vector<1xf32>
    %362 = vector.multi_reduction <add>, %361, %cst_169 [1, 2] : vector<1x32x1xf32> to vector<1xf32>
    %363 = vector.shape_cast %362 : vector<1xf32> to vector<1x1x1xf32>
    %364 = vector.extract %363[0, 0, 0] : f32 from vector<1x1x1xf32>
    %365 = vector.broadcast %364 : f32 to vector<1x1xf32>
    %cst_170 = arith.constant 2.44140625E-4 : f32
    %366 = vector.broadcast %cst_170 : f32 to vector<1x1xf32>
    %367 = arith.mulf %360, %366 : vector<1x1xf32>
    %cst_171 = arith.constant 2.44140625E-4 : f32
    %368 = vector.broadcast %cst_171 : f32 to vector<1x1xf32>
    %369 = arith.mulf %365, %368 : vector<1x1xf32>
    %370 = arith.mulf %367, %367 : vector<1x1xf32>
    %371 = arith.subf %369, %370 : vector<1x1xf32>
    %cst_172 = arith.constant 0.000000e+00 : f32
    %372 = vector.broadcast %cst_172 : f32 to vector<1x1xf32>
    %373 = arith.maximumf %371, %372 : vector<1x1xf32>
    %cst_173 = arith.constant 9.99999993E-9 : f32
    %374 = vector.broadcast %cst_173 : f32 to vector<1x1xf32>
    %375 = arith.addf %373, %374 : vector<1x1xf32>
    %376 = math.rsqrt %375 : vector<1x1xf32>
    %377 = vector.broadcast %376 : vector<1x1xf32> to vector<32x1xf32>
    %378 = arith.mulf %348, %377 : vector<32x1xf32>
    %379 = vector.broadcast %367 : vector<1x1xf32> to vector<32x1xf32>
    %380 = arith.mulf %379, %378 : vector<32x1xf32>
    %381 = arith.subf %350, %380 : vector<32x1xf32>
    %382 = vector.broadcast %378 : vector<32x1xf32> to vector<32x128xf32>
    %383 = arith.mulf %346, %382 : vector<32x128xf32>
    %384 = vector.broadcast %381 : vector<32x1xf32> to vector<32x128xf32>
    %385 = arith.addf %383, %384 : vector<32x128xf32>
    %cst_174 = arith.constant dense<0.000000e+00> : vector<32x128xf32>
    %386 = tpu.matmul %385, %7, %cst_174 {dimension_numbers = #tpu.dot_dimension_numbers<[1], [0], [0], [1], [0, 0, 1, 1], [], []>} : vector<32x128xf32>, vector<128x128xf32>, vector<32x128xf32> -> vector<32x128xf32>
    %cst_175 = arith.constant dense<0.000000e+00> : vector<32x128xf32>
    %387 = tpu.matmul %385, %12, %cst_175 {dimension_numbers = #tpu.dot_dimension_numbers<[1], [0], [0], [1], [0, 0, 1, 1], [], []>} : vector<32x128xf32>, vector<128x128xf32>, vector<32x128xf32> -> vector<32x128xf32>
    %c2_176 = arith.constant 2 : index
    %c0_177 = arith.constant 0 : index
    %c0_178 = arith.constant 0 : index
    %c0_179 = arith.constant 0 : index
    %388 = vector.load %arg11[%c2_176, %c0_177, %c0_178, %c0_179] : memref<4x3x32x1xf32, #tpu.memory_space<vmem>>, vector<1x1x32x1xf32>
    %389 = vector.shape_cast %388 : vector<1x1x32x1xf32> to vector<32x1xf32>
    %390 = vector.broadcast %389 : vector<32x1xf32> to vector<32x128xf32>
    %391 = arith.mulf %390, %386 : vector<32x128xf32>
    %c2_180 = arith.constant 2 : index
    %c1_181 = arith.constant 1 : index
    %c0_182 = arith.constant 0 : index
    %c0_183 = arith.constant 0 : index
    %392 = vector.load %arg11[%c2_180, %c1_181, %c0_182, %c0_183] : memref<4x3x32x1xf32, #tpu.memory_space<vmem>>, vector<1x1x32x1xf32>
    %393 = vector.shape_cast %392 : vector<1x1x32x1xf32> to vector<32x1xf32>
    %394 = vector.broadcast %393 : vector<32x1xf32> to vector<32x128xf32>
    %395 = arith.mulf %394, %385 : vector<32x128xf32>
    %396 = arith.addf %391, %395 : vector<32x128xf32>
    %c2_184 = arith.constant 2 : index
    %c2_185 = arith.constant 2 : index
    %c0_186 = arith.constant 0 : index
    %c0_187 = arith.constant 0 : index
    %397 = vector.load %arg11[%c2_184, %c2_185, %c0_186, %c0_187] : memref<4x3x32x1xf32, #tpu.memory_space<vmem>>, vector<1x1x32x1xf32>
    %398 = vector.shape_cast %397 : vector<1x1x32x1xf32> to vector<32x1xf32>
    %399 = vector.broadcast %398 : vector<32x1xf32> to vector<32x128xf32>
    %400 = arith.mulf %399, %387 : vector<32x128xf32>
    %401 = arith.addf %396, %400 : vector<32x128xf32>
    %c2_188 = arith.constant 2 : index
    %c0_189 = arith.constant 0 : index
    %c0_190 = arith.constant 0 : index
    %402 = vector.load %arg12[%c2_188, %c0_189, %c0_190] : memref<4x32x1xf32, #tpu.memory_space<vmem>>, vector<1x32x1xf32>
    %403 = vector.shape_cast %402 : vector<1x32x1xf32> to vector<32x1xf32>
    %404 = vector.broadcast %403 : vector<32x1xf32> to vector<32x128xf32>
    %405 = arith.addf %401, %404 : vector<32x128xf32>
    %c2_191 = arith.constant 2 : index
    %406 = memref.load %arg13[%c2_191] : memref<4xf32, #tpu.memory_space<smem>>
    %cst_192 = arith.constant 0.000000e+00 : f32
    %407 = vector.broadcast %cst_192 : f32 to vector<32x128xf32>
    %408 = arith.maximumf %405, %407 : vector<32x128xf32>
    %cst_193 = arith.constant 0.000000e+00 : f32
    %409 = vector.broadcast %cst_193 : f32 to vector<32x128xf32>
    %410 = arith.minimumf %405, %409 : vector<32x128xf32>
    %411 = vector.broadcast %406 : f32 to vector<32x128xf32>
    %412 = arith.mulf %411, %410 : vector<32x128xf32>
    %413 = arith.addf %408, %412 : vector<32x128xf32>
    %c2_194 = arith.constant 2 : index
    %c0_195 = arith.constant 0 : index
    %c0_196 = arith.constant 0 : index
    %414 = vector.load %arg14[%c2_194, %c0_195, %c0_196] : memref<4x32x1xf32, #tpu.memory_space<vmem>>, vector<1x32x1xf32>
    %415 = vector.shape_cast %414 : vector<1x32x1xf32> to vector<32x1xf32>
    %c2_197 = arith.constant 2 : index
    %c0_198 = arith.constant 0 : index
    %c0_199 = arith.constant 0 : index
    %416 = vector.load %arg15[%c2_197, %c0_198, %c0_199] : memref<4x32x1xf32, #tpu.memory_space<vmem>>, vector<1x32x1xf32>
    %417 = vector.shape_cast %416 : vector<1x32x1xf32> to vector<32x1xf32>
    %cst_200 = arith.constant dense<0.000000e+00> : vector<32x128xf32>
    %418 = tpu.matmul %413, %0, %cst_200 {dimension_numbers = #tpu.dot_dimension_numbers<[1], [0], [0], [1], [0, 0, 1, 1], [], []>} : vector<32x128xf32>, vector<128x128xf32>, vector<32x128xf32> -> vector<32x128xf32>
    %419 = vector.extract_strided_slice %418 {offsets = [0, 0], sizes = [32, 1], strides = [1, 1]} : vector<32x128xf32> to vector<32x1xf32>
    %420 = arith.mulf %413, %413 : vector<32x128xf32>
    %cst_201 = arith.constant dense<0.000000e+00> : vector<32x128xf32>
    %421 = tpu.matmul %420, %0, %cst_201 {dimension_numbers = #tpu.dot_dimension_numbers<[1], [0], [0], [1], [0, 0, 1, 1], [], []>} : vector<32x128xf32>, vector<128x128xf32>, vector<32x128xf32> -> vector<32x128xf32>
    %422 = vector.extract_strided_slice %421 {offsets = [0, 0], sizes = [32, 1], strides = [1, 1]} : vector<32x128xf32> to vector<32x1xf32>
    %423 = vector.shape_cast %419 : vector<32x1xf32> to vector<1x32x1xf32>
    %cst_202 = arith.constant dense<0.000000e+00> : vector<1xf32>
    %424 = vector.multi_reduction <add>, %423, %cst_202 [1, 2] : vector<1x32x1xf32> to vector<1xf32>
    %425 = vector.shape_cast %424 : vector<1xf32> to vector<1x1x1xf32>
    %426 = vector.extract %425[0, 0, 0] : f32 from vector<1x1x1xf32>
    %427 = vector.broadcast %426 : f32 to vector<1x1xf32>
    %428 = vector.shape_cast %422 : vector<32x1xf32> to vector<1x32x1xf32>
    %cst_203 = arith.constant dense<0.000000e+00> : vector<1xf32>
    %429 = vector.multi_reduction <add>, %428, %cst_203 [1, 2] : vector<1x32x1xf32> to vector<1xf32>
    %430 = vector.shape_cast %429 : vector<1xf32> to vector<1x1x1xf32>
    %431 = vector.extract %430[0, 0, 0] : f32 from vector<1x1x1xf32>
    %432 = vector.broadcast %431 : f32 to vector<1x1xf32>
    %cst_204 = arith.constant 2.44140625E-4 : f32
    %433 = vector.broadcast %cst_204 : f32 to vector<1x1xf32>
    %434 = arith.mulf %427, %433 : vector<1x1xf32>
    %cst_205 = arith.constant 2.44140625E-4 : f32
    %435 = vector.broadcast %cst_205 : f32 to vector<1x1xf32>
    %436 = arith.mulf %432, %435 : vector<1x1xf32>
    %437 = arith.mulf %434, %434 : vector<1x1xf32>
    %438 = arith.subf %436, %437 : vector<1x1xf32>
    %cst_206 = arith.constant 0.000000e+00 : f32
    %439 = vector.broadcast %cst_206 : f32 to vector<1x1xf32>
    %440 = arith.maximumf %438, %439 : vector<1x1xf32>
    %cst_207 = arith.constant 9.99999993E-9 : f32
    %441 = vector.broadcast %cst_207 : f32 to vector<1x1xf32>
    %442 = arith.addf %440, %441 : vector<1x1xf32>
    %443 = math.rsqrt %442 : vector<1x1xf32>
    %444 = vector.broadcast %443 : vector<1x1xf32> to vector<32x1xf32>
    %445 = arith.mulf %415, %444 : vector<32x1xf32>
    %446 = vector.broadcast %434 : vector<1x1xf32> to vector<32x1xf32>
    %447 = arith.mulf %446, %445 : vector<32x1xf32>
    %448 = arith.subf %417, %447 : vector<32x1xf32>
    %449 = vector.broadcast %445 : vector<32x1xf32> to vector<32x128xf32>
    %450 = arith.mulf %413, %449 : vector<32x128xf32>
    %451 = vector.broadcast %448 : vector<32x1xf32> to vector<32x128xf32>
    %452 = arith.addf %450, %451 : vector<32x128xf32>
    %c2_208 = arith.constant 2 : index
    %c0_209 = arith.constant 0 : index
    %c0_210 = arith.constant 0 : index
    %453 = vector.load %arg16[%c2_208, %c0_209, %c0_210] : memref<4x32x32xf32, #tpu.memory_space<vmem>>, vector<1x32x32xf32>
    %454 = vector.shape_cast %453 : vector<1x32x32xf32> to vector<32x32xf32>
    %c2_211 = arith.constant 2 : index
    %c0_212 = arith.constant 0 : index
    %c0_213 = arith.constant 0 : index
    %455 = vector.load %arg17[%c2_211, %c0_212, %c0_213] : memref<4x32x1xf32, #tpu.memory_space<vmem>>, vector<1x32x1xf32>
    %456 = vector.shape_cast %455 : vector<1x32x1xf32> to vector<32x1xf32>
    %cst_214 = arith.constant dense<0.000000e+00> : vector<32x128xf32>
    %457 = tpu.matmul %454, %452, %cst_214 {dimension_numbers = #tpu.dot_dimension_numbers<[1], [0], [0], [1], [0, 0, 1, 1], [], []>} : vector<32x32xf32>, vector<32x128xf32>, vector<32x128xf32> -> vector<32x128xf32>
    %458 = vector.broadcast %456 : vector<32x1xf32> to vector<32x128xf32>
    %459 = arith.addf %457, %458 : vector<32x128xf32>
    %460 = vector.extract_strided_slice %459 {offsets = [0, 0], sizes = [16, 128], strides = [1, 1]} : vector<32x128xf32> to vector<16x128xf32>
    %461 = arith.addf %329, %460 : vector<16x128xf32>
    %462 = vector.extract_strided_slice %459 {offsets = [16, 0], sizes = [16, 128], strides = [1, 1]} : vector<32x128xf32> to vector<16x128xf32>
    %463 = arith.addf %331, %462 : vector<16x128xf32>
    %c3 = arith.constant 3 : index
    %c0_215 = arith.constant 0 : index
    %c0_216 = arith.constant 0 : index
    %464 = vector.load %arg6[%c3, %c0_215, %c0_216] : memref<4x32x16xf32, #tpu.memory_space<vmem>>, vector<1x32x16xf32>
    %465 = vector.shape_cast %464 : vector<1x32x16xf32> to vector<32x16xf32>
    %c3_217 = arith.constant 3 : index
    %c0_218 = arith.constant 0 : index
    %c0_219 = arith.constant 0 : index
    %466 = vector.load %arg7[%c3_217, %c0_218, %c0_219] : memref<4x32x1xf32, #tpu.memory_space<vmem>>, vector<1x32x1xf32>
    %467 = vector.shape_cast %466 : vector<1x32x1xf32> to vector<32x1xf32>
    %cst_220 = arith.constant dense<0.000000e+00> : vector<32x128xf32>
    %468 = tpu.matmul %465, %461, %cst_220 {dimension_numbers = #tpu.dot_dimension_numbers<[1], [0], [0], [1], [0, 0, 1, 1], [], []>} : vector<32x16xf32>, vector<16x128xf32>, vector<32x128xf32> -> vector<32x128xf32>
    %469 = vector.broadcast %467 : vector<32x1xf32> to vector<32x128xf32>
    %470 = arith.addf %468, %469 : vector<32x128xf32>
    %c3_221 = arith.constant 3 : index
    %471 = memref.load %arg8[%c3_221] : memref<4xf32, #tpu.memory_space<smem>>
    %cst_222 = arith.constant 0.000000e+00 : f32
    %472 = vector.broadcast %cst_222 : f32 to vector<32x128xf32>
    %473 = arith.maximumf %470, %472 : vector<32x128xf32>
    %cst_223 = arith.constant 0.000000e+00 : f32
    %474 = vector.broadcast %cst_223 : f32 to vector<32x128xf32>
    %475 = arith.minimumf %470, %474 : vector<32x128xf32>
    %476 = vector.broadcast %471 : f32 to vector<32x128xf32>
    %477 = arith.mulf %476, %475 : vector<32x128xf32>
    %478 = arith.addf %473, %477 : vector<32x128xf32>
    %c3_224 = arith.constant 3 : index
    %c0_225 = arith.constant 0 : index
    %c0_226 = arith.constant 0 : index
    %479 = vector.load %arg9[%c3_224, %c0_225, %c0_226] : memref<4x32x1xf32, #tpu.memory_space<vmem>>, vector<1x32x1xf32>
    %480 = vector.shape_cast %479 : vector<1x32x1xf32> to vector<32x1xf32>
    %c3_227 = arith.constant 3 : index
    %c0_228 = arith.constant 0 : index
    %c0_229 = arith.constant 0 : index
    %481 = vector.load %arg10[%c3_227, %c0_228, %c0_229] : memref<4x32x1xf32, #tpu.memory_space<vmem>>, vector<1x32x1xf32>
    %482 = vector.shape_cast %481 : vector<1x32x1xf32> to vector<32x1xf32>
    %cst_230 = arith.constant dense<0.000000e+00> : vector<32x128xf32>
    %483 = tpu.matmul %478, %0, %cst_230 {dimension_numbers = #tpu.dot_dimension_numbers<[1], [0], [0], [1], [0, 0, 1, 1], [], []>} : vector<32x128xf32>, vector<128x128xf32>, vector<32x128xf32> -> vector<32x128xf32>
    %484 = vector.extract_strided_slice %483 {offsets = [0, 0], sizes = [32, 1], strides = [1, 1]} : vector<32x128xf32> to vector<32x1xf32>
    %485 = arith.mulf %478, %478 : vector<32x128xf32>
    %cst_231 = arith.constant dense<0.000000e+00> : vector<32x128xf32>
    %486 = tpu.matmul %485, %0, %cst_231 {dimension_numbers = #tpu.dot_dimension_numbers<[1], [0], [0], [1], [0, 0, 1, 1], [], []>} : vector<32x128xf32>, vector<128x128xf32>, vector<32x128xf32> -> vector<32x128xf32>
    %487 = vector.extract_strided_slice %486 {offsets = [0, 0], sizes = [32, 1], strides = [1, 1]} : vector<32x128xf32> to vector<32x1xf32>
    %488 = vector.shape_cast %484 : vector<32x1xf32> to vector<1x32x1xf32>
    %cst_232 = arith.constant dense<0.000000e+00> : vector<1xf32>
    %489 = vector.multi_reduction <add>, %488, %cst_232 [1, 2] : vector<1x32x1xf32> to vector<1xf32>
    %490 = vector.shape_cast %489 : vector<1xf32> to vector<1x1x1xf32>
    %491 = vector.extract %490[0, 0, 0] : f32 from vector<1x1x1xf32>
    %492 = vector.broadcast %491 : f32 to vector<1x1xf32>
    %493 = vector.shape_cast %487 : vector<32x1xf32> to vector<1x32x1xf32>
    %cst_233 = arith.constant dense<0.000000e+00> : vector<1xf32>
    %494 = vector.multi_reduction <add>, %493, %cst_233 [1, 2] : vector<1x32x1xf32> to vector<1xf32>
    %495 = vector.shape_cast %494 : vector<1xf32> to vector<1x1x1xf32>
    %496 = vector.extract %495[0, 0, 0] : f32 from vector<1x1x1xf32>
    %497 = vector.broadcast %496 : f32 to vector<1x1xf32>
    %cst_234 = arith.constant 2.44140625E-4 : f32
    %498 = vector.broadcast %cst_234 : f32 to vector<1x1xf32>
    %499 = arith.mulf %492, %498 : vector<1x1xf32>
    %cst_235 = arith.constant 2.44140625E-4 : f32
    %500 = vector.broadcast %cst_235 : f32 to vector<1x1xf32>
    %501 = arith.mulf %497, %500 : vector<1x1xf32>
    %502 = arith.mulf %499, %499 : vector<1x1xf32>
    %503 = arith.subf %501, %502 : vector<1x1xf32>
    %cst_236 = arith.constant 0.000000e+00 : f32
    %504 = vector.broadcast %cst_236 : f32 to vector<1x1xf32>
    %505 = arith.maximumf %503, %504 : vector<1x1xf32>
    %cst_237 = arith.constant 9.99999993E-9 : f32
    %506 = vector.broadcast %cst_237 : f32 to vector<1x1xf32>
    %507 = arith.addf %505, %506 : vector<1x1xf32>
    %508 = math.rsqrt %507 : vector<1x1xf32>
    %509 = vector.broadcast %508 : vector<1x1xf32> to vector<32x1xf32>
    %510 = arith.mulf %480, %509 : vector<32x1xf32>
    %511 = vector.broadcast %499 : vector<1x1xf32> to vector<32x1xf32>
    %512 = arith.mulf %511, %510 : vector<32x1xf32>
    %513 = arith.subf %482, %512 : vector<32x1xf32>
    %514 = vector.broadcast %510 : vector<32x1xf32> to vector<32x128xf32>
    %515 = arith.mulf %478, %514 : vector<32x128xf32>
    %516 = vector.broadcast %513 : vector<32x1xf32> to vector<32x128xf32>
    %517 = arith.addf %515, %516 : vector<32x128xf32>
    %cst_238 = arith.constant dense<0.000000e+00> : vector<32x128xf32>
    %518 = tpu.matmul %517, %17, %cst_238 {dimension_numbers = #tpu.dot_dimension_numbers<[1], [0], [0], [1], [0, 0, 1, 1], [], []>} : vector<32x128xf32>, vector<128x128xf32>, vector<32x128xf32> -> vector<32x128xf32>
    %cst_239 = arith.constant dense<0.000000e+00> : vector<32x128xf32>
    %519 = tpu.matmul %517, %22, %cst_239 {dimension_numbers = #tpu.dot_dimension_numbers<[1], [0], [0], [1], [0, 0, 1, 1], [], []>} : vector<32x128xf32>, vector<128x128xf32>, vector<32x128xf32> -> vector<32x128xf32>
    %c3_240 = arith.constant 3 : index
    %c0_241 = arith.constant 0 : index
    %c0_242 = arith.constant 0 : index
    %c0_243 = arith.constant 0 : index
    %520 = vector.load %arg11[%c3_240, %c0_241, %c0_242, %c0_243] : memref<4x3x32x1xf32, #tpu.memory_space<vmem>>, vector<1x1x32x1xf32>
    %521 = vector.shape_cast %520 : vector<1x1x32x1xf32> to vector<32x1xf32>
    %522 = vector.broadcast %521 : vector<32x1xf32> to vector<32x128xf32>
    %523 = arith.mulf %522, %518 : vector<32x128xf32>
    %c3_244 = arith.constant 3 : index
    %c1_245 = arith.constant 1 : index
    %c0_246 = arith.constant 0 : index
    %c0_247 = arith.constant 0 : index
    %524 = vector.load %arg11[%c3_244, %c1_245, %c0_246, %c0_247] : memref<4x3x32x1xf32, #tpu.memory_space<vmem>>, vector<1x1x32x1xf32>
    %525 = vector.shape_cast %524 : vector<1x1x32x1xf32> to vector<32x1xf32>
    %526 = vector.broadcast %525 : vector<32x1xf32> to vector<32x128xf32>
    %527 = arith.mulf %526, %517 : vector<32x128xf32>
    %528 = arith.addf %523, %527 : vector<32x128xf32>
    %c3_248 = arith.constant 3 : index
    %c2_249 = arith.constant 2 : index
    %c0_250 = arith.constant 0 : index
    %c0_251 = arith.constant 0 : index
    %529 = vector.load %arg11[%c3_248, %c2_249, %c0_250, %c0_251] : memref<4x3x32x1xf32, #tpu.memory_space<vmem>>, vector<1x1x32x1xf32>
    %530 = vector.shape_cast %529 : vector<1x1x32x1xf32> to vector<32x1xf32>
    %531 = vector.broadcast %530 : vector<32x1xf32> to vector<32x128xf32>
    %532 = arith.mulf %531, %519 : vector<32x128xf32>
    %533 = arith.addf %528, %532 : vector<32x128xf32>
    %c3_252 = arith.constant 3 : index
    %c0_253 = arith.constant 0 : index
    %c0_254 = arith.constant 0 : index
    %534 = vector.load %arg12[%c3_252, %c0_253, %c0_254] : memref<4x32x1xf32, #tpu.memory_space<vmem>>, vector<1x32x1xf32>
    %535 = vector.shape_cast %534 : vector<1x32x1xf32> to vector<32x1xf32>
    %536 = vector.broadcast %535 : vector<32x1xf32> to vector<32x128xf32>
    %537 = arith.addf %533, %536 : vector<32x128xf32>
    %c3_255 = arith.constant 3 : index
    %538 = memref.load %arg13[%c3_255] : memref<4xf32, #tpu.memory_space<smem>>
    %cst_256 = arith.constant 0.000000e+00 : f32
    %539 = vector.broadcast %cst_256 : f32 to vector<32x128xf32>
    %540 = arith.maximumf %537, %539 : vector<32x128xf32>
    %cst_257 = arith.constant 0.000000e+00 : f32
    %541 = vector.broadcast %cst_257 : f32 to vector<32x128xf32>
    %542 = arith.minimumf %537, %541 : vector<32x128xf32>
    %543 = vector.broadcast %538 : f32 to vector<32x128xf32>
    %544 = arith.mulf %543, %542 : vector<32x128xf32>
    %545 = arith.addf %540, %544 : vector<32x128xf32>
    %c3_258 = arith.constant 3 : index
    %c0_259 = arith.constant 0 : index
    %c0_260 = arith.constant 0 : index
    %546 = vector.load %arg14[%c3_258, %c0_259, %c0_260] : memref<4x32x1xf32, #tpu.memory_space<vmem>>, vector<1x32x1xf32>
    %547 = vector.shape_cast %546 : vector<1x32x1xf32> to vector<32x1xf32>
    %c3_261 = arith.constant 3 : index
    %c0_262 = arith.constant 0 : index
    %c0_263 = arith.constant 0 : index
    %548 = vector.load %arg15[%c3_261, %c0_262, %c0_263] : memref<4x32x1xf32, #tpu.memory_space<vmem>>, vector<1x32x1xf32>
    %549 = vector.shape_cast %548 : vector<1x32x1xf32> to vector<32x1xf32>
    %cst_264 = arith.constant dense<0.000000e+00> : vector<32x128xf32>
    %550 = tpu.matmul %545, %0, %cst_264 {dimension_numbers = #tpu.dot_dimension_numbers<[1], [0], [0], [1], [0, 0, 1, 1], [], []>} : vector<32x128xf32>, vector<128x128xf32>, vector<32x128xf32> -> vector<32x128xf32>
    %551 = vector.extract_strided_slice %550 {offsets = [0, 0], sizes = [32, 1], strides = [1, 1]} : vector<32x128xf32> to vector<32x1xf32>
    %552 = arith.mulf %545, %545 : vector<32x128xf32>
    %cst_265 = arith.constant dense<0.000000e+00> : vector<32x128xf32>
    %553 = tpu.matmul %552, %0, %cst_265 {dimension_numbers = #tpu.dot_dimension_numbers<[1], [0], [0], [1], [0, 0, 1, 1], [], []>} : vector<32x128xf32>, vector<128x128xf32>, vector<32x128xf32> -> vector<32x128xf32>
    %554 = vector.extract_strided_slice %553 {offsets = [0, 0], sizes = [32, 1], strides = [1, 1]} : vector<32x128xf32> to vector<32x1xf32>
    %555 = vector.shape_cast %551 : vector<32x1xf32> to vector<1x32x1xf32>
    %cst_266 = arith.constant dense<0.000000e+00> : vector<1xf32>
    %556 = vector.multi_reduction <add>, %555, %cst_266 [1, 2] : vector<1x32x1xf32> to vector<1xf32>
    %557 = vector.shape_cast %556 : vector<1xf32> to vector<1x1x1xf32>
    %558 = vector.extract %557[0, 0, 0] : f32 from vector<1x1x1xf32>
    %559 = vector.broadcast %558 : f32 to vector<1x1xf32>
    %560 = vector.shape_cast %554 : vector<32x1xf32> to vector<1x32x1xf32>
    %cst_267 = arith.constant dense<0.000000e+00> : vector<1xf32>
    %561 = vector.multi_reduction <add>, %560, %cst_267 [1, 2] : vector<1x32x1xf32> to vector<1xf32>
    %562 = vector.shape_cast %561 : vector<1xf32> to vector<1x1x1xf32>
    %563 = vector.extract %562[0, 0, 0] : f32 from vector<1x1x1xf32>
    %564 = vector.broadcast %563 : f32 to vector<1x1xf32>
    %cst_268 = arith.constant 2.44140625E-4 : f32
    %565 = vector.broadcast %cst_268 : f32 to vector<1x1xf32>
    %566 = arith.mulf %559, %565 : vector<1x1xf32>
    %cst_269 = arith.constant 2.44140625E-4 : f32
    %567 = vector.broadcast %cst_269 : f32 to vector<1x1xf32>
    %568 = arith.mulf %564, %567 : vector<1x1xf32>
    %569 = arith.mulf %566, %566 : vector<1x1xf32>
    %570 = arith.subf %568, %569 : vector<1x1xf32>
    %cst_270 = arith.constant 0.000000e+00 : f32
    %571 = vector.broadcast %cst_270 : f32 to vector<1x1xf32>
    %572 = arith.maximumf %570, %571 : vector<1x1xf32>
    %cst_271 = arith.constant 9.99999993E-9 : f32
    %573 = vector.broadcast %cst_271 : f32 to vector<1x1xf32>
    %574 = arith.addf %572, %573 : vector<1x1xf32>
    %575 = math.rsqrt %574 : vector<1x1xf32>
    %576 = vector.broadcast %575 : vector<1x1xf32> to vector<32x1xf32>
    %577 = arith.mulf %547, %576 : vector<32x1xf32>
    %578 = vector.broadcast %566 : vector<1x1xf32> to vector<32x1xf32>
    %579 = arith.mulf %578, %577 : vector<32x1xf32>
    %580 = arith.subf %549, %579 : vector<32x1xf32>
    %581 = vector.broadcast %577 : vector<32x1xf32> to vector<32x128xf32>
    %582 = arith.mulf %545, %581 : vector<32x128xf32>
    %583 = vector.broadcast %580 : vector<32x1xf32> to vector<32x128xf32>
    %584 = arith.addf %582, %583 : vector<32x128xf32>
    %c3_272 = arith.constant 3 : index
    %c0_273 = arith.constant 0 : index
    %c0_274 = arith.constant 0 : index
    %585 = vector.load %arg16[%c3_272, %c0_273, %c0_274] : memref<4x32x32xf32, #tpu.memory_space<vmem>>, vector<1x32x32xf32>
    %586 = vector.shape_cast %585 : vector<1x32x32xf32> to vector<32x32xf32>
    %c3_275 = arith.constant 3 : index
    %c0_276 = arith.constant 0 : index
    %c0_277 = arith.constant 0 : index
    %587 = vector.load %arg17[%c3_275, %c0_276, %c0_277] : memref<4x32x1xf32, #tpu.memory_space<vmem>>, vector<1x32x1xf32>
    %588 = vector.shape_cast %587 : vector<1x32x1xf32> to vector<32x1xf32>
    %cst_278 = arith.constant dense<0.000000e+00> : vector<32x128xf32>
    %589 = tpu.matmul %586, %584, %cst_278 {dimension_numbers = #tpu.dot_dimension_numbers<[1], [0], [0], [1], [0, 0, 1, 1], [], []>} : vector<32x32xf32>, vector<32x128xf32>, vector<32x128xf32> -> vector<32x128xf32>
    %590 = vector.broadcast %588 : vector<32x1xf32> to vector<32x128xf32>
    %591 = arith.addf %589, %590 : vector<32x128xf32>
    %592 = vector.extract_strided_slice %591 {offsets = [16, 0], sizes = [16, 128], strides = [1, 1]} : vector<32x128xf32> to vector<16x128xf32>
    %593 = arith.addf %463, %592 : vector<16x128xf32>
    %c0_279 = arith.constant 0 : index
    %594 = memref.load %arg18[%c0_279] : memref<1xf32, #tpu.memory_space<smem>>
    %cst_280 = arith.constant 0.000000e+00 : f32
    %595 = vector.broadcast %cst_280 : f32 to vector<16x128xf32>
    %596 = arith.maximumf %593, %595 : vector<16x128xf32>
    %cst_281 = arith.constant 0.000000e+00 : f32
    %597 = vector.broadcast %cst_281 : f32 to vector<16x128xf32>
    %598 = arith.minimumf %593, %597 : vector<16x128xf32>
    %599 = vector.broadcast %594 : f32 to vector<16x128xf32>
    %600 = arith.mulf %599, %598 : vector<16x128xf32>
    %601 = arith.addf %596, %600 : vector<16x128xf32>
    %c0_282 = arith.constant 0 : index
    %c0_283 = arith.constant 0 : index
    %602 = vector.load %arg19[%c0_282, %c0_283] : memref<8x16xf32, #tpu.memory_space<vmem>>, vector<8x16xf32>
    %c0_284 = arith.constant 0 : index
    %c0_285 = arith.constant 0 : index
    %603 = vector.load %arg20[%c0_284, %c0_285] : memref<8x1xf32, #tpu.memory_space<vmem>>, vector<8x1xf32>
    %cst_286 = arith.constant dense<0.000000e+00> : vector<8x128xf32>
    %604 = tpu.matmul %602, %601, %cst_286 {dimension_numbers = #tpu.dot_dimension_numbers<[1], [0], [0], [1], [0, 0, 1, 1], [], []>} : vector<8x16xf32>, vector<16x128xf32>, vector<8x128xf32> -> vector<8x128xf32>
    %605 = vector.broadcast %603 : vector<8x1xf32> to vector<8x128xf32>
    %606 = arith.addf %604, %605 : vector<8x128xf32>
    %c0_287 = arith.constant 0 : index
    %c0_288 = arith.constant 0 : index
    %c0_289 = arith.constant 0 : index
    %607 = vector.load %arg21[%c0_287, %c0_288, %c0_289] : memref<1x8x128xf32, #tpu.memory_space<vmem>>, vector<1x8x128xf32>
    %608 = vector.shape_cast %607 : vector<1x8x128xf32> to vector<8x128xf32>
    %609 = vector.shape_cast %606 : vector<8x128xf32> to vector<1x8x128xf32>
    tpu.vector_store %arg21[%c0_287, %c0_288, %c0_289], %609 {strides = array<i32>} : memref<1x8x128xf32, #tpu.memory_space<vmem>>, vector<1x8x128xf32>,
    return
  }
  func.func @transform_0(%arg0: i32) -> (i32, i32, i32) {
    %c0_i32 = arith.constant 0 : i32
    %c0_i32_0 = arith.constant 0 : i32
    %c0_i32_1 = arith.constant 0 : i32
    return %arg0, %c0_i32, %c0_i32_0 : i32, i32, i32
  }
  func.func @transform_1(%arg0: i32) -> (i32, i32) {
    %c0_i32 = arith.constant 0 : i32
    %c0_i32_0 = arith.constant 0 : i32
    %c0_i32_1 = arith.constant 0 : i32
    return %c0_i32, %c0_i32_0 : i32, i32
  }
  func.func @transform_2(%arg0: i32) -> (i32, i32) {
    %c0_i32 = arith.constant 0 : i32
    %c0_i32_0 = arith.constant 0 : i32
    %c0_i32_1 = arith.constant 0 : i32
    return %c0_i32, %c0_i32_0 : i32, i32
  }
  func.func @transform_3(%arg0: i32) -> (i32, i32) {
    %c0_i32 = arith.constant 0 : i32
    %c0_i32_0 = arith.constant 0 : i32
    %c0_i32_1 = arith.constant 0 : i32
    return %c0_i32, %c0_i32_0 : i32, i32
  }
  func.func @transform_4(%arg0: i32) -> (i32, i32) {
    %c0_i32 = arith.constant 0 : i32
    %c0_i32_0 = arith.constant 0 : i32
    %c0_i32_1 = arith.constant 0 : i32
    return %c0_i32, %c0_i32_0 : i32, i32
  }
  func.func @transform_5(%arg0: i32) -> (i32, i32, i32) {
    %c0_i32 = arith.constant 0 : i32
    %c0_i32_0 = arith.constant 0 : i32
    %c0_i32_1 = arith.constant 0 : i32
    %c0_i32_2 = arith.constant 0 : i32
    return %c0_i32, %c0_i32_0, %c0_i32_1 : i32, i32, i32
  }
  func.func @transform_6(%arg0: i32) -> (i32, i32, i32) {
    %c0_i32 = arith.constant 0 : i32
    %c0_i32_0 = arith.constant 0 : i32
    %c0_i32_1 = arith.constant 0 : i32
    %c0_i32_2 = arith.constant 0 : i32
    return %c0_i32, %c0_i32_0, %c0_i32_1 : i32, i32, i32
  }
  func.func @transform_7(%arg0: i32) -> i32 {
    %c0_i32 = arith.constant 0 : i32
    %c0_i32_0 = arith.constant 0 : i32
    return %c0_i32 : i32
  }
  func.func @transform_8(%arg0: i32) -> (i32, i32, i32) {
    %c0_i32 = arith.constant 0 : i32
    %c0_i32_0 = arith.constant 0 : i32
    %c0_i32_1 = arith.constant 0 : i32
    %c0_i32_2 = arith.constant 0 : i32
    return %c0_i32, %c0_i32_0, %c0_i32_1 : i32, i32, i32
  }
  func.func @transform_9(%arg0: i32) -> (i32, i32, i32) {
    %c0_i32 = arith.constant 0 : i32
    %c0_i32_0 = arith.constant 0 : i32
    %c0_i32_1 = arith.constant 0 : i32
    %c0_i32_2 = arith.constant 0 : i32
    return %c0_i32, %c0_i32_0, %c0_i32_1 : i32, i32, i32
  }
  func.func @transform_10(%arg0: i32) -> (i32, i32, i32, i32) {
    %c0_i32 = arith.constant 0 : i32
    %c0_i32_0 = arith.constant 0 : i32
    %c0_i32_1 = arith.constant 0 : i32
    %c0_i32_2 = arith.constant 0 : i32
    %c0_i32_3 = arith.constant 0 : i32
    return %c0_i32, %c0_i32_0, %c0_i32_1, %c0_i32_2 : i32, i32, i32, i32
  }
  func.func @transform_11(%arg0: i32) -> (i32, i32, i32) {
    %c0_i32 = arith.constant 0 : i32
    %c0_i32_0 = arith.constant 0 : i32
    %c0_i32_1 = arith.constant 0 : i32
    %c0_i32_2 = arith.constant 0 : i32
    return %c0_i32, %c0_i32_0, %c0_i32_1 : i32, i32, i32
  }
  func.func @transform_12(%arg0: i32) -> i32 {
    %c0_i32 = arith.constant 0 : i32
    %c0_i32_0 = arith.constant 0 : i32
    return %c0_i32 : i32
  }
  func.func @transform_13(%arg0: i32) -> (i32, i32, i32) {
    %c0_i32 = arith.constant 0 : i32
    %c0_i32_0 = arith.constant 0 : i32
    %c0_i32_1 = arith.constant 0 : i32
    %c0_i32_2 = arith.constant 0 : i32
    return %c0_i32, %c0_i32_0, %c0_i32_1 : i32, i32, i32
  }
  func.func @transform_14(%arg0: i32) -> (i32, i32, i32) {
    %c0_i32 = arith.constant 0 : i32
    %c0_i32_0 = arith.constant 0 : i32
    %c0_i32_1 = arith.constant 0 : i32
    %c0_i32_2 = arith.constant 0 : i32
    return %c0_i32, %c0_i32_0, %c0_i32_1 : i32, i32, i32
  }
  func.func @transform_15(%arg0: i32) -> (i32, i32, i32) {
    %c0_i32 = arith.constant 0 : i32
    %c0_i32_0 = arith.constant 0 : i32
    %c0_i32_1 = arith.constant 0 : i32
    %c0_i32_2 = arith.constant 0 : i32
    return %c0_i32, %c0_i32_0, %c0_i32_1 : i32, i32, i32
  }
  func.func @transform_16(%arg0: i32) -> (i32, i32, i32) {
    %c0_i32 = arith.constant 0 : i32
    %c0_i32_0 = arith.constant 0 : i32
    %c0_i32_1 = arith.constant 0 : i32
    %c0_i32_2 = arith.constant 0 : i32
    return %c0_i32, %c0_i32_0, %c0_i32_1 : i32, i32, i32
  }
  func.func @transform_17(%arg0: i32) -> i32 {
    %c0_i32 = arith.constant 0 : i32
    %c0_i32_0 = arith.constant 0 : i32
    return %c0_i32 : i32
  }
  func.func @transform_18(%arg0: i32) -> (i32, i32) {
    %c0_i32 = arith.constant 0 : i32
    %c0_i32_0 = arith.constant 0 : i32
    %c0_i32_1 = arith.constant 0 : i32
    return %c0_i32, %c0_i32_0 : i32, i32
  }
  func.func @transform_19(%arg0: i32) -> (i32, i32) {
    %c0_i32 = arith.constant 0 : i32
    %c0_i32_0 = arith.constant 0 : i32
    %c0_i32_1 = arith.constant 0 : i32
    return %c0_i32, %c0_i32_0 : i32, i32
  }
  func.func @transform_20(%arg0: i32) -> (i32, i32, i32) {
    %c0_i32 = arith.constant 0 : i32
    %c0_i32_0 = arith.constant 0 : i32
    %c0_i32_1 = arith.constant 0 : i32
    return %arg0, %c0_i32, %c0_i32_0 : i32, i32, i32
  }
}

</mosaic_0001>

<bundles_post_ra>
// kernel: tpu_custom_call.1
= control target key start
LH: loop header
LB: loop body
LE: loop exit
PB: predicated region body
PF: predicated region fallthrough
CT: control target
= control target key end

     0   :  { %s11123_s0 = inlined_call_operand.vmem [shape: f32[2,16,128], index: 0, kind: input, shape index: {}]   ;;  %s11124_s1 = inlined_call_operand.vmem [shape: f32[16,1], index: 1, kind: input, shape index: {}]   ;;  %s11125_s2 = inlined_call_operand.vmem [shape: f32[16,1], index: 2, kind: input, shape index: {}]   ;;  %s11126_s3 = inlined_call_operand.vmem [shape: f32[16,16], index: 3, kind: input, shape index: {}]   ;;  %s11127_s4 = inlined_call_operand.vmem [shape: f32[16,1], index: 4, kind: input, shape index: {}]   ;;  %s11128_s5 = inlined_call_operand.vmem [shape: f32[4,32,16], index: 5, kind: input, shape index: {}]   ;;  %s11129_s6 = inlined_call_operand.vmem [shape: f32[4,32,1], index: 6, kind: input, shape index: {}]   ;;  %s11130_s7 = inlined_call_operand.vmem [shape: f32[4], index: 7, kind: input, shape index: {}]   ;;  %s11131_s8 = inlined_call_operand.vmem [shape: f32[4,32,1], index: 8, kind: input, shape index: {}]   ;;  %s11132_s9 = inlined_call_operand.vmem [shape: f32[4,32,1], index: 9, kind: input, shape index: {}]   ;;  %s11133_s10 = inlined_call_operand.vmem [shape: f32[4,3,32,1], index: 10, kind: input, shape index: {}]   ;;  %s11134_s11 = inlined_call_operand.vmem [shape: f32[4,32,1], index: 11, kind: input, shape index: {}]   ;;  %s11135_s12 = inlined_call_operand.vmem [shape: f32[4], index: 12, kind: input, shape index: {}]   ;;  %s11136_s13 = inlined_call_operand.vmem [shape: f32[4,32,1], index: 13, kind: input, shape index: {}]   ;;  %s11137_s14 = inlined_call_operand.vmem [shape: f32[4,32,1], index: 14, kind: input, shape index: {}]   ;;  %s11138_s15 = inlined_call_operand.vmem [shape: f32[4,32,32], index: 15, kind: input, shape index: {}]   ;;  %s11139_s16 = inlined_call_operand.vmem [shape: f32[4,32,1], index: 16, kind: input, shape index: {}]   ;;  %s11140_s17 = inlined_call_operand.<no memory space> [shape: f32[1], index: 17, kind: input, shape index: {}]   ;;  %s11141_s18 = inlined_call_operand.vmem [shape: f32[8,16], index: 18, kind: input, shape index: {}]   ;;  %s11142_s19 = inlined_call_operand.vmem [shape: f32[8,1], index: 19, kind: input, shape index: {}]   ;;  %s11143_s20 = inlined_call_operand.hbm [shape: f32[2,8,128], index: 20, kind: output, shape index: {}]  }
   0x1   :  { %11241 = sst [smem:[#allocation27_spill]] %s11123_s0 }
   0x2   :  { %11242 = sst [smem:[#allocation28_spill]] %s11124_s1 }
   0x3   :  { %11243 = sst [smem:[#allocation29_spill]] %s11125_s2 }
   0x4   :  { %11244 = sst [smem:[#allocation30_spill]] %s11126_s3 }
   0x5   :  { %11245 = sst [smem:[#allocation31_spill]] %s11127_s4 }
   0x6   :  { %11246 = sst [smem:[#allocation32_spill]] %s11130_s7 }
   0x7   :  { %11247 = sst [smem:[#allocation33_spill]] %s11135_s12 }
   0x8   :  { %25 = sst [smem:[#allocation2]] %s11140_s17 }
   0x9   :  { %26 = vsyncpa [#allocation5], 0 }
   0xa   :  { %27 = vsyncpa [#allocation7], 0 }
   0xb   :  { %28 = vsyncpa [#allocation4], 0 }
   0xc   :  { %30 = vsyncpa [#allocation4 + $0x1], 0  ;;  %s8427_s23 = smov 0   ;;  %s8429_s24 = smov 0  }
   0xd   :  { %s8431_s2 = smov 0   ;;  %s8433_s25 = smov 0  }
   0xe LB: > { %11248 = sst [smem:[#allocation12_spill]] %s8306_s2  ;;  %s8448_s17 = sadd.s32 4294967295, %s8310_s25   ;;  %s8310_s25 = sphi %s8433_s25, %s11411_s25   ;;  %s8306_s2 = sphi %s8431_s2, %s11413_s2   ;;  %s8302_s24 = sphi %s8429_s24, %s11415_s24   ;;  %s8298_s23 = sphi %s8427_s23, %s11414_s23  }
   0xf   : > { %s6020_s3 = sadd.s32 4294967294, %s8310_s25   ;;  %s8452_s26 = sadd.s32 1, %s8310_s25  }
  0x10   : > { %11249 = sst [smem:[#allocation13_spill]] %s8452_s26  ;;  %s468_s27 = sadd.s32 1, %s8306_s2 }
  0x11   : > { %s465_s28 = ssub.s32 %s8310_s25, %s8452_s26  ;;  %p478_p0 = scmp.ne.s32.totalorder %s8306_s2, %s8302_s24 }
  0x12   : > { %p466_p1 = scmp.eq.s32.totalorder %s465_s28, 0  ;;  %p479_p2 = scmp.eq.s32.totalorder %s8448_s17, 1 }
  0x13   : > { %p484_p3 = scmp.ne.s32.totalorder %s8302_s24, %s8298_s23  ;;  %p485_p4 = scmp.eq.s32.totalorder %s6020_s3, 1 }
  0x14   : > { %s8463_s4 = scalar_select %p466_p1, %s8306_s2, %s468_s27  }
  0x15   : > { %p8465_p5 = por %p479_p2, %p478_p0  ;;  %p8469_p6 = por %p485_p4, %p484_p3 }
  0x16   : > { %11250 = sst [smem:[#allocation14_spill]] %s8463_s4  ;;  %p6021_p7 = scmp.ge.s32.totalorder %s8310_s25, 1 }
  0x17   : > { %s11251_s29 = scalar_select %p8465_p5, 1, 0 }
  0x18   : > { %s11252_s30 = scalar_select %p8469_p6, 1, 0 }
  0x19   : > { %p492_p8 = scmp.lt.s32.totalorder %s8310_s25, 3  ;;  %p11149_p9 = scmp.eq.s32.totalorder %s8448_s17, 0 }
  0x1a   : > { %s11254_s7 = sld [smem:[#allocation32_spill]] }
  0x1b   : > { %p8476_p10 = pnand %p6021_p7, %p492_p8  ;;  %s11255_s12 = sld [smem:[#allocation33_spill]] }
  0x1d   : > { %s11253_s0 = scalar_select %p8476_p10, 1, 0 }
  0x1e   : > { %p8138_p11 = pneg %p8476_p10 }
  0x20   : > { %s523_s22 = sshll.u32 %s11254_s7, 4  ;;  %p8490_p12 = pnand %p11149_p9, %p8138_p11  ;;  %s524_s22 = int_to_ptr.vmem [resolvable:$true] %s523_s22 }
  0x21   : > { %s546_s28 = sshll.u32 %s11255_s12, 4  ;;  %s8212_s2 = scalar_lea.vmem %s524_s22, 16  ;;  %s547_s28 = int_to_ptr.vmem [resolvable:$true] %s546_s28 }
  0x22   : > { %p8213_p13 = scmp.ne.s32.totalorder %s524_s22, %s8212_s2  ;;  %p8214_p0 = pneg %p8490_p12 }
  0x23   : > { %p8220_p3 = scmp.lt.s32.totalorder %s524_s22, %s524_s22  ;;  %p8221_p4 = scmp.lt.s32.totalorder %s8212_s2, %s8212_s2 }
  0x24   : > { %p8215_p1 = pnand %p8214_p0, %p8213_p13 }
  0x25   : > { %p8222_p7 = por %p8221_p4, %p8220_p3 }
  0x26   : > { %p8216_p2 = pneg %p8215_p1 }
  0x28   : > { %p8223_p8 = pnand %p8222_p7, %p8216_p2 }
  0x2a   : > { %8226 = shalt.err (!%p8223_p8)
}
  0x2b   : > { %s8312_s21 = smov [#allocation3]   ;;  %s8227_s1 = scalar_lea.vmem %s547_s28, 16 }
  0x2c   : > { %8141 = dma.vmem_to_smem (!%p8490_p12), %s524_s22, 16, %s8312_s21, [#allocation5]  }
  0x2d   : > { %p8228_p11 = scmp.ne.s32.totalorder %s547_s28, %s8227_s1  ;;  %p8235_p5 = scmp.lt.s32.totalorder %s547_s28, %s547_s28 }
  0x2e   : > { %p8236_p10 = scmp.lt.s32.totalorder %s8227_s1, %s8227_s1 }
  0x2f   : > { %p8230_p9 = pnand %p8228_p11, %p8214_p0 }
  0x30   : > { %p8237_p13 = por %p8236_p10, %p8235_p5 }
  0x31   : > { %p8231_p6 = pneg %p8230_p9 }
  0x33   : > { %p8238_p1 = pnand %p8237_p13, %p8231_p6 }
  0x35   : > { %8241 = shalt.err (!%p8238_p1)
}
  0x36   : > { %s8313_s3 = smov [#allocation6]   ;;  %p11257_p2 = scmp.ne.s32.totalorder %s11253_s0, 0 }
  0x37   : > { %8144 = dma.vmem_to_smem (!%p8490_p12), %s547_s28, 16, %s8313_s3, [#allocation7]  }
  0x38   : > { %588 = sbr.rel (%p11257_p2) target bundleno = 8107 (0x1fab), region = 100 }
  0x3d   : > { %p11258_p3 = scmp.eq.s32.totalorder %s8448_s17, 0 }
  0x3f   : > { %8285 = dma.done.wait (%p11258_p3), [#allocation5], 16   ;;  %p11259_p4 = pmov %p11258_p3 }
  0x40   : > { %p11260_p9 = pmov %p11258_p3 }
  0x41   : > { %8287 = vsyncadd (%p11259_p4), [#allocation5], 4294967280 }
  0x42   : > { %8289 = dma.done.wait (%p11260_p9), [#allocation7], 16   ;;  %p11261_p5 = pmov %p11258_p3 }
  0x44   : > { %8291 = vsyncadd (%p11261_p5), [#allocation7], 4294967280 }
  0x45   : > { %598 = sfence }
  0x46   : > { %v11174_v0 = vmov 1.0   ;;  %p651_p6 = scmp.lt.s32.totalorder %s8448_s17, 1  ;;  %s11262_s27 = sld [smem:[#allocation27_spill]]  ;;  %vm1057_vm0 = vcmask 7168   ;;  %v8315_v15 = vmov 0   ;;  %vm1135_vm1 = vcmask 130048  }
  0x47   : > { %7000 = vmatprep.subr.mxu0 %v11174_v0  ;;  %7035 = vmatprep.subr.mxu1 %v11174_v0  ;;  %s11265_s0 = sld [smem:[#allocation30_spill]]  ;;  %v1221_v52 = vld [vmem:[%s11129_s6] sm:$0xff]  ;;  %v1222_v53 = vld [vmem:[%s11129_s6 + $0x8] sm:$0xff]  ;;  %v1223_v54 = vld [vmem:[%s11129_s6 + $0x10] sm:$0xff]  ;;  %p11409_p12 = scmp.ne.s32.totalorder %s11251_s29, 0 }
  0x48   : > { %7001 = vmatpush3.msra.mxu0 %v11174_v0  ;;  %7036 = vmatpush3.msra.mxu1 %v11174_v0  ;;  %s652_s2 = scalar_select %p651_p6, %s8448_s17, 1  ;;  %v1224_v55 = vld [vmem:[%s11129_s6 + $0x18] sm:$0xff] }
  0x49   : > { %7002 = vmatprep.subr.mxu0 %v11174_v0  ;;  %7037 = vmatprep.subr.mxu1 %v11174_v0  ;;  %s1342_s12 = sld [smem:[#allocation3]] }
  0x4a   : > { %7003 = vmatpush3.msra.mxu0 %v11174_v0  ;;  %7038 = vmatpush3.msra.mxu1 %v11174_v0  ;;  %s6420_s4 = sshll.u32 %s652_s2, 4  ;;  %s6157_s22 = sld [smem:[#allocation3 + $0x1]] }
  0x4b   : > { %7004 = vmatprep.subr.mxu0 %v11174_v0  ;;  %7039 = vmatprep.subr.mxu1 %v11174_v0  ;;  %s6247_s3 = sld [smem:[#allocation3 + $0x2]] }
  0x4c   : > { %7005 = vmatpush3.msra.mxu0 %v11174_v0  ;;  %7040 = vmatpush3.msra.mxu1 %v11174_v0  ;;  %s655_s28 = scalar_lea.vmem %s11262_s27, %s6420_s4  ;;  %s11263_s4 = sld [smem:[#allocation28_spill]] }
  0x4d   : > { %7006 = vmatprep.subr.mxu0 %v11174_v0  ;;  %7041 = vmatprep.subr.mxu1 %v11174_v0  ;;  %v8569_v1 = vld [vmem:[%s655_s28] sm:$0xff]  ;;  %v8573_v2 = vld [vmem:[%s655_s28 + $0x8] sm:$0xff]  ;;  %s11266_s28 = sld [smem:[#allocation31_spill]] }
  0x4e   : > { %7007 = vmatpush3.msra.mxu0 %v11174_v0  ;;  %7042 = vmatpush3.msra.mxu1 %v11174_v0  ;;  %v980_v3 = vmul.f32 %v8569_v1, %v8569_v1  ;;  %v981_v4 = vmul.f32 %v8573_v2, %v8573_v2  ;;  %v1121_v49 = vld [vmem:[%s11265_s0] sm:$0xff]  ;;  %s6337_s7 = sld [smem:[#allocation3 + $0x3]] }
  0x4f   : > { %7008 = vmatprep.subr.mxu0 %v11174_v0  ;;  %7043 = vmatprep.subr.mxu1 %v11174_v0 }
  0x50   : > { %7009 = vmatpush3.msra.mxu0 %v11174_v0  ;;  %7044 = vmatpush3.msra.mxu1 %v11174_v0 }
  0x51   : > { %7010 = vmatprep.subr.mxu0 %v11174_v0  ;;  %7045 = vmatprep.subr.mxu1 %v11174_v0 }
  0x52   : > { %7011 = vmatpush3.msra.mxu0 %v11174_v0  ;;  %7046 = vmatpush3.msra.mxu1 %v11174_v0  ;;  %v902_v38 = vld [vmem:[%s11263_s4 + $0x8] sm:$0xff]  ;;  %v901_v39 = vld [vmem:[%s11263_s4] sm:$0xff] }
  0x53   : > { %7012 = vmatprep.subr.mxu0 %v11174_v0  ;;  %7047 = vmatprep.subr.mxu1 %v11174_v0  ;;  %v1124_v50 = vld [vmem:[%s11266_s28 + $0x8] sm:$0xff]  ;;  %v1123_v51 = vld [vmem:[%s11266_s28] sm:$0xff] }
  0x54   : > { %7013 = vmatpush3.msra.mxu0 %v11174_v0  ;;  %7048 = vmatpush3.msra.mxu1 %v11174_v0 }
  0x55   : > { %7014 = vmatprep.subr.mxu0 %v11174_v0  ;;  %7049 = vmatprep.subr.mxu1 %v11174_v0 }
  0x56   : > { %7015 = vmatpush3.msra.mxu0 %v11174_v0  ;;  %7050 = vmatpush3.msra.mxu1 %v11174_v0 }
  0x57   : > { %7016 = vmatprep.subr.mxu0 %v11174_v0  ;;  %7051 = vmatprep.subr.mxu1 %v11174_v0 }
  0x58   : > { %7017 = vmatpush3.msra.mxu0 %v11174_v0  ;;  %7052 = vmatpush3.msra.mxu1 %v11174_v0 }
  0x59   : > { %7018 = vmatprep.subr.mxu0 %v11174_v0  ;;  %7053 = vmatprep.subr.mxu1 %v11174_v0 }
  0x5a   : > { %7019 = vmatpush3.msra.mxu0 %v11174_v0  ;;  %7054 = vmatpush3.msra.mxu1 %v11174_v0 }
  0x5b   : > { %7020 = vmatprep.subr.mxu0 %v11174_v0  ;;  %7055 = vmatprep.subr.mxu1 %v11174_v0 }
  0x5c   : > { %7021 = vmatpush3.msra.mxu0 %v11174_v0  ;;  %7056 = vmatpush3.msra.mxu1 %v11174_v0 }
  0x5d   : > { %7022 = vmatprep.subr.mxu0 %v11174_v0  ;;  %7057 = vmatprep.subr.mxu1 %v11174_v0 }
  0x5e   : > { %7023 = vmatpush3.msra.mxu0 %v11174_v0  ;;  %7058 = vmatpush3.msra.mxu1 %v11174_v0 }
  0x5f   : > { %7024 = vmatprep.subr.mxu0 %v11174_v0  ;;  %7059 = vmatprep.subr.mxu1 %v11174_v0 }
  0x60   : > { %7025 = vmatpush3.msra.mxu0 %v11174_v0  ;;  %7060 = vmatpush3.msra.mxu1 %v11174_v0 }
  0x61   : > { %7026 = vmatprep.subr.mxu0 %v11174_v0  ;;  %7061 = vmatprep.subr.mxu1 %v11174_v0 }
  0x62   : > { %7027 = vmatpush3.msra.mxu0 %v11174_v0  ;;  %7062 = vmatpush3.msra.mxu1 %v11174_v0 }
  0x63   : > { %7028 = vmatprep.subr.mxu0 %v11174_v0  ;;  %7063 = vmatprep.subr.mxu1 %v11174_v0 }
  0x64   : > { %7029 = vmatpush3.msra.mxu0 %v11174_v0  ;;  %7032 = vmatprep.mubr.f32.mxu0 %v8569_v1 }
  0x65   : > { %7030 = vmatprep.subr.mxu0 %v11174_v0  ;;  %7064 = vmatpush3.msra.mxu1 %v11174_v0 }
  0x66   : > { %7031 = vmatpush3.msra.mxu0 %v11174_v0  ;;  %7065 = vmatprep.subr.mxu1 %v11174_v0 }
  0x67   : > { %7033 = vmatmul.mubr.f32.vlgmr.msra.gmra.mxu0 %v8573_v2  ;;  %7066 = vmatpush3.msra.mxu1 %v11174_v0 }
  0x68   : > { %7067 = vmatprep.mubr.f32.mxu1 %v980_v3  ;;  %8192 = vset.pattern.permute.xlu1 %v8315_v15  ;;  %v1122_v3 = vld [vmem:[%s11265_s0 + $0x8] sm:$0xff] }
  0x69   : > { %7068 = vmatmul.mubr.f32.vlgmr.msra.gmra.mxu1 %v981_v4  ;;  %8193 = vset.pattern.permute.xlu0 %v8315_v15 }
  0x6a   : > { %7074 = vmatprep.mubr.msk.f32.mxu0 %vm1135_vm1, %v1121_v49 }
 0x127   : > { %v7034_v5 = vpop.f32.mrf.mxu0 }
 0x128   : > { %v1059_v8 = vsel %vm1057_vm0, %v7034_v5, 0.0 }
 0x129   : > { %v971_v6 = vpop.f32.mrf.mxu0  ;;  %v7069_v7 = vpop.f32.mrf.mxu1 }
 0x12a   : > { %v1058_v9 = vsel %vm1057_vm0, %v971_v6, 0.0  ;;  %v1072_v12 = vsel %vm1057_vm0, %v7069_v7, 0.0 }
 0x12b   : > { %v1048_v10 = vpop.f32.mrf.mxu1  ;;  %v1060_v11 = vadd.f32 %v1059_v8, %v1058_v9  ;;  %v1218_v9 = vld [vmem:[%s11128_s5 + $0x8] sm:$0xff] }
 0x12c   : > { %v1071_v13 = vsel %vm1057_vm0, %v1048_v10, 0.0  ;;  %v1219_v10 = vld [vmem:[%s11128_s5 + $0x10] sm:$0xff] }
 0x12d   : > { %1061 = vadd.xlane.f32.xlu0 %v1060_v11  ;;  %v1073_v14 = vadd.f32 %v1072_v12, %v1071_v13  ;;  %v1220_v11 = vld [vmem:[%s11128_s5 + $0x18] sm:$0xff] }
 0x131   : > { %1074 = vadd.xlane.f32.xlu0 %v1073_v14 }
 0x1b6   : > { %v1062_v16 = vpop.xlane.xlu0 %1061 }
 0x1b7   : > { %v1063_v17 = vrot.slane %v1062_v16, 4 }
 0x1b9   : > { %v1064_v18 = vadd.f32 %v1063_v17, %v1062_v16  ;;  %v1351_v17 = vstv %s1342_s12 }
 0x1ba   : > { %v1075_v19 = vpop.xlane.xlu0 %1074 }
 0x1bb   : > { %v1076_v20 = vrot.slane %v1075_v19, 4  ;;  %v1065_v21 = vrot.slane %v1064_v18, 2 }
 0x1bd   : > { %v1077_v22 = vadd.f32 %v1076_v20, %v1075_v19  ;;  %v1066_v23 = vadd.f32 %v1065_v21, %v1064_v18 }
 0x1bf   : > { %v1067_v24 = vrot.slane %v1066_v23, 1  ;;  %v1078_v25 = vrot.slane %v1077_v22, 2 }
 0x1c1   : > { %v1068_v26 = vadd.f32 %v1067_v24, %v1066_v23  ;;  %v1079_v27 = vadd.f32 %v1078_v25, %v1077_v22 }
 0x1c3   : > { %8092 = vpush %v1068_v26  ;;  %v1080_v28 = vrot.slane %v1079_v27, 1 }
 0x1c5   : > { %v1081_v29 = vadd.f32 %v1080_v28, %v1079_v27 }
 0x1c7   : > { %8094 = vpush %v1081_v29 }
 0x1f4   : > { %s8093_s21 = spop %8092 }
 0x1f5   : > { %v1070_v30 = vstv %s8093_s21  ;;  %s11264_s21 = sld [smem:[#allocation29_spill]] }
 0x1f6   : > { %v1084_v31 = vmul.f32 0.00048828125, %v1070_v30 }
 0x1f8   : > { %s8095_s1 = spop %8094  ;;  %v1086_v34 = vmul.f32 %v1084_v31, %v1084_v31 }
 0x1f9   : > { %v1083_v32 = vstv %s8095_s1 }
 0x1fa   : > { %v1085_v33 = vmul.f32 0.00048828125, %v1083_v32 }
 0x1fb   : > { %v904_v43 = vld [vmem:[%s11264_s21 + $0x8] sm:$0xff]  ;;  %v903_v47 = vld [vmem:[%s11264_s21] sm:$0xff] }
 0x1fc   : > { %v1087_v35 = vsub.f32 %v1085_v33, %v1086_v34 }
 0x1fe   : > { %v1088_v36 = vmax.f32 %v1087_v35, 0.0 }
 0x200   : > { %v1089_v37 = vadd.f32 1e-08, %v1088_v36 }
 0x202   : > { %8194 = vrsqrt.f32 %v1089_v37 }
 0x20f   : > { %v8195_v40 = vpop.eup %8194 }
 0x210   : > { %v1092_v41 = vmul.f32 %v8195_v40, %v902_v38  ;;  %v1091_v42 = vmul.f32 %v8195_v40, %v901_v39 }
 0x212   : > { %1104 = vperm.xlu1 %8192, %v1092_v41   ;;  %v1094_v44 = vmul.f32 %v1092_v41, %v1084_v31  ;;  %v1093_v46 = vmul.f32 %v1091_v42, %v1084_v31 }
 0x214   : > { %v1096_v45 = vsub.f32 %v904_v43, %v1094_v44  ;;  %v1095_v48 = vsub.f32 %v903_v47, %v1093_v46 }
 0x216   : > { %1116 = vperm.xlu0 %8193, %v1096_v45   ;;  %1099 = vperm.xlu1 %8192, %v1091_v42  }
 0x21a   : > { %1111 = vperm.xlu1 %8192, %v1095_v48  }
 0x21e   : > { %1132 = vperm.xlu1 %8192, %v1124_v50  }
 0x222   : > { %1127 = vperm.xlu1 %8192, %v1123_v51  }
 0x226   : > { %1227 = vperm.xlu1 %8192, %v1221_v52  }
 0x22a   : > { %1232 = vperm.xlu1 %8192, %v1222_v53  }
 0x22e   : > { %1237 = vperm.xlu1 %8192, %v1223_v54  }
 0x232   : > { %1242 = vperm.xlu1 %8192, %v1224_v55  }
 0x28d   : > { %v1105_v56 = vpop.permute.xlu1 %1104 }
 0x28e   : > { %v1108_v57 = vmul.f32 %v1105_v56, %v8573_v2 }
 0x291   : > { %v1117_v58 = vpop.permute.xlu0 %1116  ;;  %v1100_v59 = vpop.permute.xlu1 %1099 }
 0x292   : > { %v1120_v60 = vadd.f32 %v1117_v58, %v1108_v57  ;;  %v1107_v61 = vmul.f32 %v1100_v59, %v8569_v1  ;;  %v1217_v1 = vld [vmem:[%s11128_s5] sm:$0xff] }
 0x293   : > { %7081 = vmatprep.mubr.msk.f32.mxu1 %vm1135_vm1, %v1217_v1 }
 0x294   : > { %7070 = vmatprep.subr.mxu0 %v1120_v60 }
 0x295   : > { %7071 = vmatpush3.msra.mxu0 %v1120_v60  ;;  %v1112_v62 = vpop.permute.xlu1 %1111 }
 0x296   : > { %v1119_v63 = vadd.f32 %v1112_v62, %v1107_v61 }
 0x298   : > { %7072 = vmatprep.subr.mxu0 %v1119_v63 }
 0x299   : > { %7073 = vmatpush3.msra.mxu0 %v1119_v63  ;;  %v1133_v2 = vpop.permute.xlu1 %1132 }
 0x29a   : > { %7075 = vmatmul.mubr.msk.f32.vlgmr.msra.gmra.mxu0 %vm1135_vm1, %v1122_v3  ;;  %7087 = vmatprep.subr.mxu0 %v11174_v0 }
 0x29b   : > { %7088 = vmatpush3.msra.mxu0 %v11174_v0 }
 0x29c   : > { %7089 = vmatprep.subr.mxu0 %v11174_v0 }
 0x29d   : > { %7090 = vmatpush3.msra.mxu0 %v11174_v0  ;;  %v1128_v6 = vpop.permute.xlu1 %1127 }
 0x29e   : > { %7091 = vmatprep.subr.mxu0 %v11174_v0 }
 0x29f   : > { %7092 = vmatpush3.msra.mxu0 %v11174_v0 }
 0x2a0   : > { %7093 = vmatprep.subr.mxu0 %v11174_v0 }
 0x2a1   : > { %7094 = vmatpush3.msra.mxu0 %v11174_v0  ;;  %v1228_v12 = vpop.permute.xlu1 %1227 }
 0x2a2   : > { %7095 = vmatprep.subr.mxu0 %v11174_v0 }
 0x2a3   : > { %7096 = vmatpush3.msra.mxu0 %v11174_v0 }
 0x2a4   : > { %7097 = vmatprep.subr.mxu0 %v11174_v0 }
 0x2a5   : > { %7098 = vmatpush3.msra.mxu0 %v11174_v0  ;;  %v1233_v13 = vpop.permute.xlu1 %1232 }
 0x2a6   : > { %7099 = vmatprep.subr.mxu0 %v11174_v0 }
 0x2a7   : > { %7100 = vmatpush3.msra.mxu0 %v11174_v0 }
 0x2a8   : > { %7101 = vmatprep.subr.mxu0 %v11174_v0 }
 0x2a9   : > { %7102 = vmatpush3.msra.mxu0 %v11174_v0  ;;  %v1238_v14 = vpop.permute.xlu1 %1237 }
 0x2aa   : > { %7103 = vmatprep.subr.mxu0 %v11174_v0 }
 0x2ab   : > { %7104 = vmatpush3.msra.mxu0 %v11174_v0 }
 0x2ac   : > { %7105 = vmatprep.subr.mxu0 %v11174_v0 }
 0x2ad   : > { %7106 = vmatpush3.msra.mxu0 %v11174_v0  ;;  %v1243_v21 = vpop.permute.xlu1 %1242 }
 0x2ae   : > { %7107 = vmatprep.subr.mxu0 %v11174_v0 }
 0x2af   : > { %7108 = vmatpush3.msra.mxu0 %v11174_v0 }
 0x2b0   : > { %7109 = vmatprep.subr.mxu0 %v11174_v0 }
 0x2b1   : > { %7110 = vmatpush3.msra.mxu0 %v11174_v0 }
 0x2b2   : > { %7111 = vmatprep.subr.mxu0 %v11174_v0 }
 0x2b3   : > { %7112 = vmatpush3.msra.mxu0 %v11174_v0 }
 0x2b4   : > { %7113 = vmatprep.subr.mxu0 %v11174_v0 }
 0x2b5   : > { %7114 = vmatpush3.msra.mxu0 %v11174_v0 }
 0x2b6   : > { %7115 = vmatprep.subr.mxu0 %v11174_v0 }
 0x2b7   : > { %7116 = vmatpush3.msra.mxu0 %v11174_v0 }
 0x2b8   : > { %7117 = vmatprep.subr.mxu0 %v11174_v0 }
 0x2b9   : > { %7118 = vmatpush3.msra.mxu0 %v11174_v0 }
 0x35a   : > { %v7076_v4 = vpop.f32.mrf.mxu0 }
 0x35b   : > { %v8669_v5 = vadd.f32 %v7076_v4, %v1133_v2 }
 0x35c   : > { %v1208_v7 = vpop.f32.mrf.mxu0 }
 0x35d   : > { %v8671_v8 = vadd.f32 %v1208_v7, %v1128_v6  ;;  %7077 = vmatprep.subr.mxu1 %v8669_v5 }
 0x35e   : > { %7078 = vmatpush3.msra.mxu1 %v8669_v5 }
 0x35f   : > { %7079 = vmatprep.subr.mxu1 %v8671_v8 }
 0x360   : > { %7080 = vmatpush3.msra.mxu1 %v8671_v8 }
 0x361   : > { %7082 = vmatmul.mubr.msk.f32.vlgmr.msra.gmra.mxu1 %vm1135_vm1, %v1218_v9  ;;  %7125 = vmatprep.subr.mxu1 %v11174_v0 }
 0x362   : > { %7084 = vmatprep.mubr.msk.f32.mxu1 %vm1135_vm1, %v1219_v10  ;;  %7126 = vmatpush3.msra.mxu1 %v11174_v0 }
 0x363   : > { %7127 = vmatprep.subr.mxu1 %v11174_v0 }
 0x364   : > { %7128 = vmatpush3.msra.mxu1 %v11174_v0 }
 0x365   : > { %7085 = vmatmul.mubr.msk.f32.gmra.mxu1 %vm1135_vm1, %v1220_v11  ;;  %7129 = vmatprep.subr.mxu1 %v11174_v0 }
 0x366   : > { %7130 = vmatpush3.msra.mxu1 %v11174_v0 }
 0x367   : > { %7131 = vmatprep.subr.mxu1 %v11174_v0 }
 0x368   : > { %7132 = vmatpush3.msra.mxu1 %v11174_v0 }
 0x369   : > { %7133 = vmatprep.subr.mxu1 %v11174_v0 }
 0x36a   : > { %7134 = vmatpush3.msra.mxu1 %v11174_v0 }
 0x36b   : > { %7135 = vmatprep.subr.mxu1 %v11174_v0 }
 0x36c   : > { %7136 = vmatpush3.msra.mxu1 %v11174_v0 }
 0x36d   : > { %7137 = vmatprep.subr.mxu1 %v11174_v0 }
 0x36e   : > { %7138 = vmatpush3.msra.mxu1 %v11174_v0 }
 0x36f   : > { %7139 = vmatprep.subr.mxu1 %v11174_v0 }
 0x370   : > { %7140 = vmatpush3.msra.mxu1 %v11174_v0 }
 0x371   : > { %7141 = vmatprep.subr.mxu1 %v11174_v0 }
 0x372   : > { %7142 = vmatpush3.msra.mxu1 %v11174_v0 }
 0x373   : > { %7143 = vmatprep.subr.mxu1 %v11174_v0 }
 0x374   : > { %7144 = vmatpush3.msra.mxu1 %v11174_v0 }
 0x375   : > { %7145 = vmatprep.subr.mxu1 %v11174_v0 }
 0x376   : > { %7146 = vmatpush3.msra.mxu1 %v11174_v0 }
 0x377   : > { %7147 = vmatprep.subr.mxu1 %v11174_v0 }
 0x378   : > { %7148 = vmatpush3.msra.mxu1 %v11174_v0 }
 0x379   : > { %7149 = vmatprep.subr.mxu1 %v11174_v0 }
 0x37a   : > { %7150 = vmatpush3.msra.mxu1 %v11174_v0 }
 0x37b   : > { %7151 = vmatprep.subr.mxu1 %v11174_v0 }
 0x37c   : > { %7152 = vmatpush3.msra.mxu1 %v11174_v0 }
 0x37d   : > { %7153 = vmatprep.subr.mxu1 %v11174_v0 }
 0x37e   : > { %7154 = vmatpush3.msra.mxu1 %v11174_v0 }
 0x37f   : > { %7155 = vmatprep.subr.mxu1 %v11174_v0 }
 0x380   : > { %7156 = vmatpush3.msra.mxu1 %v11174_v0 }
 0x421   : > { %v7083_v15 = vpop.f32.mrf.mxu1 }
 0x422   : > { %v1329_v16 = vadd.f32 %v7083_v15, %v1233_v13 }
 0x423   : > { %v1323_v18 = vpop.f32.mrf.mxu1 }
 0x424   : > { %v1348_v19 = vmin.f32 %v1329_v16, 0.0  ;;  %v1324_v20 = vadd.f32 %v1323_v18, %v1228_v12  ;;  %v1344_v26 = vmax.f32 %v1329_v16, 0.0 }
 0x425   : > { %v7086_v22 = vpop.f32.mrf.mxu1 }
 0x426   : > { %v1353_v23 = vmul.f32 %v1351_v17, %v1348_v19  ;;  %v1347_v24 = vmin.f32 %v1324_v20, 0.0  ;;  %v1339_v25 = vadd.f32 %v7086_v22, %v1243_v21  ;;  %v1343_v28 = vmax.f32 %v1324_v20, 0.0 }
 0x427   : > { %v1333_v27 = vpop.f32.mrf.mxu1  ;;  %v656_v20 = vlaneseq }
 0x428   : > { %v1352_v29 = vmul.f32 %v1351_v17, %v1347_v24  ;;  %v1350_v30 = vmin.f32 %v1339_v25, 0.0  ;;  %v8721_v31 = vadd.f32 %v1353_v23, %v1344_v26  ;;  %v1334_v32 = vadd.f32 %v1333_v27, %v1238_v14 }
 0x429   : > { %v1346_v36 = vmax.f32 %v1339_v25, 0.0  ;;  %v8749_v21 = vshrl.u32 %v656_v20, 7  ;;  %v8751_v22 = vand.u32 127, %v656_v20 }
 0x42a   : > { %v1355_v33 = vmul.f32 %v1351_v17, %v1350_v30  ;;  %v8723_v34 = vadd.f32 %v1352_v29, %v1343_v28  ;;  %v1349_v35 = vmin.f32 %v1334_v32, 0.0  ;;  %v1454_v38 = vmul.f32 %v8721_v31, %v8721_v31 }
 0x42b   : > { %v1345_v39 = vmax.f32 %v1334_v32, 0.0  ;;  %v672_v23 = vadd.s32 120, %v8749_v21  ;;  %v671_v24 = vadd.s32 112, %v8749_v21  ;;  %v670_v25 = vadd.s32 104, %v8749_v21 }
 0x42c   : > { %7119 = vmatprep.mubr.f32.mxu0 %v8723_v34  ;;  %v1453_v37 = vmul.f32 %v8723_v34, %v8723_v34  ;;  %v1354_v40 = vmul.f32 %v1351_v17, %v1349_v35  ;;  %v8731_v41 = vadd.f32 %v1355_v33, %v1346_v36  ;;  %v669_v26 = vadd.s32 96, %v8749_v21 }
 0x42d   : > { %7120 = vmatmul.mubr.f32.vlgmr.msra.gmra.mxu0 %v8721_v31  ;;  %v668_v27 = vadd.s32 88, %v8749_v21  ;;  %v667_v28 = vadd.s32 80, %v8749_v21  ;;  %v8760_v29 = vsub.s32 %v8751_v22, %v672_v23  ;;  %v8763_v30 = vsub.s32 %v672_v23, %v8751_v22 }
 0x42e   : > { %7157 = vmatprep.mubr.f32.mxu1 %v1453_v37  ;;  %v8733_v42 = vadd.f32 %v1354_v40, %v1345_v39  ;;  %v1456_v44 = vmul.f32 %v8731_v41, %v8731_v41  ;;  %v8766_v32 = vsub.s32 %v8751_v22, %v671_v24  ;;  %v8769_v33 = vsub.s32 %v671_v24, %v8751_v22 }
 0x42f   : > { %7158 = vmatmul.mubr.f32.vlgmr.msra.gmra.mxu1 %v1454_v38  ;;  %v8772_v35 = vsub.s32 %v8751_v22, %v670_v25  ;;  %v8775_v36 = vsub.s32 %v670_v25, %v8751_v22  ;;  %v8778_v37 = vsub.s32 %v8751_v22, %v669_v26  ;;  %v8781_v38 = vsub.s32 %v669_v26, %v8751_v22  ;;  %v1813_v26 = vld [vmem:[%s11133_s10] sm:$0xff] }
 0x430   : > { %7122 = vmatprep.mubr.f32.mxu0 %v8733_v42  ;;  %v1455_v43 = vmul.f32 %v8733_v42, %v8733_v42  ;;  %vm706_vm2 = vcmp.eq.s32.totalorder %v8760_v29, 1  ;;  %vm770_vm3 = vcmp.eq.s32.totalorder %v8763_v30, 1  ;;  %vm705_vm4 = vcmp.eq.s32.totalorder %v8766_v32, 1 }
 0x431   : > { %7123 = vmatmul.mubr.f32.gmra.mxu0 %v8731_v41  ;;  %vm769_vm5 = vcmp.eq.s32.totalorder %v8769_v33, 1  ;;  %7163 = vmatprep.subr.msk.mxu0 %vm706_vm2, %v11174_v0  ;;  %v666_v39 = vadd.s32 72, %v8749_v21  ;;  %vm704_vm6 = vcmp.eq.s32.totalorder %v8772_v35, 1  ;;  %vm768_vm7 = vcmp.eq.s32.totalorder %v8775_v36, 1 }
 0x432   : > { %7160 = vmatprep.mubr.f32.mxu1 %v1455_v43  ;;  %7201 = vmatprep.subr.msk.mxu1 %vm770_vm3, %v11174_v0  ;;  %v8803_v40 = vsub.s32 %v8751_v22, %v668_v27  ;;  %v8806_v43 = vsub.s32 %v668_v27, %v8751_v22  ;;  %vm703_vm8 = vcmp.eq.s32.totalorder %v8778_v37, 1  ;;  %vm11196_vm9 = vcmp.eq.s32.totalorder %v8781_v38, 1 }
 0x433   : > { %7161 = vmatmul.mubr.f32.gmra.mxu1 %v1456_v44  ;;  %7164 = vmatpush3.msk.msra.mxu0 %vm706_vm2, %v11174_v0  ;;  %v8823_v44 = vsub.s32 %v8751_v22, %v667_v28  ;;  %v659_v25 = vadd.s32 16, %v8749_v21 }
 0x434   : > { %7202 = vmatpush3.msk.msra.mxu1 %vm770_vm3, %v11174_v0  ;;  %7165 = vmatprep.subr.msk.mxu0 %vm705_vm4, %v11174_v0  ;;  %vm11167_vm10 = vcmp.eq.s32.totalorder %v8803_v40, 1  ;;  %vm11166_vm11 = vcmp.eq.s32.totalorder %v8806_v43, 1 }
 0x435   : > { %7203 = vmatprep.subr.msk.mxu1 %vm769_vm5, %v11174_v0  ;;  %7166 = vmatpush3.msk.msra.mxu0 %vm705_vm4, %v11174_v0  ;;  %vm11159_vm12 = vcmp.eq.s32.totalorder %v8823_v44, 1 }
 0x436   : > { %7204 = vmatpush3.msk.msra.mxu1 %vm769_vm5, %v11174_v0  ;;  %7167 = vmatprep.subr.msk.mxu0 %vm704_vm6, %v11174_v0 }
 0x437   : > { %7205 = vmatprep.subr.msk.mxu1 %vm768_vm7, %v11174_v0  ;;  %7168 = vmatpush3.msk.msra.mxu0 %vm704_vm6, %v11174_v0 }
 0x438   : > { %7206 = vmatpush3.msk.msra.mxu1 %vm768_vm7, %v11174_v0  ;;  %7169 = vmatprep.subr.msk.mxu0 %vm703_vm8, %v11174_v0 }
 0x439   : > { %7207 = vmatprep.subr.msk.mxu1 %vm11196_vm9, %v11174_v0  ;;  %7170 = vmatpush3.msk.msra.mxu0 %vm703_vm8, %v11174_v0 }
 0x43a   : > { %7208 = vmatpush3.msk.msra.mxu1 %vm11196_vm9, %v11174_v0  ;;  %7171 = vmatprep.subr.msk.mxu0 %vm11167_vm10, %v11174_v0  ;;  %vm11201_vm9 = vcmp.eq.s32.totalorder %v8775_v36, 2 }
 0x43b   : > { %7209 = vmatprep.subr.msk.mxu1 %vm11166_vm11, %v11174_v0  ;;  %7172 = vmatpush3.msk.msra.mxu0 %vm11167_vm10, %v11174_v0 }
 0x43c   : > { %7210 = vmatpush3.msk.msra.mxu1 %vm11166_vm11, %v11174_v0  ;;  %7173 = vmatprep.subr.msk.mxu0 %vm11159_vm12, %v11174_v0 }
 0x43d   : > { %7174 = vmatpush3.msk.msra.mxu0 %vm11159_vm12, %v11174_v0 }
 0x4ed   : > { %v7121_v45 = vpop.f32.mrf.mxu0 }
 0x4ee   : > { %v1543_v51 = vsel %vm1057_vm0, %v7121_v45, 0.0  ;;  %v8826_v45 = vsub.s32 %v667_v28, %v8751_v22 }
 0x4ef   : > { %v1434_v46 = vpop.f32.mrf.mxu0  ;;  %v7159_v47 = vpop.f32.mrf.mxu1 }
 0x4f0   : > { %v1542_v48 = vsel %vm1057_vm0, %v1434_v46, 0.0  ;;  %v1560_v56 = vsel %vm1057_vm0, %v7159_v47, 0.0  ;;  %v8843_v46 = vsub.s32 %v8751_v22, %v666_v39  ;;  %v8846_v47 = vsub.s32 %v666_v39, %v8751_v22 }
 0x4f1   : > { %v1523_v49 = vpop.f32.mrf.mxu1  ;;  %v7124_v50 = vpop.f32.mrf.mxu0  ;;  %v1544_v53 = vadd.f32 %v1543_v51, %v1542_v48  ;;  %vm11158_vm13 = vcmp.eq.s32.totalorder %v8826_v45, 1 }
 0x4f2   : > { %v1559_v52 = vsel %vm1057_vm0, %v1523_v49, 0.0  ;;  %v1547_v61 = vsel %vm1057_vm0, %v7124_v50, 0.0  ;;  %vm11157_vm14 = vcmp.eq.s32.totalorder %v8843_v46, 1  ;;  %vm11156_vm15 = vcmp.eq.s32.totalorder %v8846_v47, 1  ;;  %7211 = vmatprep.subr.msk.mxu1 %vm11158_vm13, %v11174_v0 }
 0x4f3   : > { %v1444_v54 = vpop.f32.mrf.mxu0  ;;  %v7162_v55 = vpop.f32.mrf.mxu1  ;;  %v1561_v58 = vadd.f32 %v1560_v56, %v1559_v52  ;;  %7212 = vmatpush3.msk.msra.mxu1 %vm11158_vm13, %v11174_v0  ;;  %7175 = vmatprep.subr.msk.mxu0 %vm11157_vm14, %v11174_v0  ;;  %v665_v56 = vadd.s32 64, %v8749_v21 }
 0x4f4   : > { %v1545_v57 = vsel %vm1057_vm0, %v1444_v54, 0.0  ;;  %v1564_v1 = vsel %vm1057_vm0, %v7162_v55, 0.0  ;;  %7213 = vmatprep.subr.msk.mxu1 %vm11156_vm15, %v11174_v0  ;;  %7176 = vmatpush3.msk.msra.mxu0 %vm11157_vm14, %v11174_v0 }
 0x4f5   : > { %v1546_v59 = vadd.f32 %v1545_v57, %v1544_v53  ;;  %v1533_v60 = vpop.f32.mrf.mxu1  ;;  %7214 = vmatpush3.msk.msra.mxu1 %vm11156_vm15, %v11174_v0  ;;  %v8906_v57 = vsub.s32 %v8751_v22, %v665_v56 }
 0x4f6   : > { %v1562_v62 = vsel %vm1057_vm0, %v1533_v60, 0.0  ;;  %v1361_v60 = vld [vmem:[%s11131_s8 + $0x8] sm:$0xff] }
 0x4f7   : > { %v1563_v63 = vadd.f32 %v1562_v62, %v1561_v58  ;;  %v1548_v3 = vadd.f32 %v1547_v61, %v1546_v59  ;;  %v8909_v58 = vsub.s32 %v665_v56, %v8751_v22  ;;  %v664_v59 = vadd.s32 56, %v8749_v21  ;;  %v1360_v61 = vld [vmem:[%s11131_s8] sm:$0xff]  ;;  %v1362_v62 = vld [vmem:[%s11131_s8 + $0x10] sm:$0xff] }
 0x4f8   : > { %vm11161_vm15 = vcmp.eq.s32.totalorder %v8906_v57, 1 }
 0x4f9   : > { %1549 = vadd.xlane.f32.xlu1 %v1548_v3  ;;  %v1565_v2 = vadd.f32 %v1564_v1, %v1563_v63  ;;  %vm11160_vm14 = vcmp.eq.s32.totalorder %v8909_v58, 1  ;;  %v8924_v63 = vsub.s32 %v8751_v22, %v664_v59  ;;  %v8927_v3 = vsub.s32 %v664_v59, %v8751_v22  ;;  %7177 = vmatprep.subr.msk.mxu0 %vm11161_vm15, %v11174_v0 }
 0x4fa   : > { %7215 = vmatprep.subr.msk.mxu1 %vm11160_vm14, %v11174_v0  ;;  %7178 = vmatpush3.msk.msra.mxu0 %vm11161_vm15, %v11174_v0 }
 0x4fb   : > { %1566 = vadd.xlane.f32.xlu0 %v1565_v2  ;;  %v663_v2 = vadd.s32 48, %v8749_v21  ;;  %7216 = vmatpush3.msk.msra.mxu1 %vm11160_vm14, %v11174_v0  ;;  %vm11163_vm13 = vcmp.eq.s32.totalorder %v8924_v63, 1  ;;  %vm11162_vm12 = vcmp.eq.s32.totalorder %v8927_v3, 1 }
 0x4fc   : > { %7179 = vmatprep.subr.msk.mxu0 %vm11163_vm13, %v11174_v0  ;;  %7217 = vmatprep.subr.msk.mxu1 %vm11162_vm12, %v11174_v0 }
 0x4fd   : > { %7180 = vmatpush3.msk.msra.mxu0 %vm11163_vm13, %v11174_v0  ;;  %7218 = vmatpush3.msk.msra.mxu1 %vm11162_vm12, %v11174_v0 }
 0x582   : > { %v1550_v4 = vpop.xlane.xlu1 %1549 }
 0x583   : > { %v1551_v6 = vrot.slane %v1550_v4, 4 }
 0x584   : > { %v1567_v7 = vpop.xlane.xlu0 %1566 }
 0x585   : > { %v1552_v9 = vadd.f32 %v1551_v6, %v1550_v4  ;;  %v1568_v10 = vrot.slane %v1567_v7, 4 }
 0x587   : > { %v1569_v11 = vadd.f32 %v1568_v10, %v1567_v7  ;;  %v1553_v12 = vrot.slane %v1552_v9, 2  ;;  %v8948_v10 = vsub.s32 %v8751_v22, %v663_v2 }
 0x589   : > { %v1554_v13 = vadd.f32 %v1553_v12, %v1552_v9  ;;  %v1570_v14 = vrot.slane %v1569_v11, 2  ;;  %v1366_v9 = vld [vmem:[%s11132_s9 + $0x10] sm:$0xff]  ;;  %vm11165_vm14 = vcmp.eq.s32.totalorder %v8948_v10, 1 }
 0x58a   : > { %7181 = vmatprep.subr.msk.mxu0 %vm11165_vm14, %v11174_v0 }
 0x58b   : > { %v1555_v15 = vrot.slane %v1554_v13, 1  ;;  %v1571_v16 = vadd.f32 %v1570_v14, %v1569_v11  ;;  %v8951_v11 = vsub.s32 %v663_v2, %v8751_v22  ;;  %v661_v14 = vadd.s32 32, %v8749_v21  ;;  %7182 = vmatpush3.msk.msra.mxu0 %vm11165_vm14, %v11174_v0 }
 0x58d   : > { %v1556_v17 = vadd.f32 %v1555_v15, %v1554_v13  ;;  %v1572_v18 = vrot.slane %v1571_v16, 1  ;;  %v662_v13 = vadd.s32 40, %v8749_v21  ;;  %vm11164_vm15 = vcmp.eq.s32.totalorder %v8951_v11, 1 }
 0x58e   : > { %7219 = vmatprep.subr.msk.mxu1 %vm11164_vm15, %v11174_v0  ;;  %v8987_v20 = vsub.s32 %v8751_v22, %v661_v14  ;;  %v8990_v23 = vsub.s32 %v661_v14, %v8751_v22  ;;  %v6138_v14 = vld [vmem:[%s11133_s10 + $0x48] sm:$0xff] }
 0x58f   : > { %8096 = vpush %v1556_v17  ;;  %v1573_v19 = vadd.f32 %v1572_v18, %v1571_v16  ;;  %v660_v16 = vadd.s32 24, %v8749_v21  ;;  %v1363_v17 = vld [vmem:[%s11131_s8 + $0x18] sm:$0xff]  ;;  %v8981_v18 = vsub.s32 %v8751_v22, %v662_v13  ;;  %7220 = vmatpush3.msk.msra.mxu1 %vm11164_vm15, %v11174_v0 }
 0x590   : > { %vm11169_vm15 = vcmp.eq.s32.totalorder %v8987_v20, 1  ;;  %vm11168_vm14 = vcmp.eq.s32.totalorder %v8990_v23, 1 }
 0x591   : > { %8098 = vpush %v1573_v19  ;;  %v8984_v19 = vsub.s32 %v662_v13, %v8751_v22  ;;  %v8993_v24 = vsub.s32 %v8751_v22, %v660_v16  ;;  %vm11171_vm12 = vcmp.eq.s32.totalorder %v8981_v18, 1  ;;  %v9008_v27 = vsub.s32 %v660_v16, %v8751_v22  ;;  %v6140_v13 = vld [vmem:[%s11133_s10 + $0x58] sm:$0xff]  ;;  %v6135_v16 = vld [vmem:[%s11133_s10 + $0x30] sm:$0xff] }
 0x592   : > { %7183 = vmatprep.subr.msk.mxu0 %vm11171_vm12, %v11174_v0 }
 0x593   : > { %11267 = vst [vmem:[#allocation15_spill] sm:$0xff] %v8993_v24  ;;  %vm11170_vm13 = vcmp.eq.s32.totalorder %v8984_v19, 1  ;;  %11268 = vst [vmem:[#allocation16_spill] sm:$0xff] %v9008_v27  ;;  %7184 = vmatpush3.msk.msra.mxu0 %vm11171_vm12, %v11174_v0  ;;  %vm11173_vm11 = vcmp.eq.s32.totalorder %v8993_v24, 1  ;;  %vm11172_vm10 = vcmp.eq.s32.totalorder %v9008_v27, 1 }
 0x594   : > { %7221 = vmatprep.subr.msk.mxu1 %vm11170_vm13, %v11174_v0  ;;  %7185 = vmatprep.subr.msk.mxu0 %vm11169_vm15, %v11174_v0 }
 0x595   : > { %7222 = vmatpush3.msk.msra.mxu1 %vm11170_vm13, %v11174_v0  ;;  %7186 = vmatpush3.msk.msra.mxu0 %vm11169_vm15, %v11174_v0 }
 0x596   : > { %7223 = vmatprep.subr.msk.mxu1 %vm11168_vm14, %v11174_v0  ;;  %7187 = vmatprep.subr.msk.mxu0 %vm11173_vm11, %v11174_v0 }
 0x597   : > { %7224 = vmatpush3.msk.msra.mxu1 %vm11168_vm14, %v11174_v0  ;;  %7188 = vmatpush3.msk.msra.mxu0 %vm11173_vm11, %v11174_v0 }
 0x598   : > { %7225 = vmatprep.subr.msk.mxu1 %vm11172_vm10, %v11174_v0 }
 0x599   : > { %7226 = vmatpush3.msk.msra.mxu1 %vm11172_vm10, %v11174_v0 }
 0x5c0   : > { %s8097_s26 = spop %8096 }
 0x5c1   : > { %v1558_v48 = vstv %s8097_s26  ;;  %s1935_s26 = sld [smem:[#allocation6]] }
 0x5c2   : > { %v8900_v49 = vmul.f32 0.00024414063, %v1558_v48  ;;  %s8099_s4 = spop %8098  ;;  %v1364_v48 = vld [vmem:[%s11132_s9] sm:$0xff] }
 0x5c3   : > { %v1575_v50 = vstv %s8099_s4 }
 0x5c4   : > { %v1577_v51 = vmul.f32 0.00024414063, %v1575_v50  ;;  %v1578_v52 = vmul.f32 %v8900_v49, %v8900_v49  ;;  %v9029_v50 = vsub.s32 %v8751_v22, %v659_v25 }
 0x5c6   : > { %v1579_v53 = vsub.f32 %v1577_v51, %v1578_v52  ;;  %11269 = vst [vmem:[#allocation17_spill] sm:$0xff] %v9029_v50  ;;  %v9032_v51 = vsub.s32 %v659_v25, %v8751_v22  ;;  %v658_v52 = vadd.s32 8, %v8749_v21  ;;  %vm11195_vm14 = vcmp.eq.s32.totalorder %v9029_v50, 1  ;;  %v1907_v25 = vld [vmem:[%s11134_s11] sm:$0xff] }
 0x5c7   : > { %7189 = vmatprep.subr.msk.mxu0 %vm11195_vm14, %v11174_v0 }
 0x5c8   : > { %v1580_v54 = vmax.f32 %v1579_v53, 0.0  ;;  %11270 = vst [vmem:[#allocation18_spill] sm:$0xff] %v9032_v51  ;;  %v1814_v53 = vld [vmem:[%s11133_s10 + $0x8] sm:$0xff]  ;;  %v9054_v56 = vsub.s32 %v8751_v22, %v658_v52  ;;  %v9057_v59 = vsub.s32 %v658_v52, %v8751_v22  ;;  %vm11194_vm15 = vcmp.eq.s32.totalorder %v9032_v51, 1  ;;  %7190 = vmatpush3.msk.msra.mxu0 %vm11195_vm14, %v11174_v0 }
 0x5c9   : > { %7227 = vmatprep.subr.msk.mxu1 %vm11194_vm15, %v11174_v0  ;;  %vm11202_vm14 = vcmp.eq.s32.totalorder %v8772_v35, 2 }
 0x5ca   : > { %v1581_v55 = vadd.f32 1e-08, %v1580_v54  ;;  %11271 = vst [vmem:[#allocation19_spill] sm:$0xff] %v9054_v56  ;;  %11272 = vst [vmem:[#allocation20_spill] sm:$0xff] %v9057_v59  ;;  %vm11193_vm13 = vcmp.eq.s32.totalorder %v9054_v56, 1  ;;  %vm11192_vm12 = vcmp.eq.s32.totalorder %v9057_v59, 1  ;;  %7228 = vmatpush3.msk.msra.mxu1 %vm11194_vm15, %v11174_v0 }
 0x5cb   : > { %7191 = vmatprep.subr.msk.mxu0 %vm11193_vm13, %v11174_v0  ;;  %7229 = vmatprep.subr.msk.mxu1 %vm11192_vm12, %v11174_v0  ;;  %vm11199_vm15 = vcmp.eq.s32.totalorder %v8769_v33, 2 }
 0x5cc   : > { %8196 = vrsqrt.f32 %v1581_v55  ;;  %7192 = vmatpush3.msk.msra.mxu0 %vm11193_vm13, %v11174_v0  ;;  %7230 = vmatpush3.msk.msra.mxu1 %vm11192_vm12, %v11174_v0  ;;  %vm11197_vm12 = vcmp.eq.s32.totalorder %v8763_v30, 2  ;;  %vm11200_vm13 = vcmp.eq.s32.totalorder %v8766_v32, 2 }
 0x5d9   : > { %v8197_v1 = vpop.eup %8196 }
 0x5da   : > { %v1584_v4 = vmul.f32 %v8197_v1, %v1361_v60  ;;  %v1583_v6 = vmul.f32 %v8197_v1, %v1360_v61  ;;  %v1585_v7 = vmul.f32 %v8197_v1, %v1362_v62  ;;  %v1586_v28 = vmul.f32 %v8197_v1, %v1363_v17  ;;  %v1365_v60 = vld [vmem:[%s11132_s9 + $0x8] sm:$0xff]  ;;  %v6137_v1 = vld [vmem:[%s11133_s10 + $0x40] sm:$0xff]  ;;  %v6136_v17 = vld [vmem:[%s11133_s10 + $0x38] sm:$0xff] }
 0x5db   : > { %v9072_v61 = vsub.s32 %v8751_v22, %v8749_v21  ;;  %v9076_v62 = vsub.s32 %v8749_v21, %v8751_v22  ;;  %v1367_v21 = vld [vmem:[%s11132_s9 + $0x18] sm:$0xff]  ;;  %v1815_v22 = vld [vmem:[%s11133_s10 + $0x10] sm:$0xff] }
 0x5dc   : > { %1602 = vperm.xlu0 %8193, %v1584_v4   ;;  %1597 = vperm.xlu1 %8192, %v1583_v6   ;;  %v1589_v12 = vmul.f32 %v1585_v7, %v8900_v49  ;;  %v1587_v39 = vmul.f32 %v1583_v6, %v8900_v49  ;;  %v1588_v54 = vmul.f32 %v1584_v4, %v8900_v49  ;;  %v1816_v6 = vld [vmem:[%s11133_s10 + $0x18] sm:$0xff] }
 0x5dd   : > { %11273 = vst [vmem:[#allocation21_spill] sm:$0xff] %v9072_v61  ;;  %11274 = vst [vmem:[#allocation22_spill] sm:$0xff] %v9076_v62  ;;  %v1590_v4 = vmul.f32 %v1586_v28, %v8900_v49  ;;  %vm11191_vm10 = vcmp.eq.s32.totalorder %v9072_v61, 1  ;;  %vm11190_vm11 = vcmp.eq.s32.totalorder %v9076_v62, 1 }
 0x5de   : > { %v1593_v15 = vsub.f32 %v1366_v9, %v1589_v12  ;;  %v1591_v55 = vsub.f32 %v1364_v48, %v1587_v39  ;;  %v1592_v2 = vsub.f32 %v1365_v60, %v1588_v54  ;;  %7193 = vmatprep.subr.msk.mxu0 %vm11191_vm10, %v11174_v0  ;;  %7231 = vmatprep.subr.msk.mxu1 %vm11190_vm11, %v11174_v0  ;;  %v6139_v9 = vld [vmem:[%s11133_s10 + $0x50] sm:$0xff]  ;;  %v6134_v12 = vld [vmem:[%s11133_s10 + $0x28] sm:$0xff] }
 0x5df   : > { %v1594_v49 = vsub.f32 %v1367_v21, %v1590_v4  ;;  %7194 = vmatpush3.msk.msra.mxu0 %vm11191_vm10, %v11174_v0  ;;  %7232 = vmatpush3.msk.msra.mxu1 %vm11190_vm11, %v11174_v0  ;;  %vm2264_vm11 = vcmask 261120   ;;  %vm11198_vm10 = vcmp.eq.s32.totalorder %v8760_v29, 2 }
 0x5e0   : > { %1631 = vperm.xlu0 %8193, %v1593_v15   ;;  %1607 = vperm.xlu1 %8192, %v1585_v7   ;;  %v6133_v7 = vld [vmem:[%s11133_s10 + $0x20] sm:$0xff]  ;;  %v1909_v15 = vld [vmem:[%s11134_s11 + $0x10] sm:$0xff] }
 0x5e1   : > { %7239 = vmatprep.subr.mxu0 %v11174_v0  ;;  %7277 = vmatprep.subr.mxu1 %v11174_v0 }
 0x5e4   : > { %1819 = vperm.xlu0 %8193, %v1813_v26   ;;  %1612 = vperm.xlu1 %8192, %v1586_v28   ;;  %v1908_v26 = vld [vmem:[%s11134_s11 + $0x8] sm:$0xff]  ;;  %v1910_v28 = vld [vmem:[%s11134_s11 + $0x18] sm:$0xff] }
 0x5e8   : > { %1824 = vperm.xlu0 %8193, %v1814_v53   ;;  %1621 = vperm.xlu1 %8192, %v1591_v55  }
 0x5ec   : > { %1881 = vperm.xlu0 %8193, %v6137_v1   ;;  %1626 = vperm.xlu1 %8192, %v1592_v2  }
 0x5f0   : > { %1829 = vperm.xlu0 %8193, %v1815_v22   ;;  %1636 = vperm.xlu1 %8192, %v1594_v49  }
 0x5f4   : > { %1834 = vperm.xlu0 %8193, %v1816_v6   ;;  %1848 = vperm.xlu1 %8192, %v6133_v7  }
 0x5f8   : > { %1891 = vperm.xlu0 %8193, %v6139_v9   ;;  %1853 = vperm.xlu1 %8192, %v6134_v12  }
 0x5fc   : > { %1896 = vperm.xlu0 %8193, %v6140_v13   ;;  %1886 = vperm.xlu1 %8192, %v6138_v14  }
 0x600   : > { %1923 = vperm.xlu0 %8193, %v1909_v15   ;;  %1858 = vperm.xlu1 %8192, %v6135_v16  }
 0x604   : > { %1863 = vperm.xlu1 %8192, %v6136_v17  }
 0x608   : > { %1913 = vperm.xlu1 %8192, %v1907_v25  }
 0x60c   : > { %1918 = vperm.xlu1 %8192, %v1908_v26  }
 0x610   : > { %1928 = vperm.xlu1 %8192, %v1910_v28  }
 0x657   : > { %v1598_v39 = vpop.permute.xlu1 %1597  ;;  %v1603_v53 = vpop.permute.xlu0 %1602 }
 0x658   : > { %v1615_v54 = vmul.f32 %v1598_v39, %v8723_v34  ;;  %v1616_v2 = vmul.f32 %v1603_v53, %v8721_v31 }
 0x65b   : > { %v1608_v48 = vpop.permute.xlu1 %1607  ;;  %v1632_v21 = vpop.permute.xlu0 %1631 }
 0x65c   : > { %v1617_v1 = vmul.f32 %v1608_v48, %v8733_v42 }
 0x65e   : > { %v9181_v49 = vadd.f32 %v1632_v21, %v1617_v1 }
 0x65f   : > { %v1613_v52 = vpop.permute.xlu1 %1612  ;;  %v1820_v42 = vpop.permute.xlu0 %1819 }
 0x660   : > { %v1618_v6 = vmul.f32 %v1613_v52, %v8731_v41 }
 0x663   : > { %v1622_v55 = vpop.permute.xlu1 %1621  ;;  %v1825_v9 = vpop.permute.xlu0 %1824 }
 0x664   : > { %v9173_v60 = vadd.f32 %v1622_v55, %v1615_v54 }
 0x666   : > { %7195 = vmatprep.mubr.f32.mxu0 %v9173_v60  ;;  %7233 = vmatprep.mubr.f32.mxu1 %v9173_v60 }
 0x667   : > { %v1627_v4 = vpop.permute.xlu1 %1626  ;;  %v1882_v13 = vpop.permute.xlu0 %1881 }
 0x668   : > { %v9179_v22 = vadd.f32 %v1627_v4, %v1616_v2 }
 0x66a   : > { %7196 = vmatmul.mubr.f32.vlgmr.msra.gmra.mxu0 %v9179_v22  ;;  %7234 = vmatmul.mubr.f32.vlgmr.msra.gmra.mxu1 %v9179_v22 }
 0x66b   : > { %7198 = vmatprep.mubr.f32.mxu0 %v9181_v49  ;;  %7236 = vmatprep.mubr.f32.mxu1 %v9181_v49  ;;  %v1637_v31 = vpop.permute.xlu1 %1636  ;;  %v1830_v15 = vpop.permute.xlu0 %1829 }
 0x66c   : > { %v9188_v34 = vadd.f32 %v1637_v31, %v1618_v6  ;;  %7240 = vmatpush3.msra.mxu0 %v11174_v0  ;;  %7278 = vmatpush3.msra.mxu1 %v11174_v0 }
 0x66d   : > { %7241 = vmatprep.subr.mxu0 %v11174_v0  ;;  %7279 = vmatprep.subr.mxu1 %v11174_v0 }
 0x66e   : > { %7199 = vmatmul.mubr.f32.gmra.mxu0 %v9188_v34  ;;  %7237 = vmatmul.mubr.f32.gmra.mxu1 %v9188_v34 }
 0x66f   : > { %7242 = vmatpush3.msra.mxu0 %v11174_v0  ;;  %7280 = vmatpush3.msra.mxu1 %v11174_v0  ;;  %v1849_v41 = vpop.permute.xlu1 %1848  ;;  %v1835_v17 = vpop.permute.xlu0 %1834 }
 0x670   : > { %7243 = vmatprep.subr.mxu0 %v11174_v0  ;;  %7281 = vmatprep.subr.mxu1 %v11174_v0  ;;  %v1866_v55 = vmul.f32 %v1849_v41, %v9173_v60 }
 0x671   : > { %7244 = vmatpush3.msra.mxu0 %v11174_v0  ;;  %7282 = vmatpush3.msra.mxu1 %v11174_v0 }
 0x672   : > { %7245 = vmatprep.subr.mxu0 %v11174_v0  ;;  %7283 = vmatprep.subr.mxu1 %v11174_v0 }
 0x673   : > { %7246 = vmatpush3.msra.mxu0 %v11174_v0  ;;  %7284 = vmatpush3.msra.mxu1 %v11174_v0  ;;  %v1854_v7 = vpop.permute.xlu1 %1853  ;;  %v1892_v26 = vpop.permute.xlu0 %1891 }
 0x674   : > { %7247 = vmatprep.subr.mxu0 %v11174_v0  ;;  %7285 = vmatprep.subr.mxu1 %v11174_v0  ;;  %v1867_v48 = vmul.f32 %v1854_v7, %v9179_v22 }
 0x675   : > { %7248 = vmatpush3.msra.mxu0 %v11174_v0  ;;  %7286 = vmatpush3.msra.mxu1 %v11174_v0 }
 0x676   : > { %7249 = vmatprep.subr.mxu0 %v11174_v0  ;;  %7287 = vmatprep.subr.mxu1 %v11174_v0 }
 0x677   : > { %7250 = vmatpush3.msra.mxu0 %v11174_v0  ;;  %7288 = vmatpush3.msra.mxu1 %v11174_v0  ;;  %v1887_v12 = vpop.permute.xlu1 %1886  ;;  %v1897_v62 = vpop.permute.xlu0 %1896 }
 0x678   : > { %7251 = vmatprep.subr.mxu0 %v11174_v0  ;;  %7289 = vmatprep.subr.mxu1 %v11174_v0 }
 0x679   : > { %7252 = vmatpush3.msra.mxu0 %v11174_v0  ;;  %7290 = vmatpush3.msra.mxu1 %v11174_v0 }
 0x67a   : > { %7253 = vmatprep.subr.mxu0 %v11174_v0  ;;  %7291 = vmatprep.subr.mxu1 %v11174_v0 }
 0x67b   : > { %7254 = vmatpush3.msra.mxu0 %v11174_v0  ;;  %7292 = vmatpush3.msra.mxu1 %v11174_v0  ;;  %v1859_v14 = vpop.permute.xlu1 %1858 }
 0x67c   : > { %7255 = vmatprep.subr.mxu0 %v11174_v0  ;;  %7293 = vmatprep.subr.mxu1 %v11174_v0  ;;  %v1868_v41 = vmul.f32 %v1859_v14, %v9181_v49 }
 0x67d   : > { %7256 = vmatpush3.msra.mxu0 %v11174_v0  ;;  %7294 = vmatpush3.msra.mxu1 %v11174_v0 }
 0x67e   : > { %7257 = vmatprep.subr.mxu0 %v11174_v0  ;;  %7295 = vmatprep.subr.mxu1 %v11174_v0 }
 0x67f   : > { %7258 = vmatpush3.msra.mxu0 %v11174_v0  ;;  %7296 = vmatpush3.msra.mxu1 %v11174_v0  ;;  %v1864_v16 = vpop.permute.xlu1 %1863 }
 0x680   : > { %7259 = vmatprep.subr.mxu0 %v11174_v0  ;;  %7297 = vmatprep.subr.mxu1 %v11174_v0  ;;  %v1869_v6 = vmul.f32 %v1864_v16, %v9188_v34 }
 0x681   : > { %7260 = vmatpush3.msra.mxu0 %v11174_v0  ;;  %7298 = vmatpush3.msra.mxu1 %v11174_v0 }
 0x682   : > { %7261 = vmatprep.subr.mxu0 %v11174_v0  ;;  %7299 = vmatprep.subr.mxu1 %v11174_v0 }
 0x683   : > { %7262 = vmatpush3.msra.mxu0 %v11174_v0  ;;  %7300 = vmatpush3.msra.mxu1 %v11174_v0  ;;  %v1914_v25 = vpop.permute.xlu1 %1913 }
 0x684   : > { %7263 = vmatprep.subr.mxu0 %v11174_v0  ;;  %7301 = vmatprep.subr.mxu1 %v11174_v0 }
 0x685   : > { %7264 = vmatpush3.msra.mxu0 %v11174_v0  ;;  %7302 = vmatpush3.msra.mxu1 %v11174_v0 }
 0x686   : > { %7265 = vmatprep.subr.mxu0 %v11174_v0  ;;  %7303 = vmatprep.subr.mxu1 %v11174_v0 }
 0x687   : > { %7266 = vmatpush3.msra.mxu0 %v11174_v0  ;;  %7304 = vmatpush3.msra.mxu1 %v11174_v0  ;;  %v1919_v1 = vpop.permute.xlu1 %1918 }
 0x688   : > { %7267 = vmatprep.subr.mxu0 %v11174_v0  ;;  %7305 = vmatprep.subr.mxu1 %v11174_v0 }
 0x689   : > { %7268 = vmatpush3.msra.mxu0 %v11174_v0  ;;  %7306 = vmatpush3.msra.mxu1 %v11174_v0 }
 0x68a   : > { %7269 = vmatprep.subr.mxu0 %v11174_v0  ;;  %7307 = vmatprep.subr.mxu1 %v11174_v0 }
 0x68b   : > { %7270 = vmatpush3.msra.mxu0 %v11174_v0  ;;  %7308 = vmatpush3.msra.mxu1 %v11174_v0  ;;  %v1929_v16 = vpop.permute.xlu1 %1928 }
 0x72a   : > { %v7197_v28 = vpop.f32.mrf.mxu0  ;;  %v7235_v39 = vpop.f32.mrf.mxu1 }
 0x72b   : > { %v1838_v52 = vmul.f32 %v7197_v28, %v1825_v9  ;;  %v1900_v4 = vmul.f32 %v7235_v39, %v1887_v12  ;;  %v1944_v12 = vstv %s1935_s26 }
 0x72c   : > { %v1709_v53 = vpop.f32.mrf.mxu0  ;;  %v1794_v54 = vpop.f32.mrf.mxu1 }
 0x72d   : > { %v1871_v2 = vadd.f32 %v1867_v48, %v1838_v52  ;;  %v1837_v21 = vmul.f32 %v1820_v42, %v1709_v53  ;;  %v1899_v56 = vmul.f32 %v1882_v13, %v1794_v54 }
 0x72e   : > { %v7200_v31 = vpop.f32.mrf.mxu0  ;;  %v7238_v0 = vpop.f32.mrf.mxu1 }
 0x72f   : > { %v1904_v61 = vadd.f32 %v1900_v4, %v1871_v2  ;;  %v1870_v59 = vadd.f32 %v1866_v55, %v1837_v21  ;;  %v1840_v51 = vmul.f32 %v7200_v31, %v1835_v17  ;;  %v1902_v50 = vmul.f32 %v7238_v0, %v1897_v62  ;;  %v1924_v62 = vpop.permute.xlu0 %1923 }
 0x730   : > { %v1719_v22 = vpop.f32.mrf.mxu0  ;;  %v1804_v60 = vpop.f32.mrf.mxu1 }
 0x731   : > { %v1932_v7 = vadd.f32 %v1919_v1, %v1904_v61  ;;  %v1903_v9 = vadd.f32 %v1899_v56, %v1870_v59  ;;  %v1873_v28 = vadd.f32 %v1869_v6, %v1840_v51  ;;  %v1839_v27 = vmul.f32 %v1830_v15, %v1719_v22 }
 0x732   : > { %v1901_v52 = vmul.f32 %v1892_v26, %v1804_v60 }
 0x733   : > { %v1941_v42 = vmin.f32 %v1932_v7, 0.0  ;;  %v1931_v39 = vadd.f32 %v1914_v25, %v1903_v9  ;;  %v1906_v34 = vadd.f32 %v1902_v50, %v1873_v28  ;;  %v1872_v48 = vadd.f32 %v1868_v41, %v1839_v27 }
 0x734   : > { %v1937_v17 = vmax.f32 %v1932_v7, 0.0 }
 0x735   : > { %v1946_v53 = vmul.f32 %v1944_v12, %v1941_v42  ;;  %v1940_v55 = vmin.f32 %v1931_v39, 0.0  ;;  %v1934_v13 = vadd.f32 %v1929_v16, %v1906_v34  ;;  %v1905_v0 = vadd.f32 %v1901_v52, %v1872_v48 }
 0x736   : > { %v1936_v56 = vmax.f32 %v1931_v39, 0.0 }
 0x737   : > { %v1943_v61 = vmin.f32 %v1934_v13, 0.0  ;;  %v1945_v51 = vmul.f32 %v1944_v12, %v1940_v55  ;;  %v9258_v59 = vadd.f32 %v1946_v53, %v1937_v17  ;;  %v1933_v15 = vadd.f32 %v1924_v62, %v1905_v0 }
 0x738   : > { %v1939_v50 = vmax.f32 %v1934_v13, 0.0 }
 0x739   : > { %v9260_v49 = vadd.f32 %v1945_v51, %v1936_v56  ;;  %v1948_v14 = vmul.f32 %v1944_v12, %v1943_v61  ;;  %v1942_v25 = vmin.f32 %v1933_v15, 0.0  ;;  %v2047_v26 = vmul.f32 %v9258_v59, %v9258_v59 }
 0x73a   : > { %v1938_v54 = vmax.f32 %v1933_v15, 0.0 }
 0x73b   : > { %7271 = vmatprep.mubr.f32.mxu0 %v9260_v49  ;;  %v2046_v27 = vmul.f32 %v9260_v49, %v9260_v49  ;;  %v1947_v1 = vmul.f32 %v1944_v12, %v1942_v25  ;;  %v9268_v2 = vadd.f32 %v1948_v14, %v1939_v50 }
 0x73c   : > { %7272 = vmatmul.mubr.f32.vlgmr.msra.gmra.mxu0 %v9258_v59 }
 0x73d   : > { %7309 = vmatprep.mubr.f32.mxu1 %v2046_v27  ;;  %v9270_v4 = vadd.f32 %v1947_v1, %v1938_v54  ;;  %v2049_v6 = vmul.f32 %v9268_v2, %v9268_v2 }
 0x73e   : > { %7310 = vmatmul.mubr.f32.vlgmr.msra.gmra.mxu1 %v2047_v26 }
 0x73f   : > { %7274 = vmatprep.mubr.f32.mxu0 %v9270_v4  ;;  %v2048_v21 = vmul.f32 %v9270_v4, %v9270_v4 }
 0x740   : > { %7275 = vmatmul.mubr.f32.gmra.mxu0 %v9268_v2 }
 0x741   : > { %7312 = vmatprep.mubr.f32.mxu1 %v2048_v21 }
 0x742   : > { %7313 = vmatmul.mubr.f32.gmra.mxu1 %v2049_v6 }
 0x7fc   : > { %v7273_v31 = vpop.f32.mrf.mxu0 }
 0x7fd   : > { %v2136_v41 = vsel %vm1057_vm0, %v7273_v31, 0.0 }
 0x7fe   : > { %v2027_v22 = vpop.f32.mrf.mxu0  ;;  %v7311_v7 = vpop.f32.mrf.mxu1 }
 0x7ff   : > { %v2135_v9 = vsel %vm1057_vm0, %v2027_v22, 0.0  ;;  %v2153_v16 = vsel %vm1057_vm0, %v7311_v7, 0.0 }
 0x800   : > { %v2116_v28 = vpop.f32.mrf.mxu1  ;;  %v7276_v60 = vpop.f32.mrf.mxu0  ;;  %v2137_v42 = vadd.f32 %v2136_v41, %v2135_v9 }
 0x801   : > { %v2152_v12 = vsel %vm1057_vm0, %v2116_v28, 0.0  ;;  %v2140_v13 = vsel %vm1057_vm0, %v7276_v60, 0.0 }
 0x802   : > { %v2037_v39 = vpop.f32.mrf.mxu0  ;;  %v7314_v34 = vpop.f32.mrf.mxu1  ;;  %v2154_v52 = vadd.f32 %v2153_v16, %v2152_v12  ;;  %v1956_v16 = vld [vmem:[%s11136_s13 + $0x18] sm:$0xff] }
 0x803   : > { %v2138_v48 = vsel %vm1057_vm0, %v2037_v39, 0.0  ;;  %v2157_v61 = vsel %vm1057_vm0, %v7314_v34, 0.0 }
 0x804   : > { %v2139_v53 = vadd.f32 %v2138_v48, %v2137_v42  ;;  %v2126_v55 = vpop.f32.mrf.mxu1  ;;  %v1955_v48 = vld [vmem:[%s11136_s13 + $0x10] sm:$0xff] }
 0x805   : > { %v2155_v17 = vsel %vm1057_vm0, %v2126_v55, 0.0 }
 0x806   : > { %v2156_v0 = vadd.f32 %v2155_v17, %v2154_v52  ;;  %v2141_v62 = vadd.f32 %v2140_v13, %v2139_v53  ;;  %v1960_v13 = vld [vmem:[%s11137_s14 + $0x18] sm:$0xff]  ;;  %v1954_v17 = vld [vmem:[%s11136_s13 + $0x8] sm:$0xff] }
 0x808   : > { %2142 = vadd.xlane.f32.xlu0 %v2141_v62  ;;  %v2158_v56 = vadd.f32 %v2157_v61, %v2156_v0  ;;  %v1953_v0 = vld [vmem:[%s11136_s13] sm:$0xff] }
 0x80a   : > { %2159 = vadd.xlane.f32.xlu1 %v2158_v56 }
 0x891   : > { %v2143_v51 = vpop.xlane.xlu0 %2142 }
 0x892   : > { %v2144_v15 = vrot.slane %v2143_v51, 4 }
 0x893   : > { %v2160_v14 = vpop.xlane.xlu1 %2159 }
 0x894   : > { %v2145_v25 = vadd.f32 %v2144_v15, %v2143_v51  ;;  %v2161_v27 = vrot.slane %v2160_v14, 4 }
 0x896   : > { %v2162_v50 = vadd.f32 %v2161_v27, %v2160_v14  ;;  %v2146_v26 = vrot.slane %v2145_v25, 2  ;;  %v1959_v14 = vld [vmem:[%s11137_s14 + $0x10] sm:$0xff] }
 0x898   : > { %v2147_v54 = vadd.f32 %v2146_v26, %v2145_v25  ;;  %v2163_v1 = vrot.slane %v2162_v50, 2  ;;  %v1958_v26 = vld [vmem:[%s11137_s14 + $0x8] sm:$0xff] }
 0x89a   : > { %v2148_v21 = vrot.slane %v2147_v54, 1  ;;  %v2164_v6 = vadd.f32 %v2163_v1, %v2162_v50 }
 0x89c   : > { %v2149_v31 = vadd.f32 %v2148_v21, %v2147_v54  ;;  %v2165_v22 = vrot.slane %v2164_v6, 1  ;;  %v1957_v54 = vld [vmem:[%s11137_s14] sm:$0xff] }
 0x89e   : > { %8100 = vpush %v2149_v31  ;;  %v2166_v7 = vadd.f32 %v2165_v22, %v2164_v6  ;;  %v2241_v6 = vld [vmem:[%s11139_s16 + $0x8] sm:$0xff]  ;;  %v2240_v31 = vld [vmem:[%s11139_s16] sm:$0xff] }
 0x89f   : > { %v2236_v22 = vld [vmem:[%s11138_s15] sm:$0xff] }
 0x8a0   : > { %8102 = vpush %v2166_v7  ;;  %7323 = vmatprep.mubr.msk.f32.mxu0 %vm2264_vm11, %v2236_v22  ;;  %v6149_v7 = vld [vmem:[%s11129_s6 + $0x20] sm:$0xff] }
 0x8cf   : > { %s8101_s4 = spop %8100 }
 0x8d0   : > { %v2151_v9 = vstv %s8101_s4 }
 0x8d1   : > { %v2169_v28 = vmul.f32 0.00024414063, %v2151_v9  ;;  %s8103_s21 = spop %8102  ;;  %v6150_v9 = vld [vmem:[%s11129_s6 + $0x28] sm:$0xff] }
 0x8d2   : > { %v2168_v60 = vstv %s8103_s21  ;;  %s648_s21 = sand.u32 1, %s8302_s24  }
 0x8d3   : > { %v2170_v41 = vmul.f32 0.00024414063, %v2168_v60  ;;  %v2171_v12 = vmul.f32 %v2169_v28, %v2169_v28  ;;  %v6152_v60 = vld [vmem:[%s11129_s6 + $0x38] sm:$0xff] }
 0x8d5   : > { %v2172_v42 = vsub.f32 %v2170_v41, %v2171_v12 }
 0x8d7   : > { %v2173_v39 = vmax.f32 %v2172_v42, 0.0 }
 0x8d9   : > { %v2174_v34 = vadd.f32 1e-08, %v2173_v39 }
 0x8db   : > { %8198 = vrsqrt.f32 %v2174_v34 }
 0x8e8   : > { %v8199_v52 = vpop.eup %8198 }
 0x8e9   : > { %v2179_v53 = vmul.f32 %v8199_v52, %v1956_v16  ;;  %v2178_v55 = vmul.f32 %v8199_v52, %v1955_v48  ;;  %v2177_v56 = vmul.f32 %v8199_v52, %v1954_v17  ;;  %v2176_v15 = vmul.f32 %v8199_v52, %v1953_v0 }
 0x8eb   : > { %2205 = vperm.xlu0 %8193, %v2179_v53   ;;  %2200 = vperm.xlu1 %8192, %v2178_v55   ;;  %v2183_v62 = vmul.f32 %v2179_v53, %v2169_v28  ;;  %v2182_v51 = vmul.f32 %v2178_v55, %v2169_v28  ;;  %v2181_v27 = vmul.f32 %v2177_v56, %v2169_v28 }
 0x8ec   : > { %v2180_v50 = vmul.f32 %v2176_v15, %v2169_v28  ;;  %v6151_v28 = vld [vmem:[%s11129_s6 + $0x30] sm:$0xff] }
 0x8ed   : > { %v2187_v61 = vsub.f32 %v1960_v13, %v2183_v62  ;;  %v2186_v25 = vsub.f32 %v1959_v14, %v2182_v51  ;;  %v2185_v1 = vsub.f32 %v1958_v26, %v2181_v27 }
 0x8ee   : > { %v2184_v21 = vsub.f32 %v1957_v54, %v2180_v50  ;;  %v6146_v54 = vld [vmem:[%s11128_s5 + $0x28] sm:$0xff] }
 0x8ef   : > { %2229 = vperm.xlu0 %8193, %v2187_v61   ;;  %2195 = vperm.xlu1 %8192, %v2177_v56   ;;  %v11275_v56 = vmov 1.0  }
 0x8f3   : > { %2224 = vperm.xlu0 %8193, %v2186_v25   ;;  %2190 = vperm.xlu1 %8192, %v2176_v15  }
 0x8f7   : > { %2219 = vperm.xlu0 %8193, %v2185_v1   ;;  %2214 = vperm.xlu1 %8192, %v2184_v21   ;;  %v6147_v1 = vld [vmem:[%s11128_s5 + $0x30] sm:$0xff]  ;;  %v2239_v21 = vld [vmem:[%s11138_s15 + $0x18] sm:$0xff] }
 0x8fb   : > { %2251 = vperm.xlu0 %8193, %v2241_v6   ;;  %2246 = vperm.xlu1 %8192, %v2240_v31  }
 0x8ff   : > { %2378 = vperm.xlu0 %8193, %v6149_v7   ;;  %2383 = vperm.xlu1 %8192, %v6150_v9   ;;  %v2502_v9 = vstv %s6157_s22 }
 0x903   : > { %2388 = vperm.xlu0 %8193, %v6151_v28   ;;  %2393 = vperm.xlu1 %8192, %v6152_v60  }
 0x966   : > { %v2206_v41 = vpop.permute.xlu0 %2205  ;;  %v2201_v12 = vpop.permute.xlu1 %2200 }
 0x967   : > { %v2211_v42 = vmul.f32 %v2206_v41, %v9268_v2  ;;  %v2210_v48 = vmul.f32 %v2201_v12, %v9270_v4  ;;  %v2237_v4 = vld [vmem:[%s11138_s15 + $0x8] sm:$0xff] }
 0x96a   : > { %v2230_v39 = vpop.permute.xlu0 %2229  ;;  %v2196_v34 = vpop.permute.xlu1 %2195 }
 0x96b   : > { %v2235_v16 = vadd.f32 %v2230_v39, %v2211_v42  ;;  %v2209_v13 = vmul.f32 %v2196_v34, %v9258_v59  ;;  %v6145_v59 = vld [vmem:[%s11128_s5 + $0x20] sm:$0xff] }
 0x96c   : > { %7333 = vmatprep.mubr.msk.f32.mxu1 %vm1135_vm1, %v6145_v59 }
 0x96d   : > { %7315 = vmatprep.subr.mxu0 %v2235_v16 }
 0x96e   : > { %7316 = vmatpush3.msra.mxu0 %v2235_v16  ;;  %v2225_v52 = vpop.permute.xlu0 %2224  ;;  %v2191_v53 = vpop.permute.xlu1 %2190 }
 0x96f   : > { %v2234_v55 = vadd.f32 %v2225_v52, %v2210_v48  ;;  %v2208_v62 = vmul.f32 %v2191_v53, %v9260_v49 }
 0x971   : > { %7317 = vmatprep.subr.mxu0 %v2234_v55 }
 0x972   : > { %7318 = vmatpush3.msra.mxu0 %v2234_v55  ;;  %v2220_v17 = vpop.permute.xlu0 %2219  ;;  %v2215_v0 = vpop.permute.xlu1 %2214 }
 0x973   : > { %v2233_v61 = vadd.f32 %v2220_v17, %v2209_v13  ;;  %v2232_v2 = vadd.f32 %v2215_v0, %v2208_v62 }
 0x975   : > { %7319 = vmatprep.subr.mxu0 %v2233_v61 }
 0x976   : > { %7320 = vmatpush3.msra.mxu0 %v2233_v61  ;;  %v2252_v49 = vpop.permute.xlu0 %2251  ;;  %v2247_v14 = vpop.permute.xlu1 %2246 }
 0x977   : > { %7321 = vmatprep.subr.mxu0 %v2232_v2 }
 0x978   : > { %7322 = vmatpush3.msra.mxu0 %v2232_v2 }
 0x979   : > { %7324 = vmatmul.mubr.msk.f32.vlgmr.msra.gmra.mxu0 %vm2264_vm11, %v2237_v4  ;;  %7339 = vmatprep.subr.mxu0 %v11275_v56 }
 0x97a   : > { %7340 = vmatpush3.msra.mxu0 %v11275_v56  ;;  %v2384_v6 = vpop.permute.xlu1 %2383  ;;  %v2379_v22 = vpop.permute.xlu0 %2378 }
 0x97b   : > { %7341 = vmatprep.subr.mxu0 %v11275_v56 }
 0x97c   : > { %7342 = vmatpush3.msra.mxu0 %v11275_v56 }
 0x97d   : > { %7343 = vmatprep.subr.mxu0 %v11275_v56 }
 0x97e   : > { %7344 = vmatpush3.msra.mxu0 %v11275_v56  ;;  %v2394_v12 = vpop.permute.xlu1 %2393  ;;  %v2389_v53 = vpop.permute.xlu0 %2388 }
 0x97f   : > { %7345 = vmatprep.subr.mxu0 %v11275_v56 }
 0x980   : > { %7346 = vmatpush3.msra.mxu0 %v11275_v56 }
 0x981   : > { %7347 = vmatprep.subr.mxu0 %v11275_v56 }
 0x982   : > { %7348 = vmatpush3.msra.mxu0 %v11275_v56 }
 0x983   : > { %7349 = vmatprep.subr.mxu0 %v11275_v56 }
 0x984   : > { %7350 = vmatpush3.msra.mxu0 %v11275_v56 }
 0x985   : > { %7351 = vmatprep.subr.mxu0 %v11275_v56 }
 0x986   : > { %7352 = vmatpush3.msra.mxu0 %v11275_v56 }
 0x987   : > { %7353 = vmatprep.subr.mxu0 %v11275_v56 }
 0x988   : > { %7354 = vmatpush3.msra.mxu0 %v11275_v56 }
 0x989   : > { %7355 = vmatprep.subr.mxu0 %v11275_v56 }
 0x98a   : > { %7356 = vmatpush3.msra.mxu0 %v11275_v56 }
 0x98b   : > { %7357 = vmatprep.subr.mxu0 %v11275_v56 }
 0x98c   : > { %7358 = vmatpush3.msra.mxu0 %v11275_v56 }
 0x98d   : > { %7359 = vmatprep.subr.mxu0 %v11275_v56 }
 0x98e   : > { %7360 = vmatpush3.msra.mxu0 %v11275_v56 }
 0x98f   : > { %7361 = vmatprep.subr.mxu0 %v11275_v56 }
 0x990   : > { %7362 = vmatpush3.msra.mxu0 %v11275_v56 }
 0x991   : > { %7363 = vmatprep.subr.mxu0 %v11275_v56 }
 0x992   : > { %7364 = vmatpush3.msra.mxu0 %v11275_v56 }
 0x993   : > { %7365 = vmatprep.subr.mxu0 %v11275_v56 }
 0x994   : > { %7366 = vmatpush3.msra.mxu0 %v11275_v56 }
 0x995   : > { %7367 = vmatprep.subr.mxu0 %v11275_v56 }
 0x996   : > { %7368 = vmatpush3.msra.mxu0 %v11275_v56 }
 0x997   : > { %7369 = vmatprep.subr.mxu0 %v11275_v56 }
 0x998   : > { %7370 = vmatpush3.msra.mxu0 %v11275_v56 }
 0x999   : > { %7415 = vmatprep.subr.msk.mxu0 %vm11198_vm10, %v11275_v56 }
 0xa39   : > { %v7325_v51 = vpop.f32.mrf.mxu0 }
 0xa3a   : > { %v2349_v15 = vadd.f32 %v7325_v51, %v2252_v49 }
 0xa3b   : > { %v2343_v25 = vpop.f32.mrf.mxu0 }
 0xa3c   : > { %v9377_v27 = vadd.f32 %v2349_v15, %v8669_v5  ;;  %v2344_v50 = vadd.f32 %v2343_v25, %v2247_v14  ;;  %v6148_v5 = vld [vmem:[%s11128_s5 + $0x38] sm:$0xff] }
 0xa3e   : > { %v9380_v26 = vadd.f32 %v2344_v50, %v8671_v8  ;;  %7329 = vmatprep.subr.mxu1 %v9377_v27  ;;  %v2238_v8 = vld [vmem:[%s11138_s15 + $0x10] sm:$0xff] }
 0xa3f   : > { %7330 = vmatpush3.msra.mxu1 %v9377_v27  ;;  %7326 = vmatprep.mubr.msk.f32.mxu0 %vm2264_vm11, %v2238_v8 }
 0xa40   : > { %7331 = vmatprep.subr.mxu1 %v9380_v26  ;;  %7327 = vmatmul.mubr.msk.f32.gmra.mxu0 %vm2264_vm11, %v2239_v21 }
 0xa41   : > { %7332 = vmatpush3.msra.mxu1 %v9380_v26 }
 0xa42   : > { %7334 = vmatmul.mubr.msk.f32.vlgmr.msra.gmra.mxu1 %vm1135_vm1, %v6146_v54  ;;  %7377 = vmatprep.subr.mxu1 %v11275_v56 }
 0xa43   : > { %7336 = vmatprep.mubr.msk.f32.mxu1 %vm1135_vm1, %v6147_v1  ;;  %7378 = vmatpush3.msra.mxu1 %v11275_v56 }
 0xa44   : > { %7379 = vmatprep.subr.mxu1 %v11275_v56 }
 0xa45   : > { %7380 = vmatpush3.msra.mxu1 %v11275_v56 }
 0xa46   : > { %7337 = vmatmul.mubr.msk.f32.gmra.mxu1 %vm1135_vm1, %v6148_v5  ;;  %7381 = vmatprep.subr.mxu1 %v11275_v56 }
 0xa47   : > { %7382 = vmatpush3.msra.mxu1 %v11275_v56 }
 0xa48   : > { %7383 = vmatprep.subr.mxu1 %v11275_v56 }
 0xa49   : > { %7384 = vmatpush3.msra.mxu1 %v11275_v56 }
 0xa4a   : > { %7385 = vmatprep.subr.mxu1 %v11275_v56 }
 0xa4b   : > { %7386 = vmatpush3.msra.mxu1 %v11275_v56 }
 0xa4c   : > { %7387 = vmatprep.subr.mxu1 %v11275_v56 }
 0xa4d   : > { %7388 = vmatpush3.msra.mxu1 %v11275_v56 }
 0xa4e   : > { %7389 = vmatprep.subr.mxu1 %v11275_v56 }
 0xa4f   : > { %7390 = vmatpush3.msra.mxu1 %v11275_v56 }
 0xa50   : > { %7391 = vmatprep.subr.mxu1 %v11275_v56 }
 0xa51   : > { %7392 = vmatpush3.msra.mxu1 %v11275_v56 }
 0xa52   : > { %7393 = vmatprep.subr.mxu1 %v11275_v56 }
 0xa53   : > { %7394 = vmatpush3.msra.mxu1 %v11275_v56 }
 0xa54   : > { %7395 = vmatprep.subr.mxu1 %v11275_v56 }
 0xa55   : > { %7396 = vmatpush3.msra.mxu1 %v11275_v56 }
 0xa56   : > { %7397 = vmatprep.subr.mxu1 %v11275_v56 }
 0xa57   : > { %7398 = vmatpush3.msra.mxu1 %v11275_v56 }
 0xa58   : > { %7399 = vmatprep.subr.mxu1 %v11275_v56 }
 0xa59   : > { %7400 = vmatpush3.msra.mxu1 %v11275_v56 }
 0xa5a   : > { %7401 = vmatprep.subr.mxu1 %v11275_v56 }
 0xa5b   : > { %7402 = vmatpush3.msra.mxu1 %v11275_v56 }
 0xa5c   : > { %7403 = vmatprep.subr.mxu1 %v11275_v56 }
 0xa5d   : > { %7404 = vmatpush3.msra.mxu1 %v11275_v56 }
 0xa5e   : > { %7405 = vmatprep.subr.mxu1 %v11275_v56 }
 0xa5f   : > { %7406 = vmatpush3.msra.mxu1 %v11275_v56 }
 0xa60   : > { %7407 = vmatprep.subr.mxu1 %v11275_v56 }
 0xa61   : > { %7408 = vmatpush3.msra.mxu1 %v11275_v56 }
 0xa62   : > { %7453 = vmatprep.subr.msk.mxu1 %vm11197_vm12, %v11275_v56 }
 0xb00   : > { %v9458_v5 = vpop.f32.mrf.mxu0 }
 0xb01   : > { %11276 = vst [vmem:[#allocation23_spill] sm:$0xff] %v9458_v5 }
 0xb02   : > { %v7335_v31 = vpop.f32.mrf.mxu1  ;;  %v9460_v8 = vpop.f32.mrf.mxu0 }
 0xb03   : > { %v2480_v7 = vadd.f32 %v7335_v31, %v2384_v6  ;;  %11277 = vst [vmem:[#allocation24_spill] sm:$0xff] %v9460_v8 }
 0xb04   : > { %v2474_v28 = vpop.f32.mrf.mxu1 }
 0xb05   : > { %v2499_v60 = vmin.f32 %v2480_v7, 0.0  ;;  %v2475_v41 = vadd.f32 %v2474_v28, %v2379_v22  ;;  %v2495_v48 = vmax.f32 %v2480_v7, 0.0 }
 0xb06   : > { %v7338_v42 = vpop.f32.mrf.mxu1 }
 0xb07   : > { %v2504_v39 = vmul.f32 %v2502_v9, %v2499_v60  ;;  %v2498_v34 = vmin.f32 %v2475_v41, 0.0  ;;  %v2490_v16 = vadd.f32 %v7338_v42, %v2394_v12  ;;  %v2494_v55 = vmax.f32 %v2475_v41, 0.0 }
 0xb08   : > { %v2484_v52 = vpop.f32.mrf.mxu1 }
 0xb09   : > { %v2503_v13 = vmul.f32 %v2502_v9, %v2498_v34  ;;  %v2501_v17 = vmin.f32 %v2490_v16, 0.0  ;;  %v9438_v0 = vadd.f32 %v2504_v39, %v2495_v48  ;;  %v2485_v62 = vadd.f32 %v2484_v52, %v2389_v53 }
 0xb0a   : > { %v2497_v59 = vmax.f32 %v2490_v16, 0.0 }
 0xb0b   : > { %v2506_v61 = vmul.f32 %v2502_v9, %v2501_v17  ;;  %v9440_v2 = vadd.f32 %v2503_v13, %v2494_v55  ;;  %v2500_v4 = vmin.f32 %v2485_v62, 0.0  ;;  %v2607_v51 = vmul.f32 %v9438_v0, %v9438_v0 }
 0xb0c   : > { %v2496_v15 = vmax.f32 %v2485_v62, 0.0 }
 0xb0d   : > { %7371 = vmatprep.mubr.f32.mxu0 %v9440_v2  ;;  %v2606_v49 = vmul.f32 %v9440_v2, %v9440_v2  ;;  %v2505_v14 = vmul.f32 %v2502_v9, %v2500_v4  ;;  %v9448_v25 = vadd.f32 %v2506_v61, %v2497_v59 }
 0xb0e   : > { %7372 = vmatmul.mubr.f32.vlgmr.msra.gmra.mxu0 %v9438_v0 }
 0xb0f   : > { %7409 = vmatprep.mubr.f32.mxu1 %v2606_v49  ;;  %v9450_v50 = vadd.f32 %v2505_v14, %v2496_v15  ;;  %v2609_v1 = vmul.f32 %v9448_v25, %v9448_v25  ;;  %7416 = vmatpush3.msk.msra.mxu0 %vm11198_vm10, %v11275_v56  ;;  %vm11203_vm10 = vcmp.eq.s32.totalorder %v8781_v38, 2 }
 0xb10   : > { %7410 = vmatmul.mubr.f32.vlgmr.msra.gmra.mxu1 %v2607_v51  ;;  %7417 = vmatprep.subr.msk.mxu0 %vm11200_vm13, %v11275_v56 }
 0xb11   : > { %7374 = vmatprep.mubr.f32.mxu0 %v9450_v50  ;;  %v2608_v54 = vmul.f32 %v9450_v50, %v9450_v50  ;;  %7454 = vmatpush3.msk.msra.mxu1 %vm11197_vm12, %v11275_v56  ;;  %vm11204_vm12 = vcmp.eq.s32.totalorder %v8778_v37, 2 }
 0xb12   : > { %7375 = vmatmul.mubr.f32.gmra.mxu0 %v9448_v25  ;;  %7455 = vmatprep.subr.msk.mxu1 %vm11199_vm15, %v11275_v56 }
 0xb13   : > { %7412 = vmatprep.mubr.f32.mxu1 %v2608_v54  ;;  %7418 = vmatpush3.msk.msra.mxu0 %vm11200_vm13, %v11275_v56  ;;  %vm11205_vm13 = vcmp.eq.s32.totalorder %v8806_v43, 2 }
 0xb14   : > { %7413 = vmatmul.mubr.f32.gmra.mxu1 %v2609_v1  ;;  %7419 = vmatprep.subr.msk.mxu0 %vm11202_vm14, %v11275_v56 }
 0xb15   : > { %7456 = vmatpush3.msk.msra.mxu1 %vm11199_vm15, %v11275_v56  ;;  %7420 = vmatpush3.msk.msra.mxu0 %vm11202_vm14, %v11275_v56  ;;  %vm11206_vm15 = vcmp.eq.s32.totalorder %v8803_v40, 2  ;;  %vm11207_vm14 = vcmp.eq.s32.totalorder %v8826_v45, 2 }
 0xb16   : > { %7457 = vmatprep.subr.msk.mxu1 %vm11201_vm9, %v11275_v56  ;;  %7421 = vmatprep.subr.msk.mxu0 %vm11204_vm12, %v11275_v56 }
 0xb17   : > { %7458 = vmatpush3.msk.msra.mxu1 %vm11201_vm9, %v11275_v56  ;;  %7422 = vmatpush3.msk.msra.mxu0 %vm11204_vm12, %v11275_v56  ;;  %vm11208_vm9 = vcmp.eq.s32.totalorder %v8823_v44, 2  ;;  %vm11209_vm12 = vcmp.eq.s32.totalorder %v8846_v47, 2 }
 0xb18   : > { %7459 = vmatprep.subr.msk.mxu1 %vm11203_vm10, %v11275_v56  ;;  %7423 = vmatprep.subr.msk.mxu0 %vm11206_vm15, %v11275_v56 }
 0xb19   : > { %7460 = vmatpush3.msk.msra.mxu1 %vm11203_vm10, %v11275_v56  ;;  %7424 = vmatpush3.msk.msra.mxu0 %vm11206_vm15, %v11275_v56  ;;  %vm11210_vm10 = vcmp.eq.s32.totalorder %v8843_v46, 2  ;;  %vm11211_vm15 = vcmp.eq.s32.totalorder %v8909_v58, 2 }
 0xb1a   : > { %7461 = vmatprep.subr.msk.mxu1 %vm11205_vm13, %v11275_v56  ;;  %7425 = vmatprep.subr.msk.mxu0 %vm11208_vm9, %v11275_v56 }
 0xb1b   : > { %7462 = vmatpush3.msk.msra.mxu1 %vm11205_vm13, %v11275_v56  ;;  %7426 = vmatpush3.msk.msra.mxu0 %vm11208_vm9, %v11275_v56  ;;  %vm11212_vm13 = vcmp.eq.s32.totalorder %v8906_v57, 2  ;;  %vm11217_vm9 = vcmp.eq.s32.totalorder %v8927_v3, 2 }
 0xb1c   : > { %7463 = vmatprep.subr.msk.mxu1 %vm11207_vm14, %v11275_v56  ;;  %7427 = vmatprep.subr.msk.mxu0 %vm11210_vm10, %v11275_v56 }
 0xb1d   : > { %7464 = vmatpush3.msk.msra.mxu1 %vm11207_vm14, %v11275_v56  ;;  %7428 = vmatpush3.msk.msra.mxu0 %vm11210_vm10, %v11275_v56  ;;  %vm810_vm14 = vcmp.eq.s32.totalorder %v8924_v63, 2  ;;  %vm11215_vm10 = vcmp.eq.s32.totalorder %v8951_v11, 2 }
 0xb1e   : > { %7465 = vmatprep.subr.msk.mxu1 %vm11209_vm12, %v11275_v56  ;;  %7429 = vmatprep.subr.msk.mxu0 %vm11212_vm13, %v11275_v56 }
 0xb1f   : > { %7466 = vmatpush3.msk.msra.mxu1 %vm11209_vm12, %v11275_v56  ;;  %7430 = vmatpush3.msk.msra.mxu0 %vm11212_vm13, %v11275_v56  ;;  %vm11216_vm12 = vcmp.eq.s32.totalorder %v8948_v10, 2  ;;  %vm11213_vm13 = vcmp.eq.s32.totalorder %v8984_v19, 2 }
 0xb20   : > { %7467 = vmatprep.subr.msk.mxu1 %vm11211_vm15, %v11275_v56  ;;  %7431 = vmatprep.subr.msk.mxu0 %vm810_vm14, %v11275_v56 }
 0xb21   : > { %7468 = vmatpush3.msk.msra.mxu1 %vm11211_vm15, %v11275_v56  ;;  %7432 = vmatpush3.msk.msra.mxu0 %vm810_vm14, %v11275_v56  ;;  %vm11214_vm15 = vcmp.eq.s32.totalorder %v8981_v18, 2 }
 0xb22   : > { %7469 = vmatprep.subr.msk.mxu1 %vm11217_vm9, %v11275_v56  ;;  %7433 = vmatprep.subr.msk.mxu0 %vm11216_vm12, %v11275_v56 }
 0xb23   : > { %7470 = vmatpush3.msk.msra.mxu1 %vm11217_vm9, %v11275_v56  ;;  %7434 = vmatpush3.msk.msra.mxu0 %vm11216_vm12, %v11275_v56 }
 0xb24   : > { %7471 = vmatprep.subr.msk.mxu1 %vm11215_vm10, %v11275_v56  ;;  %7435 = vmatprep.subr.msk.mxu0 %vm11214_vm15, %v11275_v56 }
 0xb25   : > { %7472 = vmatpush3.msk.msra.mxu1 %vm11215_vm10, %v11275_v56  ;;  %7436 = vmatpush3.msk.msra.mxu0 %vm11214_vm15, %v11275_v56  ;;  %vm11219_vm15 = vcmp.eq.s32.totalorder %v8990_v23, 2  ;;  %vm11221_vm10 = vcmp.eq.s32.totalorder %v8993_v24, 2 }
 0xb26   : > { %7473 = vmatprep.subr.msk.mxu1 %vm11213_vm13, %v11275_v56 }
 0xb27   : > { %7474 = vmatpush3.msk.msra.mxu1 %vm11213_vm13, %v11275_v56  ;;  %vm11218_vm13 = vcmp.eq.s32.totalorder %v8987_v20, 2 }
 0xb28   : > { %7437 = vmatprep.subr.msk.mxu0 %vm11218_vm13, %v11275_v56  ;;  %7475 = vmatprep.subr.msk.mxu1 %vm11219_vm15, %v11275_v56 }
 0xb29   : > { %7438 = vmatpush3.msk.msra.mxu0 %vm11218_vm13, %v11275_v56  ;;  %7476 = vmatpush3.msk.msra.mxu1 %vm11219_vm15, %v11275_v56 }
 0xb2a   : > { %7439 = vmatprep.subr.msk.mxu0 %vm11221_vm10, %v11275_v56 }
 0xb2b   : > { %7440 = vmatpush3.msk.msra.mxu0 %vm11221_vm10, %v11275_v56 }
 0xbce   : > { %v7373_v21 = vpop.f32.mrf.mxu0 }
 0xbcf   : > { %v2696_v28 = vsel %vm1057_vm0, %v7373_v21, 0.0 }
 0xbd0   : > { %v2587_v6 = vpop.f32.mrf.mxu0  ;;  %v7411_v31 = vpop.f32.mrf.mxu1 }
 0xbd1   : > { %v2695_v22 = vsel %vm1057_vm0, %v2587_v6, 0.0  ;;  %v2713_v39 = vsel %vm1057_vm0, %v7411_v31, 0.0 }
 0xbd2   : > { %v2676_v7 = vpop.f32.mrf.mxu1  ;;  %v7376_v9 = vpop.f32.mrf.mxu0  ;;  %v2697_v41 = vadd.f32 %v2696_v28, %v2695_v22 }
 0xbd3   : > { %v2712_v60 = vsel %vm1057_vm0, %v2676_v7, 0.0  ;;  %v2700_v53 = vsel %vm1057_vm0, %v7376_v9, 0.0 }
 0xbd4   : > { %v2597_v12 = vpop.f32.mrf.mxu0  ;;  %v7414_v42 = vpop.f32.mrf.mxu1  ;;  %v2714_v16 = vadd.f32 %v2713_v39, %v2712_v60 }
 0xbd5   : > { %v2698_v34 = vsel %vm1057_vm0, %v2597_v12, 0.0  ;;  %v2717_v62 = vsel %vm1057_vm0, %v7414_v42, 0.0 }
 0xbd6   : > { %v2699_v48 = vadd.f32 %v2698_v34, %v2697_v41  ;;  %v2686_v52 = vpop.f32.mrf.mxu1 }
 0xbd7   : > { %v2715_v55 = vsel %vm1057_vm0, %v2686_v52, 0.0  ;;  %v6158_v52 = vld [vmem:[%s11131_s8 + $0x20] sm:$0xff] }
 0xbd8   : > { %v2716_v13 = vadd.f32 %v2715_v55, %v2714_v16  ;;  %v2701_v17 = vadd.f32 %v2700_v53, %v2699_v48  ;;  %v6159_v48 = vld [vmem:[%s11131_s8 + $0x28] sm:$0xff] }
 0xbda   : > { %2702 = vadd.xlane.f32.xlu0 %v2701_v17  ;;  %v2718_v61 = vadd.f32 %v2717_v62, %v2716_v13  ;;  %v6161_v17 = vld [vmem:[%s11131_s8 + $0x38] sm:$0xff] }
 0xbdb   : > { %v11278_v62 = vld [vmem:[#allocation16_spill] sm:$0xff] }
 0xbdc   : > { %2719 = vadd.xlane.f32.xlu1 %v2718_v61  ;;  %vm11220_vm12 = vcmp.eq.s32.totalorder %v11278_v62, 2  ;;  %v6160_v61 = vld [vmem:[%s11131_s8 + $0x30] sm:$0xff] }
 0xbdd   : > { %7477 = vmatprep.subr.msk.mxu1 %vm11220_vm12, %v11275_v56 }
 0xbde   : > { %7478 = vmatpush3.msk.msra.mxu1 %vm11220_vm12, %v11275_v56 }
 0xc63   : > { %v2703_v4 = vpop.xlane.xlu0 %2702 }
 0xc64   : > { %v2704_v59 = vrot.slane %v2703_v4, 4 }
 0xc65   : > { %v2720_v49 = vpop.xlane.xlu1 %2719 }
 0xc66   : > { %v2705_v51 = vadd.f32 %v2704_v59, %v2703_v4  ;;  %v2721_v15 = vrot.slane %v2720_v49, 4  ;;  %v11279_v4 = vld [vmem:[#allocation17_spill] sm:$0xff] }
 0xc67   : > { %vm11222_vm9 = vcmp.eq.s32.totalorder %v11279_v4, 2 }
 0xc68   : > { %v2722_v14 = vadd.f32 %v2721_v15, %v2720_v49  ;;  %v2706_v54 = vrot.slane %v2705_v51, 2  ;;  %v11280_v49 = vld [vmem:[#allocation18_spill] sm:$0xff]  ;;  %7441 = vmatprep.subr.msk.mxu0 %vm11222_vm9, %v11275_v56 }
 0xc69   : > { %vm853_vm13 = vcmp.eq.s32.totalorder %v11280_v49, 2  ;;  %7442 = vmatpush3.msk.msra.mxu0 %vm11222_vm9, %v11275_v56 }
 0xc6a   : > { %v2707_v1 = vadd.f32 %v2706_v54, %v2705_v51  ;;  %v2723_v21 = vrot.slane %v2722_v14, 2  ;;  %v11281_v54 = vld [vmem:[#allocation19_spill] sm:$0xff]  ;;  %7479 = vmatprep.subr.msk.mxu1 %vm853_vm13, %v11275_v56 }
 0xc6b   : > { %vm804_vm15 = vcmp.eq.s32.totalorder %v11281_v54, 2  ;;  %7480 = vmatpush3.msk.msra.mxu1 %vm853_vm13, %v11275_v56 }
 0xc6c   : > { %v2708_v6 = vrot.slane %v2707_v1, 1  ;;  %v2724_v31 = vadd.f32 %v2723_v21, %v2722_v14  ;;  %v6162_v21 = vld [vmem:[%s11132_s9 + $0x20] sm:$0xff]  ;;  %7443 = vmatprep.subr.msk.mxu0 %vm804_vm15, %v11275_v56 }
 0xc6d   : > { %7444 = vmatpush3.msk.msra.mxu0 %vm804_vm15, %v11275_v56 }
 0xc6e   : > { %v2709_v22 = vadd.f32 %v2708_v6, %v2707_v1  ;;  %v2725_v7 = vrot.slane %v2724_v31, 1  ;;  %v6163_v1 = vld [vmem:[%s11132_s9 + $0x28] sm:$0xff]  ;;  %v11282_v6 = vld [vmem:[#allocation20_spill] sm:$0xff] }
 0xc6f   : > { %vm852_vm12 = vcmp.eq.s32.totalorder %v11282_v6, 2 }
 0xc70   : > { %8104 = vpush %v2709_v22  ;;  %v2726_v9 = vadd.f32 %v2725_v7, %v2724_v31  ;;  %v11283_v31 = vld [vmem:[#allocation21_spill] sm:$0xff]  ;;  %7481 = vmatprep.subr.msk.mxu1 %vm852_vm12, %v11275_v56 }
 0xc71   : > { %vm803_vm10 = vcmp.eq.s32.totalorder %v11283_v31, 2  ;;  %7482 = vmatpush3.msk.msra.mxu1 %vm852_vm12, %v11275_v56 }
 0xc72   : > { %8106 = vpush %v2726_v9  ;;  %7445 = vmatprep.subr.msk.mxu0 %vm803_vm10, %v11275_v56 }
 0xc73   : > { %7446 = vmatpush3.msk.msra.mxu0 %vm803_vm10, %v11275_v56 }
 0xc74   : > { %7491 = vmatprep.subr.mxu0 %v11275_v56 }
 0xca1   : > { %s8105_s27 = spop %8104 }
 0xca2   : > { %v2711_v28 = vstv %s8105_s27  ;;  %s6214_s27 = sld [smem:[#allocation6 + $0x1]] }
 0xca3   : > { %v2729_v60 = vmul.f32 0.00024414063, %v2711_v28  ;;  %s8107_s12 = spop %8106 }
 0xca4   : > { %v2728_v41 = vstv %s8107_s12 }
 0xca5   : > { %v2730_v12 = vmul.f32 0.00024414063, %v2728_v41  ;;  %v2731_v42 = vmul.f32 %v2729_v60, %v2729_v60  ;;  %v11284_v41 = vld [vmem:[#allocation22_spill] sm:$0xff] }
 0xca6   : > { %vm851_vm9 = vcmp.eq.s32.totalorder %v11284_v41, 2 }
 0xca7   : > { %v2732_v39 = vsub.f32 %v2730_v12, %v2731_v42  ;;  %v6165_v12 = vld [vmem:[%s11132_s9 + $0x38] sm:$0xff]  ;;  %v6164_v42 = vld [vmem:[%s11132_s9 + $0x30] sm:$0xff]  ;;  %7483 = vmatprep.subr.msk.mxu1 %vm851_vm9, %v11275_v56 }
 0xca8   : > { %7484 = vmatpush3.msk.msra.mxu1 %vm851_vm9, %v11275_v56 }
 0xca9   : > { %v2733_v34 = vmax.f32 %v2732_v39, 0.0  ;;  %7529 = vmatprep.subr.mxu1 %v11275_v56 }
 0xcab   : > { %v2734_v16 = vadd.f32 1e-08, %v2733_v34  ;;  %v6202_v34 = vld [vmem:[%s11133_s10 + $0x80] sm:$0xff] }
 0xcad   : > { %8200 = vrsqrt.f32 %v2734_v16  ;;  %v6198_v16 = vld [vmem:[%s11133_s10 + $0x60] sm:$0xff] }
 0xcba   : > { %v8201_v53 = vpop.eup %8200 }
 0xcbb   : > { %v2737_v55 = vmul.f32 %v8201_v53, %v6159_v48  ;;  %v2736_v13 = vmul.f32 %v8201_v53, %v6158_v52  ;;  %v2739_v59 = vmul.f32 %v8201_v53, %v6161_v17  ;;  %v2738_v51 = vmul.f32 %v8201_v53, %v6160_v61  ;;  %v6203_v48 = vld [vmem:[%s11133_s10 + $0x88] sm:$0xff]  ;;  %v6200_v17 = vld [vmem:[%s11133_s10 + $0x70] sm:$0xff]  ;;  %v6205_v61 = vld [vmem:[%s11133_s10 + $0x98] sm:$0xff] }
 0xcbc   : > { %v6199_v52 = vld [vmem:[%s11133_s10 + $0x68] sm:$0xff] }
 0xcbd   : > { %2755 = vperm.xlu1 %8192, %v2737_v55   ;;  %2750 = vperm.xlu0 %8193, %v2736_v13   ;;  %v2741_v15 = vmul.f32 %v2737_v55, %v2729_v60  ;;  %v2740_v14 = vmul.f32 %v2736_v13, %v2729_v60  ;;  %v2743_v22 = vmul.f32 %v2739_v59, %v2729_v60  ;;  %v6207_v53 = vld [vmem:[%s11133_s10 + $0xa8] sm:$0xff]  ;;  %v6206_v55 = vld [vmem:[%s11133_s10 + $0xa0] sm:$0xff]  ;;  %v6204_v13 = vld [vmem:[%s11133_s10 + $0x90] sm:$0xff] }
 0xcbe   : > { %v2742_v28 = vmul.f32 %v2738_v51, %v2729_v60 }
 0xcbf   : > { %v2745_v7 = vsub.f32 %v6163_v1, %v2741_v15  ;;  %v2744_v9 = vsub.f32 %v6162_v21, %v2740_v14  ;;  %v2747_v60 = vsub.f32 %v6165_v12, %v2743_v22  ;;  %v6208_v15 = vld [vmem:[%s11133_s10 + $0xb0] sm:$0xff]  ;;  %v6211_v14 = vld [vmem:[%s11134_s11 + $0x28] sm:$0xff]  ;;  %v6209_v1 = vld [vmem:[%s11133_s10 + $0xb8] sm:$0xff] }
 0xcc0   : > { %v2746_v39 = vsub.f32 %v6164_v42, %v2742_v28  ;;  %v6213_v21 = vld [vmem:[%s11134_s11 + $0x38] sm:$0xff]  ;;  %v6212_v22 = vld [vmem:[%s11134_s11 + $0x30] sm:$0xff] }
 0xcc1   : > { %2765 = vperm.xlu1 %8192, %v2739_v59   ;;  %2760 = vperm.xlu0 %8193, %v2738_v51   ;;  %v6201_v59 = vld [vmem:[%s11133_s10 + $0x78] sm:$0xff]  ;;  %v6210_v51 = vld [vmem:[%s11134_s11 + $0x20] sm:$0xff] }
 0xcc5   : > { %2779 = vperm.xlu1 %8192, %v2745_v7   ;;  %2774 = vperm.xlu0 %8193, %v2744_v9  }
 0xcc9   : > { %2789 = vperm.xlu1 %8192, %v2747_v60   ;;  %2784 = vperm.xlu0 %8193, %v2746_v39  }
 0xccd   : > { %3002 = vperm.xlu1 %8192, %v6202_v34   ;;  %2973 = vperm.xlu0 %8193, %v6198_v16  }
 0xcd1   : > { %3007 = vperm.xlu1 %8192, %v6203_v48   ;;  %2978 = vperm.xlu0 %8193, %v6199_v52  }
 0xcd5   : > { %3040 = vperm.xlu1 %8192, %v6207_v53   ;;  %3035 = vperm.xlu0 %8193, %v6206_v55  }
 0xcd9   : > { %3012 = vperm.xlu1 %8192, %v6204_v13   ;;  %2983 = vperm.xlu0 %8193, %v6200_v17  }
 0xcdd   : > { %3017 = vperm.xlu1 %8192, %v6205_v61   ;;  %2988 = vperm.xlu0 %8193, %v6201_v59  }
 0xce1   : > { %3068 = vperm.xlu1 %8192, %v6210_v51   ;;  %3045 = vperm.xlu0 %8193, %v6208_v15  }
 0xce5   : > { %3073 = vperm.xlu1 %8192, %v6211_v14   ;;  %3050 = vperm.xlu0 %8193, %v6209_v1  }
 0xce9   : > { %3083 = vperm.xlu1 %8192, %v6213_v21   ;;  %3078 = vperm.xlu0 %8193, %v6212_v22  }
 0xd38   : > { %v2756_v7 = vpop.permute.xlu1 %2755  ;;  %v2751_v9 = vpop.permute.xlu0 %2750 }
 0xd39   : > { %v2769_v42 = vmul.f32 %v2756_v7, %v9438_v0  ;;  %v2768_v60 = vmul.f32 %v2751_v9, %v9440_v2 }
 0xd3c   : > { %v2766_v28 = vpop.permute.xlu1 %2765  ;;  %v2761_v12 = vpop.permute.xlu0 %2760 }
 0xd3d   : > { %v2771_v52 = vmul.f32 %v2766_v28, %v9448_v25  ;;  %v2770_v53 = vmul.f32 %v2761_v12, %v9450_v50 }
 0xd40   : > { %v2780_v39 = vpop.permute.xlu1 %2779  ;;  %v2775_v34 = vpop.permute.xlu0 %2774 }
 0xd41   : > { %v9770_v16 = vadd.f32 %v2780_v39, %v2769_v42  ;;  %v9772_v48 = vadd.f32 %v2775_v34, %v2768_v60 }
 0xd43   : > { %7447 = vmatprep.mubr.f32.mxu0 %v9772_v48  ;;  %7485 = vmatprep.mubr.f32.mxu1 %v9772_v48 }
 0xd44   : > { %v2790_v55 = vpop.permute.xlu1 %2789  ;;  %7448 = vmatmul.mubr.f32.vlgmr.msra.gmra.mxu0 %v9770_v16  ;;  %7486 = vmatmul.mubr.f32.vlgmr.msra.gmra.mxu1 %v9770_v16  ;;  %v2785_v0 = vpop.permute.xlu0 %2784 }
 0xd45   : > { %v9780_v2 = vadd.f32 %v2790_v55, %v2771_v52  ;;  %v9782_v13 = vadd.f32 %v2785_v0, %v2770_v53  ;;  %7492 = vmatpush3.msra.mxu0 %v11275_v56  ;;  %7530 = vmatpush3.msra.mxu1 %v11275_v56 }
 0xd46   : > { %7493 = vmatprep.subr.mxu0 %v11275_v56  ;;  %7531 = vmatprep.subr.mxu1 %v11275_v56 }
 0xd47   : > { %7450 = vmatprep.mubr.f32.mxu0 %v9782_v13  ;;  %7488 = vmatprep.mubr.f32.mxu1 %v9782_v13 }
 0xd48   : > { %7451 = vmatmul.mubr.f32.gmra.mxu0 %v9780_v2  ;;  %7489 = vmatmul.mubr.f32.gmra.mxu1 %v9780_v2  ;;  %v3003_v25 = vpop.permute.xlu1 %3002  ;;  %v2974_v50 = vpop.permute.xlu0 %2973 }
 0xd49   : > { %7494 = vmatpush3.msra.mxu0 %v11275_v56  ;;  %7532 = vmatpush3.msra.mxu1 %v11275_v56  ;;  %v3020_v34 = vmul.f32 %v3003_v25, %v9772_v48 }
 0xd4a   : > { %7495 = vmatprep.subr.mxu0 %v11275_v56  ;;  %7533 = vmatprep.subr.mxu1 %v11275_v56 }
 0xd4b   : > { %7496 = vmatpush3.msra.mxu0 %v11275_v56  ;;  %7534 = vmatpush3.msra.mxu1 %v11275_v56 }
 0xd4c   : > { %7497 = vmatprep.subr.mxu0 %v11275_v56  ;;  %7535 = vmatprep.subr.mxu1 %v11275_v56  ;;  %v3008_v17 = vpop.permute.xlu1 %3007  ;;  %v2979_v61 = vpop.permute.xlu0 %2978 }
 0xd4d   : > { %7498 = vmatpush3.msra.mxu0 %v11275_v56  ;;  %7536 = vmatpush3.msra.mxu1 %v11275_v56  ;;  %v3021_v12 = vmul.f32 %v3008_v17, %v9770_v16 }
 0xd4e   : > { %7499 = vmatprep.subr.mxu0 %v11275_v56  ;;  %7537 = vmatprep.subr.mxu1 %v11275_v56 }
 0xd4f   : > { %7500 = vmatpush3.msra.mxu0 %v11275_v56  ;;  %7538 = vmatpush3.msra.mxu1 %v11275_v56 }
 0xd50   : > { %7501 = vmatprep.subr.mxu0 %v11275_v56  ;;  %7539 = vmatprep.subr.mxu1 %v11275_v56  ;;  %v3041_v59 = vpop.permute.xlu1 %3040  ;;  %v3036_v51 = vpop.permute.xlu0 %3035 }
 0xd51   : > { %7502 = vmatpush3.msra.mxu0 %v11275_v56  ;;  %7540 = vmatpush3.msra.mxu1 %v11275_v56 }
 0xd52   : > { %7503 = vmatprep.subr.mxu0 %v11275_v56  ;;  %7541 = vmatprep.subr.mxu1 %v11275_v56 }
 0xd53   : > { %7504 = vmatpush3.msra.mxu0 %v11275_v56  ;;  %7542 = vmatpush3.msra.mxu1 %v11275_v56 }
 0xd54   : > { %7505 = vmatprep.subr.mxu0 %v11275_v56  ;;  %7543 = vmatprep.subr.mxu1 %v11275_v56  ;;  %v3013_v15 = vpop.permute.xlu1 %3012  ;;  %v2984_v14 = vpop.permute.xlu0 %2983 }
 0xd55   : > { %7506 = vmatpush3.msra.mxu0 %v11275_v56  ;;  %7544 = vmatpush3.msra.mxu1 %v11275_v56  ;;  %v3022_v25 = vmul.f32 %v3013_v15, %v9782_v13 }
 0xd56   : > { %7507 = vmatprep.subr.mxu0 %v11275_v56  ;;  %7545 = vmatprep.subr.mxu1 %v11275_v56 }
 0xd57   : > { %7508 = vmatpush3.msra.mxu0 %v11275_v56  ;;  %7546 = vmatpush3.msra.mxu1 %v11275_v56 }
 0xd58   : > { %7509 = vmatprep.subr.mxu0 %v11275_v56  ;;  %7547 = vmatprep.subr.mxu1 %v11275_v56  ;;  %v3018_v1 = vpop.permute.xlu1 %3017  ;;  %v2989_v21 = vpop.permute.xlu0 %2988 }
 0xd59   : > { %7510 = vmatpush3.msra.mxu0 %v11275_v56  ;;  %7548 = vmatpush3.msra.mxu1 %v11275_v56  ;;  %v3023_v8 = vmul.f32 %v3018_v1, %v9780_v2 }
 0xd5a   : > { %7511 = vmatprep.subr.mxu0 %v11275_v56  ;;  %7549 = vmatprep.subr.mxu1 %v11275_v56 }
 0xd5b   : > { %7512 = vmatpush3.msra.mxu0 %v11275_v56  ;;  %7550 = vmatpush3.msra.mxu1 %v11275_v56 }
 0xd5c   : > { %7513 = vmatprep.subr.mxu0 %v11275_v56  ;;  %7551 = vmatprep.subr.mxu1 %v11275_v56  ;;  %v3069_v22 = vpop.permute.xlu1 %3068  ;;  %v3046_v7 = vpop.permute.xlu0 %3045 }
 0xd5d   : > { %7514 = vmatpush3.msra.mxu0 %v11275_v56  ;;  %7552 = vmatpush3.msra.mxu1 %v11275_v56 }
 0xd5e   : > { %7515 = vmatprep.subr.mxu0 %v11275_v56  ;;  %7553 = vmatprep.subr.mxu1 %v11275_v56 }
 0xd5f   : > { %7516 = vmatpush3.msra.mxu0 %v11275_v56  ;;  %7554 = vmatpush3.msra.mxu1 %v11275_v56 }
 0xd60   : > { %7517 = vmatprep.subr.mxu0 %v11275_v56  ;;  %7555 = vmatprep.subr.mxu1 %v11275_v56  ;;  %v3074_v52 = vpop.permute.xlu1 %3073  ;;  %v3051_v31 = vpop.permute.xlu0 %3050 }
 0xd61   : > { %7518 = vmatpush3.msra.mxu0 %v11275_v56  ;;  %7556 = vmatpush3.msra.mxu1 %v11275_v56 }
 0xd62   : > { %7519 = vmatprep.subr.mxu0 %v11275_v56  ;;  %7557 = vmatprep.subr.mxu1 %v11275_v56 }
 0xd63   : > { %7520 = vmatpush3.msra.mxu0 %v11275_v56  ;;  %7558 = vmatpush3.msra.mxu1 %v11275_v56 }
 0xd64   : > { %7521 = vmatprep.subr.mxu0 %v11275_v56  ;;  %7559 = vmatprep.subr.mxu1 %v11275_v56  ;;  %v3084_v1 = vpop.permute.xlu1 %3083 }
 0xd65   : > { %7522 = vmatpush3.msra.mxu0 %v11275_v56  ;;  %7560 = vmatpush3.msra.mxu1 %v11275_v56 }
 0xe04   : > { %v7449_v9 = vpop.f32.mrf.mxu0  ;;  %v7487_v28 = vpop.f32.mrf.mxu1 }
 0xe05   : > { %v2992_v42 = vmul.f32 %v7449_v9, %v2979_v61  ;;  %v3054_v55 = vmul.f32 %v7487_v28, %v3041_v59  ;;  %v3099_v59 = vstv %s6214_s27 }
 0xe06   : > { %v2862_v60 = vpop.f32.mrf.mxu0  ;;  %v2947_v39 = vpop.f32.mrf.mxu1 }
 0xe07   : > { %v3025_v53 = vadd.f32 %v3021_v12, %v2992_v42  ;;  %v2991_v0 = vmul.f32 %v2974_v50, %v2862_v60  ;;  %v3053_v49 = vmul.f32 %v3036_v51, %v2947_v39 }
 0xe08   : > { %v7452_v5 = vpop.f32.mrf.mxu0  ;;  %v7490_v41 = vpop.f32.mrf.mxu1 }
 0xe09   : > { %v3058_v6 = vadd.f32 %v3054_v55, %v3025_v53  ;;  %v3024_v54 = vadd.f32 %v3020_v34, %v2991_v0  ;;  %v2994_v4 = vmul.f32 %v7452_v5, %v2989_v21  ;;  %v3056_v62 = vmul.f32 %v7490_v41, %v3051_v31  ;;  %v3079_v41 = vpop.permute.xlu0 %3078 }
 0xe0a   : > { %v2872_v16 = vpop.f32.mrf.mxu0  ;;  %v2957_v48 = vpop.f32.mrf.mxu1 }
 0xe0b   : > { %v3087_v17 = vadd.f32 %v3074_v52, %v3058_v6  ;;  %v3057_v61 = vadd.f32 %v3053_v49, %v3024_v54  ;;  %v3027_v9 = vadd.f32 %v3023_v8, %v2994_v4  ;;  %v2993_v24 = vmul.f32 %v2984_v14, %v2872_v16 }
 0xe0c   : > { %v3055_v42 = vmul.f32 %v3046_v7, %v2957_v48 }
 0xe0d   : > { %v3096_v50 = vmin.f32 %v3087_v17, 0.0  ;;  %v3086_v28 = vadd.f32 %v3069_v22, %v3057_v61  ;;  %v3060_v2 = vadd.f32 %v3056_v62, %v3027_v9  ;;  %v3026_v12 = vadd.f32 %v3022_v25, %v2993_v24 }
 0xe0e   : > { %v3092_v5 = vmax.f32 %v3087_v17, 0.0 }
 0xe0f   : > { %v3101_v60 = vmul.f32 %v3099_v59, %v3096_v50  ;;  %v3095_v34 = vmin.f32 %v3086_v28, 0.0  ;;  %v3089_v51 = vadd.f32 %v3084_v1, %v3060_v2  ;;  %v3059_v31 = vadd.f32 %v3055_v42, %v3026_v12 }
 0xe10   : > { %v3091_v49 = vmax.f32 %v3086_v28, 0.0 }
 0xe11   : > { %v3098_v6 = vmin.f32 %v3089_v51, 0.0  ;;  %v3100_v8 = vmul.f32 %v3099_v59, %v3095_v34  ;;  %v9854_v4 = vadd.f32 %v3101_v60, %v3092_v5  ;;  %v3088_v54 = vadd.f32 %v3079_v41, %v3059_v31 }
 0xe12   : > { %v3094_v62 = vmax.f32 %v3089_v51, 0.0 }
 0xe13   : > { %v9856_v13 = vadd.f32 %v3100_v8, %v3091_v49  ;;  %v3103_v15 = vmul.f32 %v3099_v59, %v3098_v6  ;;  %v3097_v14 = vmin.f32 %v3088_v54, 0.0  ;;  %v3204_v21 = vmul.f32 %v9854_v4, %v9854_v4 }
 0xe14   : > { %v3093_v22 = vmax.f32 %v3088_v54, 0.0 }
 0xe15   : > { %7523 = vmatprep.mubr.f32.mxu0 %v9856_v13  ;;  %v3203_v24 = vmul.f32 %v9856_v13, %v9856_v13  ;;  %v3102_v7 = vmul.f32 %v3099_v59, %v3097_v14  ;;  %v9864_v39 = vadd.f32 %v3103_v15, %v3094_v62 }
 0xe16   : > { %7524 = vmatmul.mubr.f32.vlgmr.msra.gmra.mxu0 %v9854_v4 }
 0xe17   : > { %7561 = vmatprep.mubr.f32.mxu1 %v3203_v24  ;;  %v9866_v52 = vadd.f32 %v3102_v7, %v3093_v22  ;;  %v3206_v55 = vmul.f32 %v9864_v39, %v9864_v39 }
 0xe18   : > { %7562 = vmatmul.mubr.f32.vlgmr.msra.gmra.mxu1 %v3204_v21 }
 0xe19   : > { %7526 = vmatprep.mubr.f32.mxu0 %v9866_v52  ;;  %v3205_v53 = vmul.f32 %v9866_v52, %v9866_v52 }
 0xe1a   : > { %7527 = vmatmul.mubr.f32.gmra.mxu0 %v9864_v39 }
 0xe1b   : > { %7564 = vmatprep.mubr.f32.mxu1 %v3205_v53 }
 0xe1c   : > { %7565 = vmatmul.mubr.f32.gmra.mxu1 %v3206_v55 }
 0xed6   : > { %v7525_v0 = vpop.f32.mrf.mxu0 }
 0xed7   : > { %v3293_v25 = vsel %vm1057_vm0, %v7525_v0, 0.0 }
 0xed8   : > { %v3184_v16 = vpop.f32.mrf.mxu0  ;;  %v7563_v17 = vpop.f32.mrf.mxu1 }
 0xed9   : > { %v3292_v61 = vsel %vm1057_vm0, %v3184_v16, 0.0  ;;  %v3310_v1 = vsel %vm1057_vm0, %v7563_v17, 0.0 }
 0xeda   : > { %v3273_v9 = vpop.f32.mrf.mxu1  ;;  %v7528_v48 = vpop.f32.mrf.mxu0  ;;  %v3294_v50 = vadd.f32 %v3293_v25, %v3292_v61 }
 0xedb   : > { %v3309_v59 = vsel %vm1057_vm0, %v3273_v9, 0.0  ;;  %v3297_v51 = vsel %vm1057_vm0, %v7528_v48, 0.0 }
 0xedc   : > { %v3194_v28 = vpop.f32.mrf.mxu0  ;;  %v7566_v2 = vpop.f32.mrf.mxu1  ;;  %v3311_v42 = vadd.f32 %v3310_v1, %v3309_v59  ;;  %v6218_v1 = vld [vmem:[%s11136_s13 + $0x38] sm:$0xff] }
 0xedd   : > { %v3295_v12 = vsel %vm1057_vm0, %v3194_v28, 0.0  ;;  %v3314_v6 = vsel %vm1057_vm0, %v7566_v2, 0.0 }
 0xede   : > { %v3296_v60 = vadd.f32 %v3295_v12, %v3294_v50  ;;  %v3283_v34 = vpop.f32.mrf.mxu1  ;;  %v6217_v12 = vld [vmem:[%s11136_s13 + $0x30] sm:$0xff] }
 0xedf   : > { %v3312_v5 = vsel %vm1057_vm0, %v3283_v34, 0.0 }
 0xee0   : > { %v3313_v31 = vadd.f32 %v3312_v5, %v3311_v42  ;;  %v3298_v41 = vadd.f32 %v3297_v51, %v3296_v60  ;;  %v6222_v51 = vld [vmem:[%s11137_s14 + $0x38] sm:$0xff]  ;;  %v6216_v5 = vld [vmem:[%s11136_s13 + $0x28] sm:$0xff] }
 0xee2   : > { %3299 = vadd.xlane.f32.xlu0 %v3298_v41  ;;  %v3315_v49 = vadd.f32 %v3314_v6, %v3313_v31  ;;  %v6215_v31 = vld [vmem:[%s11136_s13 + $0x20] sm:$0xff] }
 0xee4   : > { %3316 = vadd.xlane.f32.xlu1 %v3315_v49 }
 0xf6b   : > { %v3300_v8 = vpop.xlane.xlu0 %3299 }
 0xf6c   : > { %v3301_v54 = vrot.slane %v3300_v8, 4 }
 0xf6d   : > { %v3317_v15 = vpop.xlane.xlu1 %3316 }
 0xf6e   : > { %v3302_v14 = vadd.f32 %v3301_v54, %v3300_v8  ;;  %v3318_v24 = vrot.slane %v3317_v15, 4 }
 0xf70   : > { %v3319_v62 = vadd.f32 %v3318_v24, %v3317_v15  ;;  %v3303_v21 = vrot.slane %v3302_v14, 2  ;;  %v6221_v15 = vld [vmem:[%s11137_s14 + $0x30] sm:$0xff] }
 0xf72   : > { %v3304_v22 = vadd.f32 %v3303_v21, %v3302_v14  ;;  %v3320_v7 = vrot.slane %v3319_v62, 2  ;;  %v6220_v21 = vld [vmem:[%s11137_s14 + $0x28] sm:$0xff] }
 0xf74   : > { %v3305_v53 = vrot.slane %v3304_v22, 1  ;;  %v3321_v55 = vadd.f32 %v3320_v7, %v3319_v62 }
 0xf76   : > { %v3306_v0 = vadd.f32 %v3305_v53, %v3304_v22  ;;  %v3322_v16 = vrot.slane %v3321_v55, 1  ;;  %v6219_v22 = vld [vmem:[%s11137_s14 + $0x20] sm:$0xff] }
 0xf78   : > { %8108 = vpush %v3306_v0  ;;  %v3323_v17 = vadd.f32 %v3322_v16, %v3321_v55  ;;  %v6228_v55 = vld [vmem:[%s11139_s16 + $0x28] sm:$0xff]  ;;  %v6227_v0 = vld [vmem:[%s11139_s16 + $0x20] sm:$0xff] }
 0xf79   : > { %v6223_v16 = vld [vmem:[%s11138_s15 + $0x20] sm:$0xff] }
 0xf7a   : > { %8110 = vpush %v3323_v17  ;;  %7575 = vmatprep.mubr.msk.f32.mxu0 %vm2264_vm11, %v6223_v16  ;;  %v6239_v17 = vld [vmem:[%s11129_s6 + $0x40] sm:$0xff] }
 0xfa9   : > { %s8109_s12 = spop %8108 }
 0xfaa   : > { %v3308_v61 = vstv %s8109_s12  ;;  %s5834_s12 = sld [smem:[#allocation2]] }
 0xfab   : > { %v3326_v9 = vmul.f32 0.00024414063, %v3308_v61  ;;  %s8111_s26 = spop %8110  ;;  %v6240_v61 = vld [vmem:[%s11129_s6 + $0x48] sm:$0xff] }
 0xfac   : > { %v3325_v48 = vstv %s8111_s26  ;;  %s5926_s26 = scalar_lea.sflag [#allocation4], %s648_s21 }
 0xfad   : > { %v3327_v25 = vmul.f32 0.00024414063, %v3325_v48  ;;  %v3328_v59 = vmul.f32 %v3326_v9, %v3326_v9  ;;  %v6242_v48 = vld [vmem:[%s11129_s6 + $0x58] sm:$0xff] }
 0xfaf   : > { %v3329_v50 = vsub.f32 %v3327_v25, %v3328_v59 }
 0xfb1   : > { %v3330_v28 = vmax.f32 %v3329_v50, 0.0 }
 0xfb3   : > { %v3331_v2 = vadd.f32 1e-08, %v3330_v28 }
 0xfb5   : > { %8202 = vrsqrt.f32 %v3331_v2 }
 0xfc2   : > { %v8203_v42 = vpop.eup %8202 }
 0xfc3   : > { %v3336_v60 = vmul.f32 %v8203_v42, %v6218_v1  ;;  %v3335_v34 = vmul.f32 %v8203_v42, %v6217_v12  ;;  %v3334_v49 = vmul.f32 %v8203_v42, %v6216_v5  ;;  %v3333_v54 = vmul.f32 %v8203_v42, %v6215_v31 }
 0xfc5   : > { %3362 = vperm.xlu0 %8193, %v3336_v60   ;;  %3357 = vperm.xlu1 %8192, %v3335_v34   ;;  %v3340_v41 = vmul.f32 %v3336_v60, %v3326_v9  ;;  %v3339_v8 = vmul.f32 %v3335_v34, %v3326_v9  ;;  %v3337_v24 = vmul.f32 %v3333_v54, %v3326_v9 }
 0xfc6   : > { %v3338_v62 = vmul.f32 %v3334_v49, %v3326_v9  ;;  %v6241_v9 = vld [vmem:[%s11129_s6 + $0x50] sm:$0xff] }
 0xfc7   : > { %v3344_v6 = vsub.f32 %v6222_v51, %v3340_v41  ;;  %v3343_v14 = vsub.f32 %v6221_v15, %v3339_v8  ;;  %v3341_v53 = vsub.f32 %v6219_v22, %v3337_v24  ;;  %v6237_v22 = vld [vmem:[%s11128_s5 + $0x50] sm:$0xff] }
 0xfc8   : > { %v3342_v7 = vsub.f32 %v6220_v21, %v3338_v62  ;;  %v6236_v21 = vld [vmem:[%s11128_s5 + $0x48] sm:$0xff] }
 0xfc9   : > { %3386 = vperm.xlu0 %8193, %v3344_v6   ;;  %3352 = vperm.xlu1 %8192, %v3334_v49  }
 0xfcd   : > { %3381 = vperm.xlu0 %8193, %v3343_v14   ;;  %3347 = vperm.xlu1 %8192, %v3333_v54  }
 0xfd1   : > { %3376 = vperm.xlu0 %8193, %v3342_v7   ;;  %3371 = vperm.xlu1 %8192, %v3341_v53   ;;  %v6226_v7 = vld [vmem:[%s11138_s15 + $0x38] sm:$0xff] }
 0xfd5   : > { %3410 = vperm.xlu0 %8193, %v6228_v55   ;;  %3405 = vperm.xlu1 %8192, %v6227_v0  }
 0xfd9   : > { %3536 = vperm.xlu0 %8193, %v6239_v17   ;;  %3541 = vperm.xlu1 %8192, %v6240_v61   ;;  %v3660_v17 = vstv %s6247_s3 }
 0xfdd   : > { %3546 = vperm.xlu0 %8193, %v6241_v9   ;;  %3551 = vperm.xlu1 %8192, %v6242_v48  }
0x1040   : > { %v3363_v25 = vpop.permute.xlu0 %3362  ;;  %v3358_v59 = vpop.permute.xlu1 %3357 }
0x1041   : > { %v3368_v50 = vmul.f32 %v3363_v25, %v9864_v39  ;;  %v3367_v12 = vmul.f32 %v3358_v59, %v9866_v52  ;;  %v6224_v52 = vld [vmem:[%s11138_s15 + $0x28] sm:$0xff] }
0x1044   : > { %v3387_v28 = vpop.permute.xlu0 %3386  ;;  %v3353_v2 = vpop.permute.xlu1 %3352 }
0x1045   : > { %v3392_v1 = vadd.f32 %v3387_v28, %v3368_v50  ;;  %v3366_v51 = vmul.f32 %v3353_v2, %v9854_v4  ;;  %v6235_v4 = vld [vmem:[%s11128_s5 + $0x40] sm:$0xff] }
0x1046   : > { %7585 = vmatprep.mubr.msk.f32.mxu1 %vm1135_vm1, %v6235_v4 }
0x1047   : > { %7567 = vmatprep.subr.mxu0 %v3392_v1 }
0x1048   : > { %7568 = vmatpush3.msra.mxu0 %v3392_v1  ;;  %v3382_v42 = vpop.permute.xlu0 %3381  ;;  %v3348_v60 = vpop.permute.xlu1 %3347 }
0x1049   : > { %v3391_v34 = vadd.f32 %v3382_v42, %v3367_v12  ;;  %v3365_v41 = vmul.f32 %v3348_v60, %v9856_v13 }
0x104b   : > { %7569 = vmatprep.subr.mxu0 %v3391_v34 }
0x104c   : > { %7570 = vmatpush3.msra.mxu0 %v3391_v34  ;;  %v3377_v5 = vpop.permute.xlu0 %3376  ;;  %v3372_v31 = vpop.permute.xlu1 %3371 }
0x104d   : > { %v3390_v6 = vadd.f32 %v3377_v5, %v3366_v51  ;;  %v3389_v39 = vadd.f32 %v3372_v31, %v3365_v41 }
0x104f   : > { %7571 = vmatprep.subr.mxu0 %v3390_v6 }
0x1050   : > { %7572 = vmatpush3.msra.mxu0 %v3390_v6  ;;  %v3411_v13 = vpop.permute.xlu0 %3410  ;;  %v3406_v54 = vpop.permute.xlu1 %3405 }
0x1051   : > { %7573 = vmatprep.subr.mxu0 %v3389_v39 }
0x1052   : > { %7574 = vmatpush3.msra.mxu0 %v3389_v39 }
0x1053   : > { %7576 = vmatmul.mubr.msk.f32.vlgmr.msra.gmra.mxu0 %vm2264_vm11, %v6224_v52  ;;  %7591 = vmatprep.subr.mxu0 %v11275_v56 }
0x1054   : > { %7592 = vmatpush3.msra.mxu0 %v11275_v56  ;;  %v3542_v53 = vpop.permute.xlu1 %3541  ;;  %v3537_v0 = vpop.permute.xlu0 %3536 }
0x1055   : > { %7593 = vmatprep.subr.mxu0 %v11275_v56 }
0x1056   : > { %7594 = vmatpush3.msra.mxu0 %v11275_v56 }
0x1057   : > { %7595 = vmatprep.subr.mxu0 %v11275_v56 }
0x1058   : > { %7596 = vmatpush3.msra.mxu0 %v11275_v56  ;;  %v3552_v25 = vpop.permute.xlu1 %3551  ;;  %v3547_v42 = vpop.permute.xlu0 %3546 }
0x1059   : > { %7597 = vmatprep.subr.mxu0 %v11275_v56 }
0x105a   : > { %7598 = vmatpush3.msra.mxu0 %v11275_v56 }
0x105b   : > { %7599 = vmatprep.subr.mxu0 %v11275_v56 }
0x105c   : > { %7600 = vmatpush3.msra.mxu0 %v11275_v56 }
0x105d   : > { %7601 = vmatprep.subr.mxu0 %v11275_v56 }
0x105e   : > { %7602 = vmatpush3.msra.mxu0 %v11275_v56 }
0x105f   : > { %7603 = vmatprep.subr.mxu0 %v11275_v56 }
0x1060   : > { %7604 = vmatpush3.msra.mxu0 %v11275_v56 }
0x1061   : > { %7605 = vmatprep.subr.mxu0 %v11275_v56 }
0x1062   : > { %7606 = vmatpush3.msra.mxu0 %v11275_v56 }
0x1063   : > { %7607 = vmatprep.subr.mxu0 %v11275_v56 }
0x1064   : > { %7608 = vmatpush3.msra.mxu0 %v11275_v56 }
0x1065   : > { %7609 = vmatprep.subr.mxu0 %v11275_v56 }
0x1066   : > { %7610 = vmatpush3.msra.mxu0 %v11275_v56 }
0x1067   : > { %7611 = vmatprep.subr.mxu0 %v11275_v56 }
0x1068   : > { %7612 = vmatpush3.msra.mxu0 %v11275_v56 }
0x1069   : > { %7613 = vmatprep.subr.mxu0 %v11275_v56 }
0x106a   : > { %7614 = vmatpush3.msra.mxu0 %v11275_v56 }
0x106b   : > { %7615 = vmatprep.subr.mxu0 %v11275_v56 }
0x106c   : > { %7616 = vmatpush3.msra.mxu0 %v11275_v56 }
0x106d   : > { %7617 = vmatprep.subr.mxu0 %v11275_v56 }
0x106e   : > { %7618 = vmatpush3.msra.mxu0 %v11275_v56 }
0x106f   : > { %7619 = vmatprep.subr.mxu0 %v11275_v56 }
0x1070   : > { %7620 = vmatpush3.msra.mxu0 %v11275_v56 }
0x1071   : > { %7621 = vmatprep.subr.mxu0 %v11275_v56 }
0x1072   : > { %7622 = vmatpush3.msra.mxu0 %v11275_v56 }
0x1073   : > { %7667 = vmatprep.subr.msk.mxu0 %vm706_vm2, %v11275_v56 }
0x1113   : > { %v7577_v49 = vpop.f32.mrf.mxu0 }
0x1114   : > { %v3507_v8 = vadd.f32 %v7577_v49, %v3411_v13 }
0x1115   : > { %v3501_v15 = vpop.f32.mrf.mxu0 }
0x1116   : > { %v9976_v14 = vadd.f32 %v3507_v8, %v9377_v27  ;;  %v3502_v24 = vadd.f32 %v3501_v15, %v3406_v54  ;;  %v6238_v27 = vld [vmem:[%s11128_s5 + $0x58] sm:$0xff] }
0x1118   : > { %v9979_v62 = vadd.f32 %v3502_v24, %v9380_v26  ;;  %7581 = vmatprep.subr.mxu1 %v9976_v14  ;;  %v6225_v26 = vld [vmem:[%s11138_s15 + $0x30] sm:$0xff] }
0x1119   : > { %7582 = vmatpush3.msra.mxu1 %v9976_v14  ;;  %7578 = vmatprep.mubr.msk.f32.mxu0 %vm2264_vm11, %v6225_v26  ;;  %v11325_v26 = vld [vmem:[#allocation17_spill] sm:$0xff] }
0x111a   : > { %7583 = vmatprep.subr.mxu1 %v9979_v62  ;;  %7579 = vmatmul.mubr.msk.f32.gmra.mxu0 %vm2264_vm11, %v6226_v7  ;;  %v11327_v7 = vld [vmem:[#allocation18_spill] sm:$0xff] }
0x111b   : > { %7584 = vmatpush3.msra.mxu1 %v9979_v62 }
0x111c   : > { %7586 = vmatmul.mubr.msk.f32.vlgmr.msra.gmra.mxu1 %vm1135_vm1, %v6236_v21  ;;  %7629 = vmatprep.subr.mxu1 %v11275_v56 }
0x111d   : > { %7588 = vmatprep.mubr.msk.f32.mxu1 %vm1135_vm1, %v6237_v22  ;;  %7630 = vmatpush3.msra.mxu1 %v11275_v56  ;;  %v11319_v22 = vld [vmem:[#allocation15_spill] sm:$0xff] }
0x111e   : > { %7631 = vmatprep.subr.mxu1 %v11275_v56 }
0x111f   : > { %7632 = vmatpush3.msra.mxu1 %v11275_v56 }
0x1120   : > { %7589 = vmatmul.mubr.msk.f32.gmra.mxu1 %vm1135_vm1, %v6238_v27  ;;  %7633 = vmatprep.subr.mxu1 %v11275_v56  ;;  %v11321_v27 = vld [vmem:[#allocation16_spill] sm:$0xff] }
0x1121   : > { %7634 = vmatpush3.msra.mxu1 %v11275_v56 }
0x1122   : > { %7635 = vmatprep.subr.mxu1 %v11275_v56 }
0x1123   : > { %7636 = vmatpush3.msra.mxu1 %v11275_v56 }
0x1124   : > { %7637 = vmatprep.subr.mxu1 %v11275_v56 }
0x1125   : > { %7638 = vmatpush3.msra.mxu1 %v11275_v56 }
0x1126   : > { %7639 = vmatprep.subr.mxu1 %v11275_v56 }
0x1127   : > { %7640 = vmatpush3.msra.mxu1 %v11275_v56 }
0x1128   : > { %7641 = vmatprep.subr.mxu1 %v11275_v56 }
0x1129   : > { %7642 = vmatpush3.msra.mxu1 %v11275_v56 }
0x112a   : > { %7643 = vmatprep.subr.mxu1 %v11275_v56 }
0x112b   : > { %7644 = vmatpush3.msra.mxu1 %v11275_v56 }
0x112c   : > { %7645 = vmatprep.subr.mxu1 %v11275_v56 }
0x112d   : > { %7646 = vmatpush3.msra.mxu1 %v11275_v56 }
0x112e   : > { %7647 = vmatprep.subr.mxu1 %v11275_v56 }
0x112f   : > { %7648 = vmatpush3.msra.mxu1 %v11275_v56 }
0x1130   : > { %7649 = vmatprep.subr.mxu1 %v11275_v56 }
0x1131   : > { %7650 = vmatpush3.msra.mxu1 %v11275_v56 }
0x1132   : > { %7651 = vmatprep.subr.mxu1 %v11275_v56 }
0x1133   : > { %7652 = vmatpush3.msra.mxu1 %v11275_v56 }
0x1134   : > { %7653 = vmatprep.subr.mxu1 %v11275_v56 }
0x1135   : > { %7654 = vmatpush3.msra.mxu1 %v11275_v56 }
0x1136   : > { %7655 = vmatprep.subr.mxu1 %v11275_v56 }
0x1137   : > { %7656 = vmatpush3.msra.mxu1 %v11275_v56 }
0x1138   : > { %7657 = vmatprep.subr.mxu1 %v11275_v56 }
0x1139   : > { %7658 = vmatpush3.msra.mxu1 %v11275_v56 }
0x113a   : > { %7659 = vmatprep.subr.mxu1 %v11275_v56 }
0x113b   : > { %7660 = vmatpush3.msra.mxu1 %v11275_v56 }
0x113c   : > { %7705 = vmatprep.subr.msk.mxu1 %vm770_vm3, %v11275_v56 }
0x11dc   : > { %v7587_v55 = vpop.f32.mrf.mxu1 }
0x11dd   : > { %v3638_v16 = vadd.f32 %v7587_v55, %v3542_v53  ;;  %v11331_v53 = vld [vmem:[#allocation19_spill] sm:$0xff]  ;;  %v11333_v55 = vld [vmem:[#allocation20_spill] sm:$0xff] }
0x11de   : > { %v3632_v61 = vpop.f32.mrf.mxu1 }
0x11df   : > { %v3657_v9 = vmin.f32 %v3638_v16, 0.0  ;;  %v3633_v48 = vadd.f32 %v3632_v61, %v3537_v0  ;;  %v3653_v1 = vmax.f32 %v3638_v16, 0.0  ;;  %v11337_v0 = vld [vmem:[#allocation21_spill] sm:$0xff]  ;;  %v11339_v16 = vld [vmem:[#allocation22_spill] sm:$0xff] }
0x11e0   : > { %v7590_v59 = vpop.f32.mrf.mxu1 }
0x11e1   : > { %v3662_v50 = vmul.f32 %v3660_v17, %v3657_v9  ;;  %v3656_v28 = vmin.f32 %v3633_v48, 0.0  ;;  %v3648_v2 = vadd.f32 %v7590_v59, %v3552_v25  ;;  %v3652_v60 = vmax.f32 %v3633_v48, 0.0 }
0x11e2   : > { %v3642_v12 = vpop.f32.mrf.mxu1 }
0x11e3   : > { %v3661_v34 = vmul.f32 %v3660_v17, %v3656_v28  ;;  %v3659_v51 = vmin.f32 %v3648_v2, 0.0  ;;  %v10040_v5 = vadd.f32 %v3662_v50, %v3653_v1  ;;  %v3643_v31 = vadd.f32 %v3642_v12, %v3547_v42 }
0x11e4   : > { %v3655_v52 = vmax.f32 %v3648_v2, 0.0 }
0x11e5   : > { %v3664_v41 = vmul.f32 %v3660_v17, %v3659_v51  ;;  %v10042_v6 = vadd.f32 %v3661_v34, %v3652_v60  ;;  %v3658_v39 = vmin.f32 %v3643_v31, 0.0  ;;  %v3765_v13 = vmul.f32 %v10040_v5, %v10040_v5 }
0x11e6   : > { %v3654_v49 = vmax.f32 %v3643_v31, 0.0 }
0x11e7   : > { %7623 = vmatprep.mubr.f32.mxu0 %v10042_v6  ;;  %v3764_v4 = vmul.f32 %v10042_v6, %v10042_v6  ;;  %v3663_v8 = vmul.f32 %v3660_v17, %v3658_v39  ;;  %v10050_v54 = vadd.f32 %v3664_v41, %v3655_v52  ;;  %v10248_v17 = vpop.f32.mrf.mxu0 }
0x11e8   : > { %7624 = vmatmul.mubr.f32.vlgmr.msra.gmra.mxu0 %v10040_v5  ;;  %11343 = vst [vmem:[#allocation25_spill] sm:$0xff] %v10248_v17 }
0x11e9   : > { %7661 = vmatprep.mubr.f32.mxu1 %v3764_v4  ;;  %7668 = vmatpush3.msk.msra.mxu0 %vm706_vm2, %v11275_v56  ;;  %v10055_v15 = vadd.f32 %v3663_v8, %v3654_v49  ;;  %v3767_v21 = vmul.f32 %v10050_v54, %v10050_v54  ;;  %vm11285_vm2 = vcmp.eq.s32.totalorder %v8781_v38, 1  ;;  %v10250_v61 = vpop.f32.mrf.mxu0 }
0x11ea   : > { %7662 = vmatmul.mubr.f32.vlgmr.msra.gmra.mxu1 %v3765_v13  ;;  %7669 = vmatprep.subr.msk.mxu0 %vm705_vm4, %v11275_v56  ;;  %11344 = vst [vmem:[#allocation26_spill] sm:$0xff] %v10250_v61 }
0x11eb   : > { %7706 = vmatpush3.msk.msra.mxu1 %vm770_vm3, %v11275_v56  ;;  %7670 = vmatpush3.msk.msra.mxu0 %vm705_vm4, %v11275_v56  ;;  %v3766_v24 = vmul.f32 %v10055_v15, %v10055_v15  ;;  %vm11286_vm3 = vmmov %vm11285_vm2  ;;  %vm11287_vm4 = vcmp.eq.s32.totalorder %v8803_v40, 1 }
0x11ec   : > { %7626 = vmatprep.mubr.f32.mxu0 %v10055_v15  ;;  %7707 = vmatprep.subr.msk.mxu1 %vm769_vm5, %v11275_v56 }
0x11ed   : > { %7627 = vmatmul.mubr.f32.gmra.mxu0 %v10050_v54  ;;  %7708 = vmatpush3.msk.msra.mxu1 %vm769_vm5, %v11275_v56  ;;  %vm11288_vm5 = vcmp.eq.s32.totalorder %v8806_v43, 1 }
0x11ee   : > { %7664 = vmatprep.mubr.f32.mxu1 %v3766_v24  ;;  %7671 = vmatprep.subr.msk.mxu0 %vm704_vm6, %v11275_v56 }
0x11ef   : > { %7665 = vmatmul.mubr.f32.gmra.mxu1 %v3767_v21  ;;  %7709 = vmatprep.subr.msk.mxu1 %vm768_vm7, %v11275_v56 }
0x11f0   : > { %7672 = vmatpush3.msk.msra.mxu0 %vm704_vm6, %v11275_v56  ;;  %7710 = vmatpush3.msk.msra.mxu1 %vm768_vm7, %v11275_v56  ;;  %vm11289_vm6 = vmmov %vm11287_vm4 }
0x11f1   : > { %7673 = vmatprep.subr.msk.mxu0 %vm703_vm8, %v11275_v56  ;;  %7711 = vmatprep.subr.msk.mxu1 %vm11285_vm2, %v11275_v56  ;;  %vm11290_vm7 = vmmov %vm11288_vm5  ;;  %vm11292_vm2 = vcmp.eq.s32.totalorder %v8826_v45, 1 }
0x11f2   : > { %7674 = vmatpush3.msk.msra.mxu0 %vm703_vm8, %v11275_v56  ;;  %7712 = vmatpush3.msk.msra.mxu1 %vm11286_vm3, %v11275_v56  ;;  %vm11291_vm8 = vcmp.eq.s32.totalorder %v8823_v44, 1 }
0x11f3   : > { %7675 = vmatprep.subr.msk.mxu0 %vm11287_vm4, %v11275_v56  ;;  %7713 = vmatprep.subr.msk.mxu1 %vm11288_vm5, %v11275_v56  ;;  %vm11293_vm3 = vmmov %vm11291_vm8  ;;  %vm11295_vm5 = vcmp.eq.s32.totalorder %v8843_v46, 1 }
0x11f4   : > { %7676 = vmatpush3.msk.msra.mxu0 %vm11289_vm6, %v11275_v56  ;;  %7714 = vmatpush3.msk.msra.mxu1 %vm11290_vm7, %v11275_v56  ;;  %vm11294_vm4 = vmmov %vm11292_vm2  ;;  %vm11296_vm6 = vcmp.eq.s32.totalorder %v8846_v47, 1 }
0x11f5   : > { %7677 = vmatprep.subr.msk.mxu0 %vm11291_vm8, %v11275_v56  ;;  %7715 = vmatprep.subr.msk.mxu1 %vm11292_vm2, %v11275_v56  ;;  %vm11297_vm7 = vmmov %vm11295_vm5  ;;  %vm11299_vm2 = vcmp.eq.s32.totalorder %v8906_v57, 1 }
0x11f6   : > { %7678 = vmatpush3.msk.msra.mxu0 %vm11293_vm3, %v11275_v56  ;;  %7716 = vmatpush3.msk.msra.mxu1 %vm11294_vm4, %v11275_v56  ;;  %vm11298_vm8 = vmmov %vm11296_vm6  ;;  %vm11300_vm3 = vcmp.eq.s32.totalorder %v8909_v58, 1 }
0x11f7   : > { %7679 = vmatprep.subr.msk.mxu0 %vm11295_vm5, %v11275_v56  ;;  %7717 = vmatprep.subr.msk.mxu1 %vm11296_vm6, %v11275_v56  ;;  %vm11301_vm4 = vmmov %vm11299_vm2  ;;  %vm11303_vm6 = vcmp.eq.s32.totalorder %v8924_v63, 1 }
0x11f8   : > { %7680 = vmatpush3.msk.msra.mxu0 %vm11297_vm7, %v11275_v56  ;;  %7718 = vmatpush3.msk.msra.mxu1 %vm11298_vm8, %v11275_v56  ;;  %vm11302_vm5 = vmmov %vm11300_vm3  ;;  %vm11304_vm7 = vcmp.eq.s32.totalorder %v8927_v3, 1 }
0x11f9   : > { %7681 = vmatprep.subr.msk.mxu0 %vm11299_vm2, %v11275_v56  ;;  %7719 = vmatprep.subr.msk.mxu1 %vm11300_vm3, %v11275_v56  ;;  %vm11305_vm8 = vmmov %vm11303_vm6  ;;  %vm11307_vm3 = vcmp.eq.s32.totalorder %v8948_v10, 1 }
0x11fa   : > { %7682 = vmatpush3.msk.msra.mxu0 %vm11301_vm4, %v11275_v56  ;;  %7720 = vmatpush3.msk.msra.mxu1 %vm11302_vm5, %v11275_v56  ;;  %vm11306_vm2 = vmmov %vm11304_vm7  ;;  %vm11308_vm4 = vcmp.eq.s32.totalorder %v8951_v11, 1 }
0x11fb   : > { %7683 = vmatprep.subr.msk.mxu0 %vm11303_vm6, %v11275_v56  ;;  %7721 = vmatprep.subr.msk.mxu1 %vm11304_vm7, %v11275_v56  ;;  %vm11309_vm5 = vmmov %vm11307_vm3  ;;  %vm11311_vm7 = vcmp.eq.s32.totalorder %v8981_v18, 1 }
0x11fc   : > { %7684 = vmatpush3.msk.msra.mxu0 %vm11305_vm8, %v11275_v56  ;;  %7722 = vmatpush3.msk.msra.mxu1 %vm11306_vm2, %v11275_v56  ;;  %vm11310_vm6 = vmmov %vm11308_vm4  ;;  %vm11312_vm8 = vcmp.eq.s32.totalorder %v8984_v19, 1 }
0x11fd   : > { %7685 = vmatprep.subr.msk.mxu0 %vm11307_vm3, %v11275_v56  ;;  %7723 = vmatprep.subr.msk.mxu1 %vm11308_vm4, %v11275_v56  ;;  %vm11313_vm2 = vmmov %vm11311_vm7  ;;  %vm11315_vm4 = vcmp.eq.s32.totalorder %v8987_v20, 1 }
0x11fe   : > { %7686 = vmatpush3.msk.msra.mxu0 %vm11309_vm5, %v11275_v56  ;;  %7724 = vmatpush3.msk.msra.mxu1 %vm11310_vm6, %v11275_v56  ;;  %vm11314_vm3 = vmmov %vm11312_vm8  ;;  %vm11316_vm5 = vcmp.eq.s32.totalorder %v8990_v23, 1 }
0x11ff   : > { %7687 = vmatprep.subr.msk.mxu0 %vm11311_vm7, %v11275_v56  ;;  %7725 = vmatprep.subr.msk.mxu1 %vm11312_vm8, %v11275_v56  ;;  %vm11317_vm6 = vmmov %vm11315_vm4  ;;  %vm11320_vm8 = vcmp.eq.s32.totalorder %v11319_v22, 1 }
0x1200   : > { %7688 = vmatpush3.msk.msra.mxu0 %vm11313_vm2, %v11275_v56  ;;  %7726 = vmatpush3.msk.msra.mxu1 %vm11314_vm3, %v11275_v56  ;;  %vm11318_vm7 = vmmov %vm11316_vm5  ;;  %vm11322_vm2 = vcmp.eq.s32.totalorder %v11321_v27, 1 }
0x1201   : > { %7689 = vmatprep.subr.msk.mxu0 %vm11315_vm4, %v11275_v56  ;;  %7727 = vmatprep.subr.msk.mxu1 %vm11316_vm5, %v11275_v56  ;;  %vm11323_vm3 = vmmov %vm11320_vm8  ;;  %vm11326_vm5 = vcmp.eq.s32.totalorder %v11325_v26, 1 }
0x1202   : > { %7690 = vmatpush3.msk.msra.mxu0 %vm11317_vm6, %v11275_v56  ;;  %7728 = vmatpush3.msk.msra.mxu1 %vm11318_vm7, %v11275_v56  ;;  %vm11324_vm4 = vmmov %vm11322_vm2  ;;  %vm11328_vm6 = vcmp.eq.s32.totalorder %v11327_v7, 1 }
0x1203   : > { %7691 = vmatprep.subr.msk.mxu0 %vm11320_vm8, %v11275_v56  ;;  %7729 = vmatprep.subr.msk.mxu1 %vm11322_vm2, %v11275_v56  ;;  %vm11329_vm7 = vmmov %vm11326_vm5  ;;  %vm11332_vm2 = vcmp.eq.s32.totalorder %v11331_v53, 1 }
0x1204   : > { %7692 = vmatpush3.msk.msra.mxu0 %vm11323_vm3, %v11275_v56  ;;  %7730 = vmatpush3.msk.msra.mxu1 %vm11324_vm4, %v11275_v56  ;;  %vm11330_vm8 = vmmov %vm11328_vm6  ;;  %vm11334_vm3 = vcmp.eq.s32.totalorder %v11333_v55, 1 }
0x1205   : > { %7693 = vmatprep.subr.msk.mxu0 %vm11326_vm5, %v11275_v56  ;;  %7731 = vmatprep.subr.msk.mxu1 %vm11328_vm6, %v11275_v56  ;;  %vm11335_vm4 = vmmov %vm11332_vm2  ;;  %vm11338_vm6 = vcmp.eq.s32.totalorder %v11337_v0, 1 }
0x1206   : > { %7694 = vmatpush3.msk.msra.mxu0 %vm11329_vm7, %v11275_v56  ;;  %7732 = vmatpush3.msk.msra.mxu1 %vm11330_vm8, %v11275_v56  ;;  %vm11336_vm5 = vmmov %vm11334_vm3  ;;  %vm11340_vm7 = vcmp.eq.s32.totalorder %v11339_v16, 1 }
0x1207   : > { %7695 = vmatprep.subr.msk.mxu0 %vm11332_vm2, %v11275_v56  ;;  %7733 = vmatprep.subr.msk.mxu1 %vm11334_vm3, %v11275_v56  ;;  %vm11341_vm8 = vmmov %vm11338_vm6  ;;  %vm11345_vm3 = vcmp.eq.s32.totalorder %v8760_v29, 2 }
0x1208   : > { %7696 = vmatpush3.msk.msra.mxu0 %vm11335_vm4, %v11275_v56  ;;  %7734 = vmatpush3.msk.msra.mxu1 %vm11336_vm5, %v11275_v56  ;;  %vm11342_vm2 = vmmov %vm11340_vm7  ;;  %vm11346_vm4 = vcmp.eq.s32.totalorder %v8763_v30, 2  ;;  %v11391_v30 = vld [vmem:[#allocation15_spill] sm:$0xff] }
0x1209   : > { %7697 = vmatprep.subr.msk.mxu0 %vm11338_vm6, %v11275_v56  ;;  %7735 = vmatprep.subr.msk.mxu1 %vm11340_vm7, %v11275_v56  ;;  %vm11347_vm5 = vmmov %vm11345_vm3  ;;  %vm11348_vm6 = vcmp.eq.s32.totalorder %v8766_v32, 2  ;;  %v11393_v32 = vld [vmem:[#allocation16_spill] sm:$0xff] }
0x120a   : > { %7698 = vmatpush3.msk.msra.mxu0 %vm11341_vm8, %v11275_v56  ;;  %7736 = vmatpush3.msk.msra.mxu1 %vm11342_vm2, %v11275_v56  ;;  %vm11349_vm7 = vmmov %vm11346_vm4  ;;  %vm11351_vm2 = vcmp.eq.s32.totalorder %v8769_v33, 2  ;;  %v11397_v33 = vld [vmem:[#allocation17_spill] sm:$0xff] }
0x120b   : > { %7743 = vmatprep.subr.mxu0 %v11275_v56  ;;  %7781 = vmatprep.subr.mxu1 %v11275_v56  ;;  %vm11350_vm8 = vmmov %vm11348_vm6 }
0x12a8   : > { %v7625_v9 = vpop.f32.mrf.mxu0 }
0x12a9   : > { %v3854_v2 = vsel %vm1057_vm0, %v7625_v9, 0.0 }
0x12aa   : > { %v3745_v48 = vpop.f32.mrf.mxu0  ;;  %v7663_v25 = vpop.f32.mrf.mxu1 }
0x12ab   : > { %v3853_v59 = vsel %vm1057_vm0, %v3745_v48, 0.0  ;;  %v3871_v34 = vsel %vm1057_vm0, %v7663_v25, 0.0 }
0x12ac   : > { %v3834_v50 = vpop.f32.mrf.mxu1  ;;  %v3855_v12 = vadd.f32 %v3854_v2, %v3853_v59 }
0x12ad   : > { %v7628_v28 = vpop.f32.mrf.mxu0  ;;  %v3870_v1 = vsel %vm1057_vm0, %v3834_v50, 0.0 }
0x12ae   : > { %v3872_v31 = vadd.f32 %v3871_v34, %v3870_v1  ;;  %v3858_v52 = vsel %vm1057_vm0, %v7628_v28, 0.0 }
0x12af   : > { %v3755_v42 = vpop.f32.mrf.mxu0  ;;  %v7666_v60 = vpop.f32.mrf.mxu1 }
0x12b0   : > { %v3856_v51 = vsel %vm1057_vm0, %v3755_v42, 0.0  ;;  %v3875_v8 = vsel %vm1057_vm0, %v7666_v60, 0.0 }
0x12b1   : > { %v3857_v41 = vadd.f32 %v3856_v51, %v3855_v12  ;;  %v3844_v39 = vpop.f32.mrf.mxu1 }
0x12b2   : > { %v3873_v4 = vsel %vm1057_vm0, %v3844_v39, 0.0 }
0x12b3   : > { %v3874_v13 = vadd.f32 %v3873_v4, %v3872_v31  ;;  %v3859_v49 = vadd.f32 %v3858_v52, %v3857_v41 }
0x12b5   : > { %v3876_v24 = vadd.f32 %v3875_v8, %v3874_v13  ;;  %3860 = vadd.xlane.f32.xlu0 %v3859_v49 }
0x12b7   : > { %3877 = vadd.xlane.f32.xlu1 %v3876_v24  ;;  %v6249_v24 = vld [vmem:[%s11131_s8 + $0x48] sm:$0xff] }
0x133e   : > { %v3861_v21 = vpop.xlane.xlu0 %3860 }
0x133f   : > { %v3862_v9 = vrot.slane %v3861_v21, 4 }
0x1340   : > { %v3878_v48 = vpop.xlane.xlu1 %3877 }
0x1341   : > { %v3863_v25 = vadd.f32 %v3862_v9, %v3861_v21  ;;  %v3879_v59 = vrot.slane %v3878_v48, 4  ;;  %v6248_v21 = vld [vmem:[%s11131_s8 + $0x40] sm:$0xff] }
0x1343   : > { %v3864_v50 = vrot.slane %v3863_v25, 2  ;;  %v3880_v2 = vadd.f32 %v3879_v59, %v3878_v48  ;;  %v6251_v59 = vld [vmem:[%s11131_s8 + $0x58] sm:$0xff] }
0x1345   : > { %v3881_v1 = vrot.slane %v3880_v2, 2  ;;  %v3865_v12 = vadd.f32 %v3864_v50, %v3863_v25  ;;  %v6250_v50 = vld [vmem:[%s11131_s8 + $0x50] sm:$0xff] }
0x1347   : > { %v3866_v42 = vrot.slane %v3865_v12, 1  ;;  %v3882_v28 = vadd.f32 %v3881_v1, %v3880_v2 }
0x1349   : > { %v3867_v34 = vadd.f32 %v3866_v42, %v3865_v12  ;;  %v3883_v51 = vrot.slane %v3882_v28, 1 }
0x134b   : > { %8112 = vpush %v3867_v34  ;;  %v3884_v31 = vadd.f32 %v3883_v51, %v3882_v28  ;;  %v6253_v28 = vld [vmem:[%s11132_s9 + $0x48] sm:$0xff]  ;;  %v6252_v34 = vld [vmem:[%s11132_s9 + $0x40] sm:$0xff] }
0x134d   : > { %8114 = vpush %v3884_v31 }
0x137c   : > { %s8113_s2 = spop %8112 }
0x137d   : > { %v3869_v60 = vstv %s8113_s2  ;;  %s6304_s2 = sld [smem:[#allocation6 + $0x2]] }
0x137e   : > { %v3887_v41 = vmul.f32 0.00024414063, %v3869_v60  ;;  %s8115_s22 = spop %8114 }
0x137f   : > { %v3886_v39 = vstv %s8115_s22 }
0x1380   : > { %v3888_v52 = vmul.f32 0.00024414063, %v3886_v39  ;;  %v3889_v4 = vmul.f32 %v3887_v41, %v3887_v41 }
0x1382   : > { %v3890_v13 = vsub.f32 %v3888_v52, %v3889_v4  ;;  %v6255_v52 = vld [vmem:[%s11132_s9 + $0x58] sm:$0xff]  ;;  %v6254_v4 = vld [vmem:[%s11132_s9 + $0x50] sm:$0xff] }
0x1384   : > { %v3891_v49 = vmax.f32 %v3890_v13, 0.0 }
0x1386   : > { %v3892_v8 = vadd.f32 1e-08, %v3891_v49 }
0x1388   : > { %8204 = vrsqrt.f32 %v3892_v8  ;;  %v6292_v8 = vld [vmem:[%s11133_s10 + $0xe0] sm:$0xff] }
0x1395   : > { %v8205_v9 = vpop.eup %8204 }
0x1396   : > { %v3895_v48 = vmul.f32 %v8205_v9, %v6249_v24  ;;  %v3894_v25 = vmul.f32 %v8205_v9, %v6248_v21  ;;  %v3897_v2 = vmul.f32 %v8205_v9, %v6251_v59  ;;  %v3896_v1 = vmul.f32 %v8205_v9, %v6250_v50  ;;  %v6293_v24 = vld [vmem:[%s11133_s10 + $0xe8] sm:$0xff]  ;;  %v6290_v59 = vld [vmem:[%s11133_s10 + $0xd0] sm:$0xff]  ;;  %v6295_v50 = vld [vmem:[%s11133_s10 + $0xf8] sm:$0xff] }
0x1397   : > { %v6289_v21 = vld [vmem:[%s11133_s10 + $0xc8] sm:$0xff] }
0x1398   : > { %3913 = vperm.xlu1 %8192, %v3895_v48   ;;  %3908 = vperm.xlu0 %8193, %v3894_v25   ;;  %v3899_v12 = vmul.f32 %v3895_v48, %v3887_v41  ;;  %v3898_v42 = vmul.f32 %v3894_v25, %v3887_v41  ;;  %v3901_v60 = vmul.f32 %v3897_v2, %v3887_v41  ;;  %v6297_v9 = vld [vmem:[%s11133_s10 + $0x108] sm:$0xff]  ;;  %v6296_v48 = vld [vmem:[%s11133_s10 + $0x100] sm:$0xff]  ;;  %v6294_v25 = vld [vmem:[%s11133_s10 + $0xf0] sm:$0xff] }
0x1399   : > { %v3900_v39 = vmul.f32 %v3896_v1, %v3887_v41  ;;  %v6288_v41 = vld [vmem:[%s11133_s10 + $0xc0] sm:$0xff] }
0x139a   : > { %v3903_v51 = vsub.f32 %v6253_v28, %v3899_v12  ;;  %v3902_v31 = vsub.f32 %v6252_v34, %v3898_v42  ;;  %v3905_v13 = vsub.f32 %v6255_v52, %v3901_v60  ;;  %v6298_v12 = vld [vmem:[%s11133_s10 + $0x110] sm:$0xff]  ;;  %v6301_v42 = vld [vmem:[%s11134_s11 + $0x48] sm:$0xff]  ;;  %v6299_v28 = vld [vmem:[%s11133_s10 + $0x118] sm:$0xff] }
0x139b   : > { %v3904_v49 = vsub.f32 %v6254_v4, %v3900_v39  ;;  %v6303_v34 = vld [vmem:[%s11134_s11 + $0x58] sm:$0xff] }
0x139c   : > { %3923 = vperm.xlu1 %8192, %v3897_v2   ;;  %3918 = vperm.xlu0 %8193, %v3896_v1   ;;  %v6291_v2 = vld [vmem:[%s11133_s10 + $0xd8] sm:$0xff]  ;;  %v6300_v1 = vld [vmem:[%s11134_s11 + $0x40] sm:$0xff] }
0x13a0   : > { %3937 = vperm.xlu1 %8192, %v3903_v51   ;;  %3932 = vperm.xlu0 %8193, %v3902_v31   ;;  %v6302_v51 = vld [vmem:[%s11134_s11 + $0x50] sm:$0xff] }
0x13a4   : > { %3947 = vperm.xlu1 %8192, %v3905_v13   ;;  %3942 = vperm.xlu0 %8193, %v3904_v49  }
0x13a8   : > { %4160 = vperm.xlu1 %8192, %v6292_v8   ;;  %4131 = vperm.xlu0 %8193, %v6288_v41  }
0x13ac   : > { %4165 = vperm.xlu1 %8192, %v6293_v24   ;;  %4136 = vperm.xlu0 %8193, %v6289_v21  }
0x13b0   : > { %4198 = vperm.xlu1 %8192, %v6297_v9   ;;  %4193 = vperm.xlu0 %8193, %v6296_v48  }
0x13b4   : > { %4170 = vperm.xlu1 %8192, %v6294_v25   ;;  %4141 = vperm.xlu0 %8193, %v6290_v59  }
0x13b8   : > { %4175 = vperm.xlu1 %8192, %v6295_v50   ;;  %4146 = vperm.xlu0 %8193, %v6291_v2  }
0x13bc   : > { %4226 = vperm.xlu1 %8192, %v6300_v1   ;;  %4203 = vperm.xlu0 %8193, %v6298_v12  }
0x13c0   : > { %4231 = vperm.xlu1 %8192, %v6301_v42   ;;  %4208 = vperm.xlu0 %8193, %v6299_v28  }
0x13c4   : > { %4241 = vperm.xlu1 %8192, %v6303_v34   ;;  %4236 = vperm.xlu0 %8193, %v6302_v51  }
0x1413   : > { %v3914_v31 = vpop.permute.xlu1 %3913  ;;  %v3909_v60 = vpop.permute.xlu0 %3908 }
0x1414   : > { %v3927_v4 = vmul.f32 %v3914_v31, %v10040_v5  ;;  %v3926_v13 = vmul.f32 %v3909_v60, %v10042_v6 }
0x1417   : > { %v3924_v39 = vpop.permute.xlu1 %3923  ;;  %v3919_v52 = vpop.permute.xlu0 %3918 }
0x1418   : > { %v3929_v21 = vmul.f32 %v3924_v39, %v10050_v54  ;;  %v3928_v9 = vmul.f32 %v3919_v52, %v10055_v15 }
0x141b   : > { %v3938_v49 = vpop.permute.xlu1 %3937  ;;  %v3933_v8 = vpop.permute.xlu0 %3932 }
0x141c   : > { %v10334_v41 = vadd.f32 %v3938_v49, %v3927_v4  ;;  %v10336_v24 = vadd.f32 %v3933_v8, %v3926_v13 }
0x141e   : > { %7699 = vmatprep.mubr.f32.mxu0 %v10336_v24  ;;  %7737 = vmatprep.mubr.f32.mxu1 %v10336_v24 }
0x141f   : > { %v3948_v48 = vpop.permute.xlu1 %3947  ;;  %7700 = vmatmul.mubr.f32.vlgmr.msra.gmra.mxu0 %v10334_v41  ;;  %7738 = vmatmul.mubr.f32.vlgmr.msra.gmra.mxu1 %v10334_v41  ;;  %v3943_v5 = vpop.permute.xlu0 %3942 }
0x1420   : > { %v10344_v6 = vadd.f32 %v3948_v48, %v3929_v21  ;;  %v10346_v25 = vadd.f32 %v3943_v5, %v3928_v9  ;;  %7744 = vmatpush3.msra.mxu0 %v11275_v56  ;;  %7782 = vmatpush3.msra.mxu1 %v11275_v56 }
0x1421   : > { %7745 = vmatprep.subr.mxu0 %v11275_v56  ;;  %7783 = vmatprep.subr.mxu1 %v11275_v56 }
0x1422   : > { %7702 = vmatprep.mubr.f32.mxu0 %v10346_v25  ;;  %7740 = vmatprep.mubr.f32.mxu1 %v10346_v25 }
0x1423   : > { %7703 = vmatmul.mubr.f32.gmra.mxu0 %v10344_v6  ;;  %7741 = vmatmul.mubr.f32.gmra.mxu1 %v10344_v6  ;;  %v4161_v54 = vpop.permute.xlu1 %4160  ;;  %v4132_v15 = vpop.permute.xlu0 %4131 }
0x1424   : > { %7746 = vmatpush3.msra.mxu0 %v11275_v56  ;;  %7784 = vmatpush3.msra.mxu1 %v11275_v56  ;;  %v4178_v8 = vmul.f32 %v4161_v54, %v10336_v24 }
0x1425   : > { %7747 = vmatprep.subr.mxu0 %v11275_v56  ;;  %7785 = vmatprep.subr.mxu1 %v11275_v56 }
0x1426   : > { %7748 = vmatpush3.msra.mxu0 %v11275_v56  ;;  %7786 = vmatpush3.msra.mxu1 %v11275_v56 }
0x1427   : > { %7749 = vmatprep.subr.mxu0 %v11275_v56  ;;  %7787 = vmatprep.subr.mxu1 %v11275_v56  ;;  %v4166_v59 = vpop.permute.xlu1 %4165  ;;  %v4137_v50 = vpop.permute.xlu0 %4136 }
0x1428   : > { %7750 = vmatpush3.msra.mxu0 %v11275_v56  ;;  %7788 = vmatpush3.msra.mxu1 %v11275_v56  ;;  %v4179_v52 = vmul.f32 %v4166_v59, %v10334_v41 }
0x1429   : > { %7751 = vmatprep.subr.mxu0 %v11275_v56  ;;  %7789 = vmatprep.subr.mxu1 %v11275_v56 }
0x142a   : > { %7752 = vmatpush3.msra.mxu0 %v11275_v56  ;;  %7790 = vmatpush3.msra.mxu1 %v11275_v56 }
0x142b   : > { %7753 = vmatprep.subr.mxu0 %v11275_v56  ;;  %7791 = vmatprep.subr.mxu1 %v11275_v56  ;;  %v4199_v2 = vpop.permute.xlu1 %4198  ;;  %v4194_v1 = vpop.permute.xlu0 %4193 }
0x142c   : > { %7754 = vmatpush3.msra.mxu0 %v11275_v56  ;;  %7792 = vmatpush3.msra.mxu1 %v11275_v56 }
0x142d   : > { %7755 = vmatprep.subr.mxu0 %v11275_v56  ;;  %7793 = vmatprep.subr.mxu1 %v11275_v56 }
0x142e   : > { %7756 = vmatpush3.msra.mxu0 %v11275_v56  ;;  %7794 = vmatpush3.msra.mxu1 %v11275_v56 }
0x142f   : > { %7757 = vmatprep.subr.mxu0 %v11275_v56  ;;  %7795 = vmatprep.subr.mxu1 %v11275_v56  ;;  %v4171_v12 = vpop.permute.xlu1 %4170  ;;  %v4142_v42 = vpop.permute.xlu0 %4141 }
0x1430   : > { %7758 = vmatpush3.msra.mxu0 %v11275_v56  ;;  %7796 = vmatpush3.msra.mxu1 %v11275_v56  ;;  %v4180_v54 = vmul.f32 %v4171_v12, %v10346_v25 }
0x1431   : > { %7759 = vmatprep.subr.mxu0 %v11275_v56  ;;  %7797 = vmatprep.subr.mxu1 %v11275_v56 }
0x1432   : > { %7760 = vmatpush3.msra.mxu0 %v11275_v56  ;;  %7798 = vmatpush3.msra.mxu1 %v11275_v56 }
0x1433   : > { %7761 = vmatprep.subr.mxu0 %v11275_v56  ;;  %7799 = vmatprep.subr.mxu1 %v11275_v56  ;;  %v4176_v28 = vpop.permute.xlu1 %4175  ;;  %v4147_v34 = vpop.permute.xlu0 %4146 }
0x1434   : > { %7762 = vmatpush3.msra.mxu0 %v11275_v56  ;;  %7800 = vmatpush3.msra.mxu1 %v11275_v56  ;;  %v4181_v61 = vmul.f32 %v4176_v28, %v10344_v6 }
0x1435   : > { %7763 = vmatprep.subr.mxu0 %v11275_v56  ;;  %7801 = vmatprep.subr.mxu1 %v11275_v56 }
0x1436   : > { %7764 = vmatpush3.msra.mxu0 %v11275_v56  ;;  %7802 = vmatpush3.msra.mxu1 %v11275_v56 }
0x1437   : > { %7765 = vmatprep.subr.mxu0 %v11275_v56  ;;  %7803 = vmatprep.subr.mxu1 %v11275_v56  ;;  %v4227_v51 = vpop.permute.xlu1 %4226  ;;  %v4204_v31 = vpop.permute.xlu0 %4203 }
0x1438   : > { %7766 = vmatpush3.msra.mxu0 %v11275_v56  ;;  %7804 = vmatpush3.msra.mxu1 %v11275_v56 }
0x1439   : > { %7767 = vmatprep.subr.mxu0 %v11275_v56  ;;  %7805 = vmatprep.subr.mxu1 %v11275_v56 }
0x143a   : > { %7768 = vmatpush3.msra.mxu0 %v11275_v56  ;;  %7806 = vmatpush3.msra.mxu1 %v11275_v56 }
0x143b   : > { %7769 = vmatprep.subr.mxu0 %v11275_v56  ;;  %7807 = vmatprep.subr.mxu1 %v11275_v56  ;;  %v4232_v21 = vpop.permute.xlu1 %4231  ;;  %v4209_v0 = vpop.permute.xlu0 %4208 }
0x143c   : > { %7770 = vmatpush3.msra.mxu0 %v11275_v56  ;;  %7808 = vmatpush3.msra.mxu1 %v11275_v56 }
0x143d   : > { %7771 = vmatprep.subr.mxu0 %v11275_v56  ;;  %7809 = vmatprep.subr.mxu1 %v11275_v56 }
0x143e   : > { %7772 = vmatpush3.msra.mxu0 %v11275_v56  ;;  %7810 = vmatpush3.msra.mxu1 %v11275_v56 }
0x143f   : > { %7773 = vmatprep.subr.mxu0 %v11275_v56  ;;  %7811 = vmatprep.subr.mxu1 %v11275_v56  ;;  %v4242_v28 = vpop.permute.xlu1 %4241 }
0x1440   : > { %7774 = vmatpush3.msra.mxu0 %v11275_v56  ;;  %7812 = vmatpush3.msra.mxu1 %v11275_v56 }
0x14df   : > { %v7701_v60 = vpop.f32.mrf.mxu0  ;;  %v7739_v39 = vpop.f32.mrf.mxu1 }
0x14e0   : > { %v4150_v4 = vmul.f32 %v7701_v60, %v4137_v50  ;;  %v4212_v48 = vmul.f32 %v7739_v39, %v4199_v2  ;;  %v4257_v2 = vstv %s6304_s2 }
0x14e1   : > { %v4020_v13 = vpop.f32.mrf.mxu0  ;;  %v4105_v49 = vpop.f32.mrf.mxu1 }
0x14e2   : > { %v4183_v9 = vadd.f32 %v4179_v52, %v4150_v4  ;;  %v4149_v5 = vmul.f32 %v4132_v15, %v4020_v13  ;;  %v4211_v7 = vmul.f32 %v4194_v1, %v4105_v49 }
0x14e3   : > { %v7704_v17 = vpop.f32.mrf.mxu0  ;;  %v7742_v16 = vpop.f32.mrf.mxu1 }
0x14e4   : > { %v4216_v55 = vadd.f32 %v4212_v48, %v4183_v9  ;;  %v4182_v53 = vadd.f32 %v4178_v8, %v4149_v5  ;;  %v4152_v26 = vmul.f32 %v7704_v17, %v4147_v34  ;;  %v4214_v27 = vmul.f32 %v7742_v16, %v4209_v0  ;;  %v4237_v16 = vpop.permute.xlu0 %4236 }
0x14e5   : > { %v4030_v41 = vpop.f32.mrf.mxu0  ;;  %v4115_v24 = vpop.f32.mrf.mxu1 }
0x14e6   : > { %v4245_v59 = vadd.f32 %v4232_v21, %v4216_v55  ;;  %v4215_v50 = vadd.f32 %v4211_v7, %v4182_v53  ;;  %v4185_v60 = vadd.f32 %v4181_v61, %v4152_v26  ;;  %v4151_v22 = vmul.f32 %v4142_v42, %v4030_v41 }
0x14e7   : > { %v4213_v4 = vmul.f32 %v4204_v31, %v4115_v24 }
0x14e8   : > { %v4254_v15 = vmin.f32 %v4245_v59, 0.0  ;;  %v4244_v39 = vadd.f32 %v4227_v51, %v4215_v50  ;;  %v4218_v6 = vadd.f32 %v4214_v27, %v4185_v60  ;;  %v4184_v52 = vadd.f32 %v4180_v54, %v4151_v22 }
0x14e9   : > { %v4250_v17 = vmax.f32 %v4245_v59, 0.0 }
0x14ea   : > { %v4259_v13 = vmul.f32 %v4257_v2, %v4254_v15  ;;  %v4253_v8 = vmin.f32 %v4244_v39, 0.0  ;;  %v4247_v1 = vadd.f32 %v4242_v28, %v4218_v6  ;;  %v4217_v0 = vadd.f32 %v4213_v4, %v4184_v52 }
0x14eb   : > { %v4249_v7 = vmax.f32 %v4244_v39, 0.0 }
0x14ec   : > { %v4256_v55 = vmin.f32 %v4247_v1, 0.0  ;;  %v4258_v26 = vmul.f32 %v4257_v2, %v4253_v8  ;;  %v10418_v53 = vadd.f32 %v4259_v13, %v4250_v17  ;;  %v4246_v61 = vadd.f32 %v4237_v16, %v4217_v0 }
0x14ed   : > { %v4252_v27 = vmax.f32 %v4247_v1, 0.0 }
0x14ee   : > { %v10420_v25 = vadd.f32 %v4258_v26, %v4249_v7  ;;  %v4261_v12 = vmul.f32 %v4257_v2, %v4256_v55  ;;  %v4255_v42 = vmin.f32 %v4246_v61, 0.0  ;;  %v4362_v34 = vmul.f32 %v10418_v53, %v10418_v53 }
0x14ef   : > { %v4251_v51 = vmax.f32 %v4246_v61, 0.0 }
0x14f0   : > { %7775 = vmatprep.mubr.f32.mxu0 %v10420_v25  ;;  %v4361_v22 = vmul.f32 %v10420_v25, %v10420_v25  ;;  %v4260_v31 = vmul.f32 %v4257_v2, %v4255_v42  ;;  %v10428_v49 = vadd.f32 %v4261_v12, %v4252_v27 }
0x14f1   : > { %7776 = vmatmul.mubr.f32.vlgmr.msra.gmra.mxu0 %v10418_v53 }
0x14f2   : > { %7813 = vmatprep.mubr.f32.mxu1 %v4361_v22  ;;  %v10430_v21 = vadd.f32 %v4260_v31, %v4251_v51  ;;  %v4364_v48 = vmul.f32 %v10428_v49, %v10428_v49 }
0x14f3   : > { %7814 = vmatmul.mubr.f32.vlgmr.msra.gmra.mxu1 %v4362_v34 }
0x14f4   : > { %7778 = vmatprep.mubr.f32.mxu0 %v10430_v21  ;;  %v4363_v9 = vmul.f32 %v10430_v21, %v10430_v21 }
0x14f5   : > { %7779 = vmatmul.mubr.f32.gmra.mxu0 %v10428_v49 }
0x14f6   : > { %7816 = vmatprep.mubr.f32.mxu1 %v4363_v9 }
0x14f7   : > { %7817 = vmatmul.mubr.f32.gmra.mxu1 %v4364_v48 }
0x15b1   : > { %v7777_v5 = vpop.f32.mrf.mxu0 }
0x15b2   : > { %v4451_v54 = vsel %vm1057_vm0, %v7777_v5, 0.0 }
0x15b3   : > { %v4342_v41 = vpop.f32.mrf.mxu0  ;;  %v7815_v59 = vpop.f32.mrf.mxu1 }
0x15b4   : > { %v4450_v50 = vsel %vm1057_vm0, %v4342_v41, 0.0  ;;  %v4468_v28 = vsel %vm1057_vm0, %v7815_v59, 0.0 }
0x15b5   : > { %v4431_v60 = vpop.f32.mrf.mxu1  ;;  %v7780_v24 = vpop.f32.mrf.mxu0  ;;  %v4452_v15 = vadd.f32 %v4451_v54, %v4450_v50 }
0x15b6   : > { %v4467_v2 = vsel %vm1057_vm0, %v4431_v60, 0.0  ;;  %v4455_v1 = vsel %vm1057_vm0, %v7780_v24, 0.0 }
0x15b7   : > { %v4352_v39 = vpop.f32.mrf.mxu0  ;;  %v7818_v6 = vpop.f32.mrf.mxu1  ;;  %v4469_v4 = vadd.f32 %v4468_v28, %v4467_v2  ;;  %v6308_v28 = vld [vmem:[%s11136_s13 + $0x58] sm:$0xff] }
0x15b8   : > { %v4453_v52 = vsel %vm1057_vm0, %v4352_v39, 0.0  ;;  %v4472_v55 = vsel %vm1057_vm0, %v7818_v6, 0.0 }
0x15b9   : > { %v4454_v13 = vadd.f32 %v4453_v52, %v4452_v15  ;;  %v4441_v8 = vpop.f32.mrf.mxu1  ;;  %v6307_v52 = vld [vmem:[%s11136_s13 + $0x50] sm:$0xff] }
0x15ba   : > { %v4470_v17 = vsel %vm1057_vm0, %v4441_v8, 0.0 }
0x15bb   : > { %v4456_v0 = vadd.f32 %v4455_v1, %v4454_v13  ;;  %v4471_v16 = vadd.f32 %v4470_v17, %v4469_v4  ;;  %v6312_v1 = vld [vmem:[%s11137_s14 + $0x58] sm:$0xff]  ;;  %v6306_v17 = vld [vmem:[%s11136_s13 + $0x48] sm:$0xff] }
0x15bd   : > { %v4473_v7 = vadd.f32 %v4472_v55, %v4471_v16  ;;  %4457 = vadd.xlane.f32.xlu0 %v4456_v0  ;;  %v6305_v0 = vld [vmem:[%s11136_s13 + $0x40] sm:$0xff] }
0x15bf   : > { %4474 = vadd.xlane.f32.xlu1 %v4473_v7 }
0x1646   : > { %v4458_v26 = vpop.xlane.xlu0 %4457 }
0x1647   : > { %v4459_v61 = vrot.slane %v4458_v26, 4 }
0x1648   : > { %v4475_v12 = vpop.xlane.xlu1 %4474 }
0x1649   : > { %v4460_v42 = vadd.f32 %v4459_v61, %v4458_v26  ;;  %v4476_v22 = vrot.slane %v4475_v12, 4 }
0x164b   : > { %v4461_v27 = vrot.slane %v4460_v42, 2  ;;  %v4477_v34 = vadd.f32 %v4476_v22, %v4475_v12  ;;  %v6311_v12 = vld [vmem:[%s11137_s14 + $0x50] sm:$0xff] }
0x164d   : > { %v4478_v51 = vrot.slane %v4477_v34, 2  ;;  %v4462_v31 = vadd.f32 %v4461_v27, %v4460_v42 }
0x164f   : > { %v4463_v9 = vrot.slane %v4462_v31, 1  ;;  %v4479_v48 = vadd.f32 %v4478_v51, %v4477_v34  ;;  %v6310_v34 = vld [vmem:[%s11137_s14 + $0x48] sm:$0xff]  ;;  %v6309_v51 = vld [vmem:[%s11137_s14 + $0x40] sm:$0xff] }
0x1651   : > { %v4464_v5 = vadd.f32 %v4463_v9, %v4462_v31  ;;  %v4480_v41 = vrot.slane %v4479_v48, 1 }
0x1653   : > { %8116 = vpush %v4464_v5  ;;  %v4481_v59 = vadd.f32 %v4480_v41, %v4479_v48  ;;  %v6318_v48 = vld [vmem:[%s11139_s16 + $0x48] sm:$0xff]  ;;  %v6317_v5 = vld [vmem:[%s11139_s16 + $0x40] sm:$0xff] }
0x1654   : > { %v6313_v41 = vld [vmem:[%s11138_s15 + $0x40] sm:$0xff] }
0x1655   : > { %8118 = vpush %v4481_v59  ;;  %7827 = vmatprep.mubr.msk.f32.mxu0 %vm2264_vm11, %v6313_v41  ;;  %v6329_v59 = vld [vmem:[%s11129_s6 + $0x60] sm:$0xff] }
0x1684   : > { %s8117_s22 = spop %8116 }
0x1685   : > { %v4466_v50 = vstv %s8117_s22 }
0x1686   : > { %v4484_v60 = vmul.f32 0.00024414063, %v4466_v50  ;;  %s8119_s27 = spop %8118  ;;  %v6330_v50 = vld [vmem:[%s11129_s6 + $0x68] sm:$0xff] }
0x1687   : > { %v4483_v24 = vstv %s8119_s27 }
0x1688   : > { %v4485_v54 = vmul.f32 0.00024414063, %v4483_v24  ;;  %v4486_v2 = vmul.f32 %v4484_v60, %v4484_v60  ;;  %v6332_v24 = vld [vmem:[%s11129_s6 + $0x78] sm:$0xff] }
0x168a   : > { %v4487_v15 = vsub.f32 %v4485_v54, %v4486_v2 }
0x168c   : > { %v4488_v39 = vmax.f32 %v4487_v15, 0.0 }
0x168e   : > { %v4489_v6 = vadd.f32 1e-08, %v4488_v39 }
0x1690   : > { %8206 = vrsqrt.f32 %v4489_v6 }
0x169d   : > { %v8207_v4 = vpop.eup %8206 }
0x169e   : > { %v4494_v13 = vmul.f32 %v8207_v4, %v6308_v28  ;;  %v4493_v8 = vmul.f32 %v8207_v4, %v6307_v52  ;;  %v4492_v7 = vmul.f32 %v8207_v4, %v6306_v17  ;;  %v4491_v61 = vmul.f32 %v8207_v4, %v6305_v0 }
0x16a0   : > { %4520 = vperm.xlu0 %8193, %v4494_v13   ;;  %4515 = vperm.xlu1 %8192, %v4493_v8   ;;  %v4498_v16 = vmul.f32 %v4494_v13, %v4484_v60  ;;  %v4497_v26 = vmul.f32 %v4493_v8, %v4484_v60  ;;  %v4496_v22 = vmul.f32 %v4492_v7, %v4484_v60 }
0x16a1   : > { %v4495_v27 = vmul.f32 %v4491_v61, %v4484_v60  ;;  %v6331_v60 = vld [vmem:[%s11129_s6 + $0x70] sm:$0xff] }
0x16a2   : > { %v4502_v55 = vsub.f32 %v6312_v1, %v4498_v16  ;;  %v4501_v42 = vsub.f32 %v6311_v12, %v4497_v26  ;;  %v4500_v31 = vsub.f32 %v6310_v34, %v4496_v22  ;;  %v6326_v34 = vld [vmem:[%s11128_s5 + $0x68] sm:$0xff] }
0x16a3   : > { %v4499_v9 = vsub.f32 %v6309_v51, %v4495_v27  ;;  %v6327_v51 = vld [vmem:[%s11128_s5 + $0x70] sm:$0xff] }
0x16a4   : > { %4544 = vperm.xlu0 %8193, %v4502_v55   ;;  %4510 = vperm.xlu1 %8192, %v4492_v7  }
0x16a8   : > { %4539 = vperm.xlu0 %8193, %v4501_v42   ;;  %4505 = vperm.xlu1 %8192, %v4491_v61  }
0x16ac   : > { %4534 = vperm.xlu0 %8193, %v4500_v31   ;;  %4529 = vperm.xlu1 %8192, %v4499_v9   ;;  %v6316_v31 = vld [vmem:[%s11138_s15 + $0x58] sm:$0xff] }
0x16b0   : > { %4568 = vperm.xlu0 %8193, %v6318_v48   ;;  %4563 = vperm.xlu1 %8192, %v6317_v5  }
0x16b4   : > { %4694 = vperm.xlu0 %8193, %v6329_v59   ;;  %4699 = vperm.xlu1 %8192, %v6330_v50   ;;  %v4818_v59 = vstv %s6337_s7  ;;  %s6028_s7 = sshll.u32 %s648_s21, 3 }
0x16b8   : > { %4704 = vperm.xlu0 %8193, %v6331_v60   ;;  %4709 = vperm.xlu1 %8192, %v6332_v24  }
0x171b   : > { %v4521_v54 = vpop.permute.xlu0 %4520  ;;  %v4516_v2 = vpop.permute.xlu1 %4515 }
0x171c   : > { %v4526_v15 = vmul.f32 %v4521_v54, %v10428_v49  ;;  %v4525_v52 = vmul.f32 %v4516_v2, %v10430_v21  ;;  %v6314_v21 = vld [vmem:[%s11138_s15 + $0x48] sm:$0xff] }
0x171f   : > { %v4545_v39 = vpop.permute.xlu0 %4544  ;;  %v4511_v6 = vpop.permute.xlu1 %4510 }
0x1720   : > { %v4550_v28 = vadd.f32 %v4545_v39, %v4526_v15  ;;  %v4524_v1 = vmul.f32 %v4511_v6, %v10418_v53  ;;  %v6325_v53 = vld [vmem:[%s11128_s5 + $0x60] sm:$0xff] }
0x1721   : > { %7837 = vmatprep.mubr.msk.f32.mxu1 %vm1135_vm1, %v6325_v53 }
0x1722   : > { %7819 = vmatprep.subr.mxu0 %v4550_v28 }
0x1723   : > { %7820 = vmatpush3.msra.mxu0 %v4550_v28  ;;  %v4540_v4 = vpop.permute.xlu0 %4539  ;;  %v4506_v13 = vpop.permute.xlu1 %4505 }
0x1724   : > { %v4549_v8 = vadd.f32 %v4540_v4, %v4525_v52  ;;  %v4523_v16 = vmul.f32 %v4506_v13, %v10420_v25 }
0x1726   : > { %7821 = vmatprep.subr.mxu0 %v4549_v8 }
0x1727   : > { %7822 = vmatpush3.msra.mxu0 %v4549_v8  ;;  %v4535_v17 = vpop.permute.xlu0 %4534  ;;  %v4530_v0 = vpop.permute.xlu1 %4529 }
0x1728   : > { %v4548_v55 = vadd.f32 %v4535_v17, %v4524_v1  ;;  %v4547_v49 = vadd.f32 %v4530_v0, %v4523_v16 }
0x172a   : > { %7823 = vmatprep.subr.mxu0 %v4548_v55 }
0x172b   : > { %7824 = vmatpush3.msra.mxu0 %v4548_v55  ;;  %v4569_v25 = vpop.permute.xlu0 %4568  ;;  %v4564_v61 = vpop.permute.xlu1 %4563 }
0x172c   : > { %7825 = vmatprep.subr.mxu0 %v4547_v49 }
0x172d   : > { %7826 = vmatpush3.msra.mxu0 %v4547_v49 }
0x172e   : > { %7828 = vmatmul.mubr.msk.f32.vlgmr.msra.gmra.mxu0 %vm2264_vm11, %v6314_v21  ;;  %7843 = vmatprep.subr.mxu0 %v11275_v56 }
0x172f   : > { %7844 = vmatpush3.msra.mxu0 %v11275_v56  ;;  %v4700_v9 = vpop.permute.xlu1 %4699  ;;  %v4695_v5 = vpop.permute.xlu0 %4694 }
0x1730   : > { %7845 = vmatprep.subr.mxu0 %v11275_v56 }
0x1731   : > { %7846 = vmatpush3.msra.mxu0 %v11275_v56 }
0x1732   : > { %7847 = vmatprep.subr.mxu0 %v11275_v56 }
0x1733   : > { %7848 = vmatpush3.msra.mxu0 %v11275_v56  ;;  %v4710_v54 = vpop.permute.xlu1 %4709  ;;  %v4705_v4 = vpop.permute.xlu0 %4704 }
0x1734   : > { %7849 = vmatprep.subr.mxu0 %v11275_v56 }
0x1735   : > { %7850 = vmatpush3.msra.mxu0 %v11275_v56 }
0x1736   : > { %7851 = vmatprep.subr.mxu0 %v11275_v56 }
0x1737   : > { %7852 = vmatpush3.msra.mxu0 %v11275_v56 }
0x1738   : > { %7853 = vmatprep.subr.mxu0 %v11275_v56 }
0x1739   : > { %7854 = vmatpush3.msra.mxu0 %v11275_v56 }
0x173a   : > { %7855 = vmatprep.subr.mxu0 %v11275_v56 }
0x173b   : > { %7856 = vmatpush3.msra.mxu0 %v11275_v56 }
0x173c   : > { %7857 = vmatprep.subr.mxu0 %v11275_v56 }
0x173d   : > { %7858 = vmatpush3.msra.mxu0 %v11275_v56 }
0x173e   : > { %7859 = vmatprep.subr.mxu0 %v11275_v56 }
0x173f   : > { %7860 = vmatpush3.msra.mxu0 %v11275_v56 }
0x1740   : > { %7861 = vmatprep.subr.mxu0 %v11275_v56 }
0x1741   : > { %7862 = vmatpush3.msra.mxu0 %v11275_v56 }
0x1742   : > { %7863 = vmatprep.subr.mxu0 %v11275_v56 }
0x1743   : > { %7864 = vmatpush3.msra.mxu0 %v11275_v56 }
0x1744   : > { %7865 = vmatprep.subr.mxu0 %v11275_v56 }
0x1745   : > { %7866 = vmatpush3.msra.mxu0 %v11275_v56 }
0x1746   : > { %7867 = vmatprep.subr.mxu0 %v11275_v56 }
0x1747   : > { %7868 = vmatpush3.msra.mxu0 %v11275_v56 }
0x1748   : > { %7869 = vmatprep.subr.mxu0 %v11275_v56 }
0x1749   : > { %7870 = vmatpush3.msra.mxu0 %v11275_v56 }
0x174a   : > { %7871 = vmatprep.subr.mxu0 %v11275_v56 }
0x174b   : > { %7872 = vmatpush3.msra.mxu0 %v11275_v56 }
0x174c   : > { %7873 = vmatprep.subr.mxu0 %v11275_v56 }
0x174d   : > { %7874 = vmatpush3.msra.mxu0 %v11275_v56 }
0x174e   : > { %7919 = vmatprep.subr.msk.mxu0 %vm11345_vm3, %v11275_v56  ;;  %vm11352_vm3 = vmmov %vm11351_vm2 }
0x17ee   : > { %v7829_v7 = vpop.f32.mrf.mxu0 }
0x17ef   : > { %v4665_v26 = vadd.f32 %v7829_v7, %v4569_v25 }
0x17f0   : > { %v4659_v12 = vpop.f32.mrf.mxu0 }
0x17f1   : > { %v4679_v42 = vadd.f32 %v4665_v26, %v9976_v14  ;;  %v4660_v22 = vadd.f32 %v4659_v12, %v4564_v61  ;;  %v6328_v14 = vld [vmem:[%s11128_s5 + $0x78] sm:$0xff] }
0x17f3   : > { %v4678_v27 = vadd.f32 %v4660_v22, %v9979_v62  ;;  %7833 = vmatprep.subr.mxu1 %v4679_v42  ;;  %v6315_v62 = vld [vmem:[%s11138_s15 + $0x50] sm:$0xff] }
0x17f4   : > { %7834 = vmatpush3.msra.mxu1 %v4679_v42  ;;  %7830 = vmatprep.mubr.msk.f32.mxu0 %vm2264_vm11, %v6315_v62 }
0x17f5   : > { %7835 = vmatprep.subr.mxu1 %v4678_v27  ;;  %7831 = vmatmul.mubr.msk.f32.gmra.mxu0 %vm2264_vm11, %v6316_v31 }
0x17f6   : > { %7836 = vmatpush3.msra.mxu1 %v4678_v27 }
0x17f7   : > { %7838 = vmatmul.mubr.msk.f32.vlgmr.msra.gmra.mxu1 %vm1135_vm1, %v6326_v34  ;;  %7881 = vmatprep.subr.mxu1 %v11275_v56 }
0x17f8   : > { %7840 = vmatprep.mubr.msk.f32.mxu1 %vm1135_vm1, %v6327_v51  ;;  %7882 = vmatpush3.msra.mxu1 %v11275_v56 }
0x17f9   : > { %7883 = vmatprep.subr.mxu1 %v11275_v56 }
0x17fa   : > { %7884 = vmatpush3.msra.mxu1 %v11275_v56 }
0x17fb   : > { %7841 = vmatmul.mubr.msk.f32.gmra.mxu1 %vm1135_vm1, %v6328_v14  ;;  %7885 = vmatprep.subr.mxu1 %v11275_v56 }
0x17fc   : > { %7886 = vmatpush3.msra.mxu1 %v11275_v56 }
0x17fd   : > { %7887 = vmatprep.subr.mxu1 %v11275_v56 }
0x17fe   : > { %7888 = vmatpush3.msra.mxu1 %v11275_v56 }
0x17ff   : > { %7889 = vmatprep.subr.mxu1 %v11275_v56 }
0x1800   : > { %7890 = vmatpush3.msra.mxu1 %v11275_v56 }
0x1801   : > { %7891 = vmatprep.subr.mxu1 %v11275_v56 }
0x1802   : > { %7892 = vmatpush3.msra.mxu1 %v11275_v56 }
0x1803   : > { %7893 = vmatprep.subr.mxu1 %v11275_v56 }
0x1804   : > { %7894 = vmatpush3.msra.mxu1 %v11275_v56 }
0x1805   : > { %7895 = vmatprep.subr.mxu1 %v11275_v56 }
0x1806   : > { %7896 = vmatpush3.msra.mxu1 %v11275_v56 }
0x1807   : > { %7897 = vmatprep.subr.mxu1 %v11275_v56 }
0x1808   : > { %7898 = vmatpush3.msra.mxu1 %v11275_v56 }
0x1809   : > { %7899 = vmatprep.subr.mxu1 %v11275_v56 }
0x180a   : > { %7900 = vmatpush3.msra.mxu1 %v11275_v56 }
0x180b   : > { %7901 = vmatprep.subr.mxu1 %v11275_v56 }
0x180c   : > { %7902 = vmatpush3.msra.mxu1 %v11275_v56 }
0x180d   : > { %7903 = vmatprep.subr.mxu1 %v11275_v56 }
0x180e   : > { %7904 = vmatpush3.msra.mxu1 %v11275_v56 }
0x180f   : > { %7905 = vmatprep.subr.mxu1 %v11275_v56 }
0x1810   : > { %7906 = vmatpush3.msra.mxu1 %v11275_v56 }
0x1811   : > { %7907 = vmatprep.subr.mxu1 %v11275_v56 }
0x1812   : > { %7908 = vmatpush3.msra.mxu1 %v11275_v56 }
0x1813   : > { %7909 = vmatprep.subr.mxu1 %v11275_v56 }
0x1814   : > { %7910 = vmatpush3.msra.mxu1 %v11275_v56 }
0x1815   : > { %7911 = vmatprep.subr.mxu1 %v11275_v56 }
0x1816   : > { %7912 = vmatpush3.msra.mxu1 %v11275_v56 }
0x1817   : > { %7957 = vmatprep.subr.msk.mxu1 %vm11346_vm4, %v11275_v56  ;;  %vm11353_vm4 = vcmp.eq.s32.totalorder %v8772_v35, 2 }
0x18b7   : > { %v7839_v48 = vpop.f32.mrf.mxu1 }
0x18b8   : > { %v4796_v41 = vadd.f32 %v7839_v48, %v4700_v9 }
0x18b9   : > { %v4790_v50 = vpop.f32.mrf.mxu1 }
0x18ba   : > { %v4815_v60 = vmin.f32 %v4796_v41, 0.0  ;;  %v4791_v24 = vadd.f32 %v4790_v50, %v4695_v5  ;;  %v4811_v28 = vmax.f32 %v4796_v41, 0.0 }
0x18bb   : > { %v7842_v2 = vpop.f32.mrf.mxu1 }
0x18bc   : > { %v4820_v15 = vmul.f32 %v4818_v59, %v4815_v60  ;;  %v4814_v39 = vmin.f32 %v4791_v24, 0.0  ;;  %v4806_v6 = vadd.f32 %v7842_v2, %v4710_v54  ;;  %v4810_v13 = vmax.f32 %v4791_v24, 0.0 }
0x18bd   : > { %v4800_v52 = vpop.f32.mrf.mxu1 }
0x18be   : > { %v4819_v8 = vmul.f32 %v4818_v59, %v4814_v39  ;;  %v4817_v1 = vmin.f32 %v4806_v6, 0.0  ;;  %v10596_v17 = vadd.f32 %v4820_v15, %v4811_v28  ;;  %v4801_v0 = vadd.f32 %v4800_v52, %v4705_v4 }
0x18bf   : > { %v4813_v21 = vmax.f32 %v4806_v6, 0.0 }
0x18c0   : > { %v4822_v16 = vmul.f32 %v4818_v59, %v4817_v1  ;;  %v10598_v55 = vadd.f32 %v4819_v8, %v4810_v13  ;;  %v4816_v49 = vmin.f32 %v4801_v0, 0.0  ;;  %v4923_v25 = vmul.f32 %v10596_v17, %v10596_v17 }
0x18c1   : > { %v4812_v7 = vmax.f32 %v4801_v0, 0.0 }
0x18c2   : > { %7875 = vmatprep.mubr.f32.mxu0 %v10598_v55  ;;  %v4922_v53 = vmul.f32 %v10598_v55, %v10598_v55  ;;  %v4821_v26 = vmul.f32 %v4818_v59, %v4816_v49  ;;  %v10606_v61 = vadd.f32 %v4822_v16, %v4813_v21 }
0x18c3   : > { %7876 = vmatmul.mubr.f32.vlgmr.msra.gmra.mxu0 %v10596_v17 }
0x18c4   : > { %7913 = vmatprep.mubr.f32.mxu1 %v4922_v53  ;;  %7920 = vmatpush3.msk.msra.mxu0 %vm11347_vm5, %v11275_v56  ;;  %v10611_v12 = vadd.f32 %v4821_v26, %v4812_v7  ;;  %v4925_v42 = vmul.f32 %v10606_v61, %v10606_v61  ;;  %vm11354_vm5 = vcmp.eq.s32.totalorder %v8775_v36, 2  ;;  %v6338_v7 = vld [vmem:[%s11131_s8 + $0x60] sm:$0xff] }
0x18c5   : > { %7914 = vmatmul.mubr.f32.vlgmr.msra.gmra.mxu1 %v4923_v25  ;;  %7921 = vmatprep.subr.msk.mxu0 %vm11348_vm6, %v11275_v56  ;;  %vm11355_vm6 = vmmov %vm11353_vm4  ;;  %v6339_v25 = vld [vmem:[%s11131_s8 + $0x68] sm:$0xff] }
0x18c6   : > { %7958 = vmatpush3.msk.msra.mxu1 %vm11349_vm7, %v11275_v56  ;;  %7922 = vmatpush3.msk.msra.mxu0 %vm11350_vm8, %v11275_v56  ;;  %v4924_v29 = vmul.f32 %v10611_v12, %v10611_v12  ;;  %vm11356_vm7 = vmmov %vm11354_vm5  ;;  %vm11357_vm8 = vcmp.eq.s32.totalorder %v8778_v37, 2 }
0x18c7   : > { %7878 = vmatprep.mubr.f32.mxu0 %v10611_v12  ;;  %7959 = vmatprep.subr.msk.mxu1 %vm11351_vm2, %v11275_v56  ;;  %vm11358_vm2 = vcmp.eq.s32.totalorder %v8781_v38, 2  ;;  %v6343_v38 = vld [vmem:[%s11132_s9 + $0x68] sm:$0xff] }
0x18c8   : > { %7879 = vmatmul.mubr.f32.gmra.mxu0 %v10606_v61  ;;  %7960 = vmatpush3.msk.msra.mxu1 %vm11352_vm3, %v11275_v56  ;;  %vm11359_vm3 = vmmov %vm11357_vm8 }
0x18c9   : > { %7916 = vmatprep.mubr.f32.mxu1 %v4924_v29  ;;  %7923 = vmatprep.subr.msk.mxu0 %vm11353_vm4, %v11275_v56  ;;  %vm11360_vm4 = vmmov %vm11358_vm2 }
0x18ca   : > { %7917 = vmatmul.mubr.f32.gmra.mxu1 %v4925_v42  ;;  %7961 = vmatprep.subr.msk.mxu1 %vm11354_vm5, %v11275_v56  ;;  %vm11361_vm5 = vcmp.eq.s32.totalorder %v8803_v40, 2  ;;  %v6342_v40 = vld [vmem:[%s11132_s9 + $0x60] sm:$0xff] }
0x18cb   : > { %7924 = vmatpush3.msk.msra.mxu0 %vm11355_vm6, %v11275_v56  ;;  %7962 = vmatpush3.msk.msra.mxu1 %vm11356_vm7, %v11275_v56  ;;  %vm11362_vm6 = vcmp.eq.s32.totalorder %v8806_v43, 2  ;;  %vm11363_vm7 = vmmov %vm11361_vm5  ;;  %v10804_v43 = vpop.f32.mrf.mxu0 }
0x18cc   : > { %7925 = vmatprep.subr.msk.mxu0 %vm11357_vm8, %v11275_v56  ;;  %7963 = vmatprep.subr.msk.mxu1 %vm11358_vm2, %v11275_v56  ;;  %vm11364_vm8 = vmmov %vm11362_vm6  ;;  %vm11365_vm2 = vcmp.eq.s32.totalorder %v8823_v44, 2 }
0x18cd   : > { %7926 = vmatpush3.msk.msra.mxu0 %vm11359_vm3, %v11275_v56  ;;  %7964 = vmatpush3.msk.msra.mxu1 %vm11360_vm4, %v11275_v56  ;;  %vm11366_vm3 = vcmp.eq.s32.totalorder %v8826_v45, 2  ;;  %vm11367_vm4 = vmmov %vm11365_vm2  ;;  %v10806_v44 = vpop.f32.mrf.mxu0 }
0x18ce   : > { %7927 = vmatprep.subr.msk.mxu0 %vm11361_vm5, %v11275_v56  ;;  %7965 = vmatprep.subr.msk.mxu1 %vm11362_vm6, %v11275_v56  ;;  %vm11368_vm5 = vmmov %vm11366_vm3  ;;  %vm11369_vm6 = vcmp.eq.s32.totalorder %v8843_v46, 2 }
0x18cf   : > { %7928 = vmatpush3.msk.msra.mxu0 %vm11363_vm7, %v11275_v56  ;;  %7966 = vmatpush3.msk.msra.mxu1 %vm11364_vm8, %v11275_v56  ;;  %vm11370_vm7 = vcmp.eq.s32.totalorder %v8846_v47, 2  ;;  %vm11371_vm8 = vmmov %vm11369_vm6 }
0x18d0   : > { %7929 = vmatprep.subr.msk.mxu0 %vm11365_vm2, %v11275_v56  ;;  %7967 = vmatprep.subr.msk.mxu1 %vm11366_vm3, %v11275_v56  ;;  %vm11372_vm2 = vmmov %vm11370_vm7  ;;  %vm11373_vm3 = vcmp.eq.s32.totalorder %v8906_v57, 2 }
0x18d1   : > { %7930 = vmatpush3.msk.msra.mxu0 %vm11367_vm4, %v11275_v56  ;;  %7968 = vmatpush3.msk.msra.mxu1 %vm11368_vm5, %v11275_v56  ;;  %vm11374_vm4 = vcmp.eq.s32.totalorder %v8909_v58, 2  ;;  %vm11375_vm5 = vmmov %vm11373_vm3 }
0x18d2   : > { %7931 = vmatprep.subr.msk.mxu0 %vm11369_vm6, %v11275_v56  ;;  %7969 = vmatprep.subr.msk.mxu1 %vm11370_vm7, %v11275_v56  ;;  %vm11376_vm6 = vmmov %vm11374_vm4  ;;  %vm11377_vm7 = vcmp.eq.s32.totalorder %v8927_v3, 2 }
0x18d3   : > { %7932 = vmatpush3.msk.msra.mxu0 %vm11371_vm8, %v11275_v56  ;;  %7970 = vmatpush3.msk.msra.mxu1 %vm11372_vm2, %v11275_v56  ;;  %vm11378_vm8 = vmmov %vm11377_vm7  ;;  %vm11379_vm2 = vcmp.eq.s32.totalorder %v8948_v10, 2 }
0x18d4   : > { %7933 = vmatprep.subr.msk.mxu0 %vm11373_vm3, %v11275_v56  ;;  %7971 = vmatprep.subr.msk.mxu1 %vm11374_vm4, %v11275_v56  ;;  %vm11380_vm3 = vcmp.eq.s32.totalorder %v8951_v11, 2  ;;  %vm11381_vm4 = vmmov %vm11379_vm2 }
0x18d5   : > { %7934 = vmatpush3.msk.msra.mxu0 %vm11375_vm5, %v11275_v56  ;;  %7972 = vmatpush3.msk.msra.mxu1 %vm11376_vm6, %v11275_v56  ;;  %vm11382_vm5 = vmmov %vm11380_vm3  ;;  %vm11384_vm6 = vcmp.eq.s32.totalorder %v8984_v19, 2 }
0x18d6   : > { %7935 = vmatprep.subr.msk.mxu0 %vm810_vm14, %v11275_v56  ;;  %7973 = vmatprep.subr.msk.mxu1 %vm11377_vm7, %v11275_v56 }
0x18d7   : > { %7936 = vmatpush3.msk.msra.mxu0 %vm810_vm14, %v11275_v56  ;;  %7974 = vmatpush3.msk.msra.mxu1 %vm11378_vm8, %v11275_v56  ;;  %vm11383_vm14 = vcmp.eq.s32.totalorder %v8981_v18, 2  ;;  %vm11386_vm8 = vmmov %vm11384_vm6 }
0x18d8   : > { %7937 = vmatprep.subr.msk.mxu0 %vm11379_vm2, %v11275_v56  ;;  %7975 = vmatprep.subr.msk.mxu1 %vm11380_vm3, %v11275_v56  ;;  %vm11385_vm7 = vmmov %vm11383_vm14  ;;  %vm11387_vm2 = vcmp.eq.s32.totalorder %v8987_v20, 2  ;;  %vm11388_vm3 = vcmp.eq.s32.totalorder %v8990_v23, 2 }
0x18d9   : > { %7938 = vmatpush3.msk.msra.mxu0 %vm11381_vm4, %v11275_v56  ;;  %7976 = vmatpush3.msk.msra.mxu1 %vm11382_vm5, %v11275_v56  ;;  %vm11389_vm4 = vmmov %vm11387_vm2 }
0x18da   : > { %7939 = vmatprep.subr.msk.mxu0 %vm11383_vm14, %v11275_v56  ;;  %7977 = vmatprep.subr.msk.mxu1 %vm11384_vm6, %v11275_v56  ;;  %vm11390_vm5 = vmmov %vm11388_vm3  ;;  %vm11392_vm14 = vcmp.eq.s32.totalorder %v11391_v30, 2  ;;  %vm11394_vm6 = vcmp.eq.s32.totalorder %v11393_v32, 2  ;;  %v6341_v30 = vld [vmem:[%s11131_s8 + $0x78] sm:$0xff]  ;;  %v6340_v32 = vld [vmem:[%s11131_s8 + $0x70] sm:$0xff] }
0x18db   : > { %7940 = vmatpush3.msk.msra.mxu0 %vm11385_vm7, %v11275_v56  ;;  %7978 = vmatpush3.msk.msra.mxu1 %vm11386_vm8, %v11275_v56  ;;  %vm11395_vm7 = vmmov %vm11392_vm14 }
0x18dc   : > { %7941 = vmatprep.subr.msk.mxu0 %vm11387_vm2, %v11275_v56  ;;  %7979 = vmatprep.subr.msk.mxu1 %vm11388_vm3, %v11275_v56  ;;  %vm11396_vm8 = vmmov %vm11394_vm6  ;;  %vm11398_vm2 = vcmp.eq.s32.totalorder %v11397_v33, 2 }
0x18dd   : > { %7942 = vmatpush3.msk.msra.mxu0 %vm11389_vm4, %v11275_v56  ;;  %7980 = vmatpush3.msk.msra.mxu1 %vm11390_vm5, %v11275_v56  ;;  %vm11400_vm3 = vmmov %vm11398_vm2 }
0x18de   : > { %7943 = vmatprep.subr.msk.mxu0 %vm11392_vm14, %v11275_v56  ;;  %7981 = vmatprep.subr.msk.mxu1 %vm11394_vm6, %v11275_v56 }
0x18df   : > { %7944 = vmatpush3.msk.msra.mxu0 %vm11395_vm7, %v11275_v56  ;;  %7982 = vmatpush3.msk.msra.mxu1 %vm11396_vm8, %v11275_v56 }
0x18e0   : > { %7945 = vmatprep.subr.msk.mxu0 %vm11398_vm2, %v11275_v56  ;;  %7983 = vmatprep.subr.msk.mxu1 %vm853_vm13, %v11275_v56 }
0x18e1   : > { %7946 = vmatpush3.msk.msra.mxu0 %vm11400_vm3, %v11275_v56  ;;  %7984 = vmatpush3.msk.msra.mxu1 %vm853_vm13, %v11275_v56 }
0x18e2   : > { %7947 = vmatprep.subr.msk.mxu0 %vm804_vm15, %v11275_v56  ;;  %7985 = vmatprep.subr.msk.mxu1 %vm852_vm12, %v11275_v56 }
0x18e3   : > { %7948 = vmatpush3.msk.msra.mxu0 %vm804_vm15, %v11275_v56  ;;  %7986 = vmatpush3.msk.msra.mxu1 %vm852_vm12, %v11275_v56 }
0x18e4   : > { %7949 = vmatprep.subr.msk.mxu0 %vm803_vm10, %v11275_v56  ;;  %7987 = vmatprep.subr.msk.mxu1 %vm851_vm9, %v11275_v56 }
0x18e5   : > { %7950 = vmatpush3.msk.msra.mxu0 %vm803_vm10, %v11275_v56  ;;  %7988 = vmatpush3.msk.msra.mxu1 %vm851_vm9, %v11275_v56 }
0x18e6   : > { %7995 = vmatprep.subr.mxu0 %v11275_v56  ;;  %8033 = vmatprep.subr.mxu1 %v11275_v56 }
0x1983   : > { %v7877_v45 = vpop.f32.mrf.mxu0 }
0x1984   : > { %v5012_v3 = vsel %vm1057_vm0, %v7877_v45, 0.0 }
0x1985   : > { %v4903_v46 = vpop.f32.mrf.mxu0  ;;  %v7915_v47 = vpop.f32.mrf.mxu1 }
0x1986   : > { %v5011_v57 = vsel %vm1057_vm0, %v4903_v46, 0.0  ;;  %v5029_v20 = vsel %vm1057_vm0, %v7915_v47, 0.0 }
0x1987   : > { %v4992_v58 = vpop.f32.mrf.mxu1  ;;  %v5013_v11 = vadd.f32 %v5012_v3, %v5011_v57 }
0x1988   : > { %v7880_v63 = vpop.f32.mrf.mxu0  ;;  %v5028_v10 = vsel %vm1057_vm0, %v4992_v58, 0.0  ;;  %v6345_v58 = vld [vmem:[%s11132_s9 + $0x78] sm:$0xff] }
0x1989   : > { %v5030_v22 = vadd.f32 %v5029_v20, %v5028_v10  ;;  %v5016_v51 = vsel %vm1057_vm0, %v7880_v63, 0.0  ;;  %v6344_v63 = vld [vmem:[%s11132_s9 + $0x70] sm:$0xff]  ;;  %v6379_v20 = vld [vmem:[%s11133_s10 + $0x128] sm:$0xff] }
0x198a   : > { %v4913_v18 = vpop.f32.mrf.mxu0  ;;  %v7918_v19 = vpop.f32.mrf.mxu1 }
0x198b   : > { %v5014_v23 = vsel %vm1057_vm0, %v4913_v18, 0.0  ;;  %v5033_v9 = vsel %vm1057_vm0, %v7918_v19, 0.0  ;;  %v6378_v18 = vld [vmem:[%s11133_s10 + $0x120] sm:$0xff]  ;;  %v6383_v19 = vld [vmem:[%s11133_s10 + $0x148] sm:$0xff] }
0x198c   : > { %v5015_v27 = vadd.f32 %v5014_v23, %v5013_v11  ;;  %v5002_v34 = vpop.f32.mrf.mxu1  ;;  %v6382_v11 = vld [vmem:[%s11133_s10 + $0x140] sm:$0xff]  ;;  %v6387_v23 = vld [vmem:[%s11133_s10 + $0x168] sm:$0xff] }
0x198d   : > { %v5031_v14 = vsel %vm1057_vm0, %v5002_v34, 0.0  ;;  %v6380_v34 = vld [vmem:[%s11133_s10 + $0x130] sm:$0xff] }
0x198e   : > { %v5017_v62 = vadd.f32 %v5016_v51, %v5015_v27  ;;  %v5032_v31 = vadd.f32 %v5031_v14, %v5030_v22  ;;  %v6386_v22 = vld [vmem:[%s11133_s10 + $0x160] sm:$0xff]  ;;  %v6384_v27 = vld [vmem:[%s11133_s10 + $0x150] sm:$0xff]  ;;  %v6385_v51 = vld [vmem:[%s11133_s10 + $0x158] sm:$0xff] }
0x198f   : > { %v6381_v14 = vld [vmem:[%s11133_s10 + $0x138] sm:$0xff] }
0x1990   : > { %v5034_v48 = vadd.f32 %v5033_v9, %v5032_v31  ;;  %5018 = vadd.xlane.f32.xlu0 %v5017_v62  ;;  %v6390_v62 = vld [vmem:[%s11134_s11 + $0x60] sm:$0xff]  ;;  %v6388_v31 = vld [vmem:[%s11133_s10 + $0x170] sm:$0xff]  ;;  %v6391_v9 = vld [vmem:[%s11134_s11 + $0x68] sm:$0xff] }
0x1992   : > { %5035 = vadd.xlane.f32.xlu1 %v5034_v48  ;;  %v6389_v48 = vld [vmem:[%s11133_s10 + $0x178] sm:$0xff] }
0x1a19   : > { %v5019_v5 = vpop.xlane.xlu0 %5018 }
0x1a1a   : > { %v5020_v41 = vrot.slane %v5019_v5, 4 }
0x1a1b   : > { %v5036_v59 = vpop.xlane.xlu1 %5035 }
0x1a1c   : > { %v5021_v50 = vadd.f32 %v5020_v41, %v5019_v5  ;;  %v5037_v60 = vrot.slane %v5036_v59, 4  ;;  %v6393_v5 = vld [vmem:[%s11134_s11 + $0x78] sm:$0xff]  ;;  %v6392_v41 = vld [vmem:[%s11134_s11 + $0x70] sm:$0xff] }
0x1a1e   : > { %v5022_v24 = vrot.slane %v5021_v50, 2  ;;  %v5038_v54 = vadd.f32 %v5037_v60, %v5036_v59 }
0x1a20   : > { %v5039_v2 = vrot.slane %v5038_v54, 2  ;;  %v5023_v15 = vadd.f32 %v5022_v24, %v5021_v50 }
0x1a22   : > { %v5024_v39 = vrot.slane %v5023_v15, 1  ;;  %v5040_v6 = vadd.f32 %v5039_v2, %v5038_v54 }
0x1a24   : > { %v5025_v28 = vadd.f32 %v5024_v39, %v5023_v15  ;;  %v5041_v52 = vrot.slane %v5040_v6, 1 }
0x1a26   : > { %8120 = vpush %v5025_v28  ;;  %v5042_v4 = vadd.f32 %v5041_v52, %v5040_v6 }
0x1a28   : > { %8122 = vpush %v5042_v4 }
0x1a57   : > { %s8121_s1 = spop %8120 }
0x1a58   : > { %v5027_v13 = vstv %s8121_s1  ;;  %s6394_s1 = sld [smem:[#allocation6 + $0x3]] }
0x1a59   : > { %v5045_v8 = vmul.f32 0.00024414063, %v5027_v13  ;;  %s8123_s3 = spop %8122 }
0x1a5a   : > { %v5044_v1 = vstv %s8123_s3 }
0x1a5b   : > { %v5046_v0 = vmul.f32 0.00024414063, %v5044_v1  ;;  %v5047_v16 = vmul.f32 %v5045_v8, %v5045_v8 }
0x1a5d   : > { %v5048_v49 = vsub.f32 %v5046_v0, %v5047_v16 }
0x1a5f   : > { %v5049_v21 = vmax.f32 %v5048_v49, 0.0 }
0x1a61   : > { %v5050_v53 = vadd.f32 1e-08, %v5049_v21 }
0x1a63   : > { %8208 = vrsqrt.f32 %v5050_v53 }
0x1a70   : > { %v8209_v26 = vpop.eup %8208 }
0x1a71   : > { %v5053_v29 = vmul.f32 %v8209_v26, %v6339_v25  ;;  %v5052_v42 = vmul.f32 %v8209_v26, %v6338_v7  ;;  %v5055_v33 = vmul.f32 %v8209_v26, %v6341_v30  ;;  %v5054_v35 = vmul.f32 %v8209_v26, %v6340_v32 }
0x1a73   : > { %5071 = vperm.xlu1 %8192, %v5053_v29   ;;  %5066 = vperm.xlu0 %8193, %v5052_v42   ;;  %v5057_v36 = vmul.f32 %v5053_v29, %v5045_v8  ;;  %v5056_v37 = vmul.f32 %v5052_v42, %v5045_v8  ;;  %v5059_v47 = vmul.f32 %v5055_v33, %v5045_v8 }
0x1a74   : > { %v5058_v57 = vmul.f32 %v5054_v35, %v5045_v8 }
0x1a75   : > { %v5061_v45 = vsub.f32 %v6343_v38, %v5057_v36  ;;  %v5060_v46 = vsub.f32 %v6342_v40, %v5056_v37  ;;  %v5063_v3 = vsub.f32 %v6345_v58, %v5059_v47 }
0x1a76   : > { %v5062_v10 = vsub.f32 %v6344_v63, %v5058_v57 }
0x1a77   : > { %5081 = vperm.xlu1 %8192, %v5055_v33   ;;  %5076 = vperm.xlu0 %8193, %v5054_v35  }
0x1a7b   : > { %5095 = vperm.xlu1 %8192, %v5061_v45   ;;  %5090 = vperm.xlu0 %8193, %v5060_v46  }
0x1a7f   : > { %5105 = vperm.xlu1 %8192, %v5063_v3   ;;  %5100 = vperm.xlu0 %8193, %v5062_v10  }
0x1a83   : > { %5318 = vperm.xlu1 %8192, %v6382_v11   ;;  %5289 = vperm.xlu0 %8193, %v6378_v18  }
0x1a87   : > { %5323 = vperm.xlu1 %8192, %v6383_v19   ;;  %5294 = vperm.xlu0 %8193, %v6379_v20  }
0x1a8b   : > { %5356 = vperm.xlu1 %8192, %v6387_v23   ;;  %5351 = vperm.xlu0 %8193, %v6386_v22  }
0x1a8f   : > { %5328 = vperm.xlu1 %8192, %v6384_v27   ;;  %5299 = vperm.xlu0 %8193, %v6380_v34  }
0x1a93   : > { %5333 = vperm.xlu1 %8192, %v6385_v51   ;;  %5304 = vperm.xlu0 %8193, %v6381_v14   ;;  %v5415_v14 = vstv %s6394_s1  ;;  %s6417_s1 = sshll.u32 %s8448_s17, 7  ;;  %s8318_s17 = smov [#allocation8]  }
0x1a97   : > { %5384 = vperm.xlu1 %8192, %v6390_v62   ;;  %5361 = vperm.xlu0 %8193, %v6388_v31  }
0x1a9b   : > { %5389 = vperm.xlu1 %8192, %v6391_v9   ;;  %5366 = vperm.xlu0 %8193, %v6389_v48  }
0x1a9f   : > { %5399 = vperm.xlu1 %8192, %v6393_v5   ;;  %5394 = vperm.xlu0 %8193, %v6392_v41  }
0x1aee   : > { %v5072_v59 = vpop.permute.xlu1 %5071  ;;  %v5067_v50 = vpop.permute.xlu0 %5066 }
0x1aef   : > { %v5085_v54 = vmul.f32 %v5072_v59, %v10596_v17  ;;  %v5084_v2 = vmul.f32 %v5067_v50, %v10598_v55 }
0x1af2   : > { %v5082_v60 = vpop.permute.xlu1 %5081  ;;  %v5077_v24 = vpop.permute.xlu0 %5076 }
0x1af3   : > { %v5087_v52 = vmul.f32 %v5082_v60, %v10606_v61  ;;  %v5086_v4 = vmul.f32 %v5077_v24, %v10611_v12 }
0x1af6   : > { %v5096_v15 = vpop.permute.xlu1 %5095  ;;  %v5091_v39 = vpop.permute.xlu0 %5090 }
0x1af7   : > { %v10890_v6 = vadd.f32 %v5096_v15, %v5085_v54  ;;  %v10892_v28 = vadd.f32 %v5091_v39, %v5084_v2 }
0x1af9   : > { %7951 = vmatprep.mubr.f32.mxu0 %v10892_v28  ;;  %7989 = vmatprep.mubr.f32.mxu1 %v10892_v28 }
0x1afa   : > { %v5106_v13 = vpop.permute.xlu1 %5105  ;;  %7952 = vmatmul.mubr.f32.vlgmr.msra.gmra.mxu0 %v10890_v6  ;;  %7990 = vmatmul.mubr.f32.vlgmr.msra.gmra.mxu1 %v10890_v6  ;;  %v5101_v17 = vpop.permute.xlu0 %5100 }
0x1afb   : > { %v10900_v55 = vadd.f32 %v5106_v13, %v5087_v52  ;;  %v10902_v8 = vadd.f32 %v5101_v17, %v5086_v4  ;;  %7996 = vmatpush3.msra.mxu0 %v11275_v56  ;;  %8034 = vmatpush3.msra.mxu1 %v11275_v56 }
0x1afc   : > { %7997 = vmatprep.subr.mxu0 %v11275_v56  ;;  %8035 = vmatprep.subr.mxu1 %v11275_v56 }
0x1afd   : > { %7954 = vmatprep.mubr.f32.mxu0 %v10902_v8  ;;  %7992 = vmatprep.mubr.f32.mxu1 %v10902_v8 }
0x1afe   : > { %7955 = vmatmul.mubr.f32.gmra.mxu0 %v10900_v55  ;;  %7993 = vmatmul.mubr.f32.gmra.mxu1 %v10900_v55  ;;  %v5319_v61 = vpop.permute.xlu1 %5318  ;;  %v5290_v12 = vpop.permute.xlu0 %5289 }
0x1aff   : > { %7998 = vmatpush3.msra.mxu0 %v11275_v56  ;;  %8036 = vmatpush3.msra.mxu1 %v11275_v56  ;;  %v5336_v36 = vmul.f32 %v5319_v61, %v10892_v28 }
0x1b00   : > { %7999 = vmatprep.subr.mxu0 %v11275_v56  ;;  %8037 = vmatprep.subr.mxu1 %v11275_v56 }
0x1b01   : > { %8000 = vmatpush3.msra.mxu0 %v11275_v56  ;;  %8038 = vmatpush3.msra.mxu1 %v11275_v56 }
0x1b02   : > { %8001 = vmatprep.subr.mxu0 %v11275_v56  ;;  %8039 = vmatprep.subr.mxu1 %v11275_v56  ;;  %v5324_v1 = vpop.permute.xlu1 %5323  ;;  %v5295_v0 = vpop.permute.xlu0 %5294 }
0x1b03   : > { %8002 = vmatpush3.msra.mxu0 %v11275_v56  ;;  %8040 = vmatpush3.msra.mxu1 %v11275_v56  ;;  %v5337_v32 = vmul.f32 %v5324_v1, %v10890_v6 }
0x1b04   : > { %8003 = vmatprep.subr.mxu0 %v11275_v56  ;;  %8041 = vmatprep.subr.mxu1 %v11275_v56 }
0x1b05   : > { %8004 = vmatpush3.msra.mxu0 %v11275_v56  ;;  %8042 = vmatpush3.msra.mxu1 %v11275_v56 }
0x1b06   : > { %8005 = vmatprep.subr.mxu0 %v11275_v56  ;;  %8043 = vmatprep.subr.mxu1 %v11275_v56  ;;  %v5357_v16 = vpop.permute.xlu1 %5356  ;;  %v5352_v49 = vpop.permute.xlu0 %5351 }
0x1b07   : > { %8006 = vmatpush3.msra.mxu0 %v11275_v56  ;;  %8044 = vmatpush3.msra.mxu1 %v11275_v56 }
0x1b08   : > { %8007 = vmatprep.subr.mxu0 %v11275_v56  ;;  %8045 = vmatprep.subr.mxu1 %v11275_v56 }
0x1b09   : > { %8008 = vmatpush3.msra.mxu0 %v11275_v56  ;;  %8046 = vmatpush3.msra.mxu1 %v11275_v56 }
0x1b0a   : > { %8009 = vmatprep.subr.mxu0 %v11275_v56  ;;  %8047 = vmatprep.subr.mxu1 %v11275_v56  ;;  %v5329_v21 = vpop.permute.xlu1 %5328  ;;  %v5300_v53 = vpop.permute.xlu0 %5299 }
0x1b0b   : > { %8010 = vmatpush3.msra.mxu0 %v11275_v56  ;;  %8048 = vmatpush3.msra.mxu1 %v11275_v56  ;;  %v5338_v51 = vmul.f32 %v5329_v21, %v10902_v8 }
0x1b0c   : > { %8011 = vmatprep.subr.mxu0 %v11275_v56  ;;  %8049 = vmatprep.subr.mxu1 %v11275_v56 }
0x1b0d   : > { %8012 = vmatpush3.msra.mxu0 %v11275_v56  ;;  %8050 = vmatpush3.msra.mxu1 %v11275_v56 }
0x1b0e   : > { %8013 = vmatprep.subr.mxu0 %v11275_v56  ;;  %8051 = vmatprep.subr.mxu1 %v11275_v56  ;;  %v5334_v25 = vpop.permute.xlu1 %5333  ;;  %v5305_v7 = vpop.permute.xlu0 %5304 }
0x1b0f   : > { %8014 = vmatpush3.msra.mxu0 %v11275_v56  ;;  %8052 = vmatpush3.msra.mxu1 %v11275_v56  ;;  %v5339_v46 = vmul.f32 %v5334_v25, %v10900_v55 }
0x1b10   : > { %8015 = vmatprep.subr.mxu0 %v11275_v56  ;;  %8053 = vmatprep.subr.mxu1 %v11275_v56 }
0x1b11   : > { %8016 = vmatpush3.msra.mxu0 %v11275_v56  ;;  %8054 = vmatpush3.msra.mxu1 %v11275_v56 }
0x1b12   : > { %8017 = vmatprep.subr.mxu0 %v11275_v56  ;;  %8055 = vmatprep.subr.mxu1 %v11275_v56  ;;  %v5385_v26 = vpop.permute.xlu1 %5384  ;;  %v5362_v29 = vpop.permute.xlu0 %5361 }
0x1b13   : > { %8018 = vmatpush3.msra.mxu0 %v11275_v56  ;;  %8056 = vmatpush3.msra.mxu1 %v11275_v56 }
0x1b14   : > { %8019 = vmatprep.subr.mxu0 %v11275_v56  ;;  %8057 = vmatprep.subr.mxu1 %v11275_v56 }
0x1b15   : > { %8020 = vmatpush3.msra.mxu0 %v11275_v56  ;;  %8058 = vmatpush3.msra.mxu1 %v11275_v56 }
0x1b16   : > { %8021 = vmatprep.subr.mxu0 %v11275_v56  ;;  %8059 = vmatprep.subr.mxu1 %v11275_v56  ;;  %v5390_v37 = vpop.permute.xlu1 %5389  ;;  %v5367_v58 = vpop.permute.xlu0 %5366 }
0x1b17   : > { %8022 = vmatpush3.msra.mxu0 %v11275_v56  ;;  %8060 = vmatpush3.msra.mxu1 %v11275_v56 }
0x1b18   : > { %8023 = vmatprep.subr.mxu0 %v11275_v56  ;;  %8061 = vmatprep.subr.mxu1 %v11275_v56 }
0x1b19   : > { %8024 = vmatpush3.msra.mxu0 %v11275_v56  ;;  %8062 = vmatpush3.msra.mxu1 %v11275_v56 }
0x1b1a   : > { %8025 = vmatprep.subr.mxu0 %v11275_v56  ;;  %8063 = vmatprep.subr.mxu1 %v11275_v56  ;;  %v5400_v48 = vpop.permute.xlu1 %5399  ;;  %v5395_v2 = vpop.permute.xlu0 %5394 }
0x1b1b   : > { %8026 = vmatpush3.msra.mxu0 %v11275_v56  ;;  %8064 = vmatpush3.msra.mxu1 %v11275_v56 }
0x1bba   : > { %v7953_v42 = vpop.f32.mrf.mxu0  ;;  %v7991_v30 = vpop.f32.mrf.mxu1 }
0x1bbb   : > { %v5308_v33 = vmul.f32 %v7953_v42, %v5295_v0  ;;  %v5370_v40 = vmul.f32 %v7991_v30, %v5357_v16 }
0x1bbc   : > { %v5178_v35 = vpop.f32.mrf.mxu0  ;;  %v5263_v56 = vpop.f32.mrf.mxu1 }
0x1bbd   : > { %v5341_v38 = vadd.f32 %v5337_v32, %v5308_v33  ;;  %v5307_v45 = vmul.f32 %v5290_v12, %v5178_v35  ;;  %v5369_v10 = vmul.f32 %v5352_v49, %v5263_v56 }
0x1bbe   : > { %v7956_v47 = vpop.f32.mrf.mxu0  ;;  %v7994_v57 = vpop.f32.mrf.mxu1 }
0x1bbf   : > { %v5374_v63 = vadd.f32 %v5370_v40, %v5341_v38  ;;  %v5340_v3 = vadd.f32 %v5336_v36, %v5307_v45  ;;  %v5310_v11 = vmul.f32 %v7956_v47, %v5305_v7  ;;  %v5372_v18 = vmul.f32 %v7994_v57, %v5367_v58 }
0x1bc0   : > { %v5188_v19 = vpop.f32.mrf.mxu0  ;;  %v5273_v34 = vpop.f32.mrf.mxu1 }
0x1bc1   : > { %v5403_v20 = vadd.f32 %v5390_v37, %v5374_v63  ;;  %v5373_v23 = vadd.f32 %v5369_v10, %v5340_v3  ;;  %v5343_v22 = vadd.f32 %v5339_v46, %v5310_v11  ;;  %v5309_v27 = vmul.f32 %v5300_v53, %v5188_v19 }
0x1bc2   : > { %v5371_v41 = vmul.f32 %v5362_v29, %v5273_v34 }
0x1bc3   : > { %v5412_v62 = vmin.f32 %v5403_v20, 0.0  ;;  %v5402_v31 = vadd.f32 %v5385_v26, %v5373_v23  ;;  %v5376_v9 = vadd.f32 %v5372_v18, %v5343_v22  ;;  %v5342_v5 = vadd.f32 %v5338_v51, %v5309_v27 }
0x1bc4   : > { %v5408_v24 = vmax.f32 %v5403_v20, 0.0 }
0x1bc5   : > { %v5417_v59 = vmul.f32 %v5415_v14, %v5412_v62  ;;  %v5411_v50 = vmin.f32 %v5402_v31, 0.0  ;;  %v5405_v60 = vadd.f32 %v5400_v48, %v5376_v9  ;;  %v5375_v54 = vadd.f32 %v5371_v41, %v5342_v5 }
0x1bc6   : > { %v5407_v39 = vmax.f32 %v5402_v31, 0.0 }
0x1bc7   : > { %v5414_v15 = vmin.f32 %v5405_v60, 0.0  ;;  %v5416_v6 = vmul.f32 %v5415_v14, %v5411_v50  ;;  %v10974_v28 = vadd.f32 %v5417_v59, %v5408_v24  ;;  %v5404_v52 = vadd.f32 %v5395_v2, %v5375_v54  ;;  %v6398_v2 = vld [vmem:[%s11136_s13 + $0x78] sm:$0xff] }
0x1bc8   : > { %v5410_v8 = vmax.f32 %v5405_v60, 0.0 }
0x1bc9   : > { %v10976_v4 = vadd.f32 %v5416_v6, %v5407_v39  ;;  %v5419_v13 = vmul.f32 %v5415_v14, %v5414_v15  ;;  %v5413_v17 = vmin.f32 %v5404_v52, 0.0  ;;  %v5520_v61 = vmul.f32 %v10974_v28, %v10974_v28  ;;  %v6397_v15 = vld [vmem:[%s11136_s13 + $0x70] sm:$0xff] }
0x1bca   : > { %v5409_v12 = vmax.f32 %v5404_v52, 0.0 }
0x1bcb   : > { %8027 = vmatprep.mubr.f32.mxu0 %v10976_v4  ;;  %v5519_v55 = vmul.f32 %v10976_v4, %v10976_v4  ;;  %v5418_v1 = vmul.f32 %v5415_v14, %v5413_v17  ;;  %v10984_v0 = vadd.f32 %v5419_v13, %v5410_v8  ;;  %v6402_v13 = vld [vmem:[%s11137_s14 + $0x78] sm:$0xff]  ;;  %v6396_v17 = vld [vmem:[%s11136_s13 + $0x68] sm:$0xff] }
0x1bcc   : > { %8028 = vmatmul.mubr.f32.vlgmr.msra.gmra.mxu0 %v10974_v28 }
0x1bcd   : > { %8065 = vmatprep.mubr.f32.mxu1 %v5519_v55  ;;  %v10986_v16 = vadd.f32 %v5418_v1, %v5409_v12  ;;  %v5522_v21 = vmul.f32 %v10984_v0, %v10984_v0  ;;  %v6395_v55 = vld [vmem:[%s11136_s13 + $0x60] sm:$0xff] }
0x1bce   : > { %8066 = vmatmul.mubr.f32.vlgmr.msra.gmra.mxu1 %v5520_v61 }
0x1bcf   : > { %8030 = vmatprep.mubr.f32.mxu0 %v10986_v16  ;;  %v5521_v49 = vmul.f32 %v10986_v16, %v10986_v16 }
0x1bd0   : > { %8031 = vmatmul.mubr.f32.gmra.mxu0 %v10984_v0 }
0x1bd1   : > { %8068 = vmatprep.mubr.f32.mxu1 %v5521_v49 }
0x1bd2   : > { %8069 = vmatmul.mubr.f32.gmra.mxu1 %v5522_v21  ;;  %v6401_v21 = vld [vmem:[%s11137_s14 + $0x70] sm:$0xff] }
0x1c8c   : > { %v8029_v53 = vpop.f32.mrf.mxu0 }
0x1c8d   : > { %v5609_v30 = vsel %vm1057_vm0, %v8029_v53, 0.0 }
0x1c8e   : > { %v5500_v25 = vpop.f32.mrf.mxu0  ;;  %v8067_v7 = vpop.f32.mrf.mxu1 }
0x1c8f   : > { %v5608_v26 = vsel %vm1057_vm0, %v5500_v25, 0.0  ;;  %v5626_v36 = vsel %vm1057_vm0, %v8067_v7, 0.0 }
0x1c90   : > { %v5589_v29 = vpop.f32.mrf.mxu1  ;;  %v8032_v42 = vpop.f32.mrf.mxu0  ;;  %v5610_v33 = vadd.f32 %v5609_v30, %v5608_v26  ;;  %v6400_v26 = vld [vmem:[%s11137_s14 + $0x68] sm:$0xff] }
0x1c91   : > { %v5625_v32 = vsel %vm1057_vm0, %v5589_v29, 0.0  ;;  %v5613_v46 = vsel %vm1057_vm0, %v8032_v42, 0.0  ;;  %v6399_v29 = vld [vmem:[%s11137_s14 + $0x60] sm:$0xff] }
0x1c92   : > { %v5510_v35 = vpop.f32.mrf.mxu0  ;;  %v8070_v56 = vpop.f32.mrf.mxu1  ;;  %v5627_v38 = vadd.f32 %v5626_v36, %v5625_v32  ;;  %v2243_v32 = vld [vmem:[%s11139_s16 + $0x18] sm:$0xff]  ;;  %v6229_v36 = vld [vmem:[%s11139_s16 + $0x30] sm:$0xff] }
0x1c93   : > { %v5611_v37 = vsel %vm1057_vm0, %v5510_v35, 0.0  ;;  %v5630_v63 = vsel %vm1057_vm0, %v8070_v56, 0.0  ;;  %v6403_v35 = vld [vmem:[%s11138_s15 + $0x60] sm:$0xff]  ;;  %v2242_v56 = vld [vmem:[%s11139_s16 + $0x10] sm:$0xff] }
0x1c94   : > { %v5612_v40 = vadd.f32 %v5611_v37, %v5610_v33  ;;  %v5599_v45 = vpop.f32.mrf.mxu1  ;;  %v6230_v33 = vld [vmem:[%s11139_s16 + $0x38] sm:$0xff]  ;;  %8079 = vmatprep.mubr.msk.f32.mxu0 %vm2264_vm11, %v6403_v35 }
0x1c95   : > { %v5628_v47 = vsel %vm1057_vm0, %v5599_v45, 0.0  ;;  %v6320_v37 = vld [vmem:[%s11139_s16 + $0x58] sm:$0xff]  ;;  %v6409_v45 = vld [vmem:[%s11139_s16 + $0x70] sm:$0xff]  ;;  %vm8317_vm0 = vmmov 0  }
0x1c96   : > { %v5614_v57 = vadd.f32 %v5613_v46, %v5612_v40  ;;  %v5629_v58 = vadd.f32 %v5628_v47, %v5627_v38  ;;  %v6319_v38 = vld [vmem:[%s11139_s16 + $0x50] sm:$0xff]  ;;  %v6410_v40 = vld [vmem:[%s11139_s16 + $0x78] sm:$0xff]  ;;  %v5845_v46 = vld [vmem:[%s11142_s19] sm:$0xff] }
0x1c98   : > { %v5631_v3 = vadd.f32 %v5630_v63, %v5629_v58  ;;  %5615 = vadd.xlane.f32.xlu0 %v5614_v57 }
0x1c9a   : > { %5632 = vadd.xlane.f32.xlu1 %v5631_v3 }
0x1d21   : > { %v5616_v10 = vpop.xlane.xlu0 %5615 }
0x1d22   : > { %v5617_v11 = vrot.slane %v5616_v10, 4 }
0x1d23   : > { %v5633_v18 = vpop.xlane.xlu1 %5632 }
0x1d24   : > { %v5618_v19 = vadd.f32 %v5617_v11, %v5616_v10  ;;  %v5634_v20 = vrot.slane %v5633_v18, 4 }
0x1d26   : > { %v5619_v23 = vrot.slane %v5618_v19, 2  ;;  %v5635_v22 = vadd.f32 %v5634_v20, %v5633_v18 }
0x1d28   : > { %v5636_v27 = vrot.slane %v5635_v22, 2  ;;  %v5620_v34 = vadd.f32 %v5619_v23, %v5618_v19 }
0x1d2a   : > { %v5621_v51 = vrot.slane %v5620_v34, 1  ;;  %v5637_v14 = vadd.f32 %v5636_v27, %v5635_v22 }
0x1d2c   : > { %v5622_v62 = vadd.f32 %v5621_v51, %v5620_v34  ;;  %v5638_v31 = vrot.slane %v5637_v14, 1 }
0x1d2e   : > { %8124 = vpush %v5622_v62  ;;  %v5639_v9 = vadd.f32 %v5638_v31, %v5637_v14  ;;  %v6405_v14 = vld [vmem:[%s11138_s15 + $0x70] sm:$0xff] }
0x1d30   : > { %8126 = vpush %v5639_v9 }
0x1d5f   : > { %s8125_s3 = spop %8124 }
0x1d60   : > { %v5624_v48 = vstv %s8125_s3  ;;  %s650_s3 = scalar_lea.vmem [#allocation8], %s6028_s7  ;;  %s8246_s7 = sshll.u32 %s8318_s17, 4  ;;  %s8247_s7 = int_to_ptr.vmem [resolvable:$false] %s8246_s7 }
0x1d61   : > { %v5642_v5 = vmul.f32 0.00024414063, %v5624_v48  ;;  %s8127_s2 = spop %8126  ;;  %s8248_s0 = scalar_lea.vmem %s8247_s7, 256 }
0x1d62   : > { %v5641_v41 = vstv %s8127_s2  ;;  %s5939_s2 = sshll.u32 %s650_s3, 4  ;;  %s5940_s2 = int_to_ptr.vmem [resolvable:$true] %s5939_s2 }
0x1d63   : > { %v5643_v59 = vmul.f32 0.00024414063, %v5641_v41  ;;  %v5644_v50 = vmul.f32 %v5642_v5, %v5642_v5  ;;  %v11405_v41 = vld [vmem:[#allocation23_spill] sm:$0xff]  ;;  %s8242_s4 = scalar_lea.vmem %s5940_s2, 128  ;;  %p8249_p8 = scmp.lt.s32.totalorder %s5940_s2, %s8247_s7 }
0x1d64   : > { %p8243_p10 = scmp.ne.s32.totalorder %s5940_s2, %s8242_s4  ;;  %p8250_p11 = scmp.lt.s32.totalorder %s8248_s0, %s8242_s4 }
0x1d65   : > { %v5645_v60 = vsub.f32 %v5643_v59, %v5644_v50  ;;  %v11406_v50 = vld [vmem:[#allocation25_spill] sm:$0xff] }
0x1d66   : > { %p8244_p0 = pnand %p8243_p10, %p11409_p12  ;;  %p8251_p13 = por %p8250_p11, %p8249_p8 }
0x1d67   : > { %v5646_v24 = vmax.f32 %v5645_v60, 0.0 }
0x1d68   : > { %p8245_p7 = pneg %p8244_p0 }
0x1d69   : > { %v5647_v54 = vadd.f32 1e-08, %v5646_v24 }
0x1d6a   : > { %p8252_p1 = pnand %p8251_p13, %p8245_p7 }
0x1d6b   : > { %8210 = vrsqrt.f32 %v5647_v54 }
0x1d78   : > { %v8211_v39 = vpop.eup %8210 }
0x1d79   : > { %v5652_v6 = vmul.f32 %v8211_v39, %v6398_v2  ;;  %v5651_v52 = vmul.f32 %v8211_v39, %v6397_v15  ;;  %v5650_v12 = vmul.f32 %v8211_v39, %v6396_v17  ;;  %v5649_v49 = vmul.f32 %v8211_v39, %v6395_v55  ;;  %v11407_v2 = vld [vmem:[#allocation24_spill] sm:$0xff]  ;;  %v11408_v39 = vld [vmem:[#allocation26_spill] sm:$0xff] }
0x1d7b   : > { %5678 = vperm.xlu0 %8193, %v5652_v6   ;;  %5673 = vperm.xlu1 %8192, %v5651_v52   ;;  %v5656_v8 = vmul.f32 %v5652_v6, %v5642_v5  ;;  %v5655_v1 = vmul.f32 %v5651_v52, %v5642_v5  ;;  %v5654_v25 = vmul.f32 %v5650_v12, %v5642_v5 }
0x1d7c   : > { %v5653_v7 = vmul.f32 %v5649_v49, %v5642_v5 }
0x1d7d   : > { %v5660_v61 = vsub.f32 %v6402_v13, %v5656_v8  ;;  %v5659_v53 = vsub.f32 %v6401_v21, %v5655_v1  ;;  %v5658_v42 = vsub.f32 %v6400_v26, %v5654_v25 }
0x1d7e   : > { %v5657_v30 = vsub.f32 %v6399_v29, %v5653_v7  ;;  %v5839_v29 = vstv %s5834_s12  ;;  %s11088_s12 = scalar_lea.hbm %s11143_s20, %s6417_s1 }
0x1d7f   : > { %5702 = vperm.xlu0 %8193, %v5660_v61   ;;  %5668 = vperm.xlu1 %8192, %v5650_v12  }
0x1d83   : > { %5697 = vperm.xlu0 %8193, %v5659_v53   ;;  %5663 = vperm.xlu1 %8192, %v5649_v49  }
0x1d87   : > { %5692 = vperm.xlu0 %8193, %v5658_v42   ;;  %5687 = vperm.xlu1 %8192, %v5657_v30  }
0x1d8b   : > { %2261 = vperm.xlu0 %8193, %v2243_v32   ;;  %3420 = vperm.xlu1 %8192, %v6230_v33  }
0x1d8f   : > { %2256 = vperm.xlu0 %8193, %v2242_v56   ;;  %3415 = vperm.xlu1 %8192, %v6229_v36  }
0x1d93   : > { %4578 = vperm.xlu0 %8193, %v6320_v37   ;;  %4573 = vperm.xlu1 %8192, %v6319_v38   ;;  %v5844_v37 = vld [vmem:[%s11141_s18] sm:$0xff] }
0x1d97   : > { %5734 = vperm.xlu0 %8193, %v6410_v40   ;;  %5729 = vperm.xlu1 %8192, %v6409_v45  }
0x1d9b   : > { %5848 = vperm.xlu0 %8193, %v5845_v46  }
0x1df6   : > { %v5679_v47 = vpop.permute.xlu0 %5678  ;;  %v5674_v57 = vpop.permute.xlu1 %5673 }
0x1df7   : > { %v5684_v58 = vmul.f32 %v5679_v47, %v10984_v0  ;;  %v5683_v11 = vmul.f32 %v5674_v57, %v10986_v16  ;;  %v6404_v16 = vld [vmem:[%s11138_s15 + $0x68] sm:$0xff] }
0x1dfa   : > { %v5703_v63 = vpop.permute.xlu0 %5702  ;;  %v5669_v3 = vpop.permute.xlu1 %5668 }
0x1dfb   : > { %v5708_v10 = vadd.f32 %v5703_v63, %v5684_v58  ;;  %v5682_v23 = vmul.f32 %v5669_v3, %v10974_v28  ;;  %v6406_v28 = vld [vmem:[%s11138_s15 + $0x78] sm:$0xff] }
0x1dfd   : > { %8071 = vmatprep.subr.mxu0 %v5708_v10 }
0x1dfe   : > { %8072 = vmatpush3.msra.mxu0 %v5708_v10  ;;  %v5698_v18 = vpop.permute.xlu0 %5697  ;;  %v5664_v19 = vpop.permute.xlu1 %5663 }
0x1dff   : > { %v5707_v20 = vadd.f32 %v5698_v18, %v5683_v11  ;;  %v5681_v34 = vmul.f32 %v5664_v19, %v10976_v4  ;;  %v8316_v4 = vmov 0.0  }
0x1e00   : > { %8085 = vmatprep.subr.mxu1 %v8316_v4  ;;  %8089 = vmatprep.mubr.msk.f32.mxu1 %vm8317_vm0, %v8316_v4 }
0x1e01   : > { %8073 = vmatprep.subr.mxu0 %v5707_v20 }
0x1e02   : > { %8074 = vmatpush3.msra.mxu0 %v5707_v20  ;;  %v5693_v22 = vpop.permute.xlu0 %5692  ;;  %v5688_v27 = vpop.permute.xlu1 %5687 }
0x1e03   : > { %v5706_v51 = vadd.f32 %v5693_v22, %v5682_v23  ;;  %v5705_v0 = vadd.f32 %v5688_v27, %v5681_v34 }
0x1e05   : > { %8075 = vmatprep.subr.mxu0 %v5706_v51 }
0x1e06   : > { %8076 = vmatpush3.msra.mxu0 %v5706_v51  ;;  %v2262_v62 = vpop.permute.xlu0 %2261  ;;  %v3421_v31 = vpop.permute.xlu1 %3420 }
0x1e07   : > { %8077 = vmatprep.subr.mxu0 %v5705_v0  ;;  %v2359_v59 = vadd.f32 %v11405_v41, %v2262_v62  ;;  %v3517_v60 = vadd.f32 %v11406_v50, %v3421_v31 }
0x1e08   : > { %8078 = vmatpush3.msra.mxu0 %v5705_v0 }
0x1e09   : > { %8080 = vmatmul.mubr.msk.f32.vlgmr.msra.gmra.mxu0 %vm2264_vm11, %v6404_v16  ;;  %v3523_v17 = vadd.f32 %v3517_v60, %v2359_v59 }
0x1e0a   : > { %8082 = vmatprep.mubr.msk.f32.mxu0 %vm2264_vm11, %v6405_v14  ;;  %v2257_v9 = vpop.permute.xlu0 %2256  ;;  %v3416_v48 = vpop.permute.xlu1 %3415 }
0x1e0b   : > { %v2354_v15 = vadd.f32 %v11407_v2, %v2257_v9  ;;  %v3512_v6 = vadd.f32 %v11408_v39, %v3416_v48 }
0x1e0d   : > { %8083 = vmatmul.mubr.msk.f32.gmra.mxu0 %vm2264_vm11, %v6406_v28  ;;  %v3522_v12 = vadd.f32 %v3512_v6, %v2354_v15 }
0x1e0e   : > { %v4579_v5 = vpop.permute.xlu0 %4578  ;;  %v4574_v24 = vpop.permute.xlu1 %4573 }
0x1e0f   : > { %v4675_v52 = vadd.f32 %v10804_v43, %v4579_v5  ;;  %v4670_v55 = vadd.f32 %v10806_v44, %v4574_v24 }
0x1e11   : > { %v4681_v1 = vadd.f32 %v4675_v52, %v3523_v17  ;;  %v4680_v25 = vadd.f32 %v4670_v55, %v3522_v12 }
0x1e12   : > { %v5735_v8 = vpop.permute.xlu0 %5734  ;;  %v5730_v21 = vpop.permute.xlu1 %5729 }
0x1e16   : > { %v5849_v38 = vpop.permute.xlu0 %5848 }
0x1ec9   : > { %v8081_v54 = vpop.f32.mrf.mxu0 }
0x1ecb   : > { %v5815_v13 = vpop.f32.mrf.mxu0 }
0x1ecd   : > { %v8084_v61 = vpop.f32.mrf.mxu0 }
0x1ece   : > { %v5829_v49 = vadd.f32 %v8084_v61, %v5735_v8 }
0x1ecf   : > { %v5823_v53 = vpop.f32.mrf.mxu0 }
0x1ed0   : > { %v5833_v7 = vadd.f32 %v5829_v49, %v4681_v1  ;;  %v5824_v26 = vadd.f32 %v5823_v53, %v5730_v21 }
0x1ed2   : > { %v5838_v42 = vmin.f32 %v5833_v7, 0.0  ;;  %v5832_v30 = vadd.f32 %v5824_v26, %v4680_v25  ;;  %v5836_v43 = vmax.f32 %v5833_v7, 0.0 }
0x1ed4   : > { %v5841_v32 = vmul.f32 %v5839_v29, %v5838_v42  ;;  %v5837_v33 = vmin.f32 %v5832_v30, 0.0  ;;  %v5835_v44 = vmax.f32 %v5832_v30, 0.0 }
0x1ed6   : > { %v5843_v35 = vadd.f32 %v5841_v32, %v5836_v43  ;;  %v5840_v56 = vmul.f32 %v5839_v29, %v5837_v33 }
0x1ed8   : > { %v5842_v36 = vadd.f32 %v5840_v56, %v5835_v44  ;;  %8086 = vmatpush3.msra.mxu1 %v5843_v35 }
0x1ed9   : > { %8087 = vmatprep.subr.mxu1 %v8316_v4 }
0x1eda   : > { %8088 = vmatpush3.msra.mxu1 %v5842_v36 }
0x1edb   : > { %8090 = vmatmul.mubr.msk.f32.vlgmr.msra.gmra.mxu1 %vm1135_vm1, %v5844_v37 }
0x1f9b   : > { %v5920_v40 = vpop.f32.mrf.mxu1 }
0x1f9c   : > { %v5921_v45 = vadd.f32 %v5920_v40, %v5849_v38 }
0x1f9d   : > { %v8091_v46 = vpop.f32.mrf.mxu1 }
0x1f9e   : > { %5924 = vst [vmem:[%s650_s3] sm:$0xff] %v5921_v45 }
0x1f9f   : > { %8255 = shalt.err (!%p8252_p1)
}
0x1fa0   : > { %s8256_s1 = scalar_lea.hbm %s11088_s12, 128  ;;  %s8260_s22 = scalar_lea.hbm %s11143_s20, 256 }
0x1fa1   : > { %p8257_p2 = scmp.ne.s32.totalorder %s11088_s12, %s8256_s1  ;;  %p8261_p9 = scmp.lt.s32.totalorder %s11088_s12, %s11143_s20 }
0x1fa2   : > { %p8262_p5 = scmp.lt.s32.totalorder %s8260_s22, %s8256_s1 }
0x1fa3   : > { %p8258_p3 = pnand %p8257_p2, %p11409_p12 }
0x1fa4   : > { %p8263_p6 = por %p8262_p5, %p8261_p9 }
0x1fa5   : > { %p8259_p4 = pneg %p8258_p3 }
0x1fa7   : > { %p8264_p10 = pnand %p8263_p6, %p8259_p4 }
0x1fa9   : > { %8267 = shalt.err (!%p8264_p10)
}
0x1faa   : > { %8136 = dma.vmem_to_hbm [thread:$0]  (%p11409_p12), %s5940_s2, 128, %s11088_s12, %s5926_s26  }
0x1fab PF: > { %p8153_p0 = scmp.ge.s32.totalorder %s8310_s25, 2  ;;  %s5951_s0 = sand.u32 1, %s8298_s23  }
0x1fac   : > { %p11410_p7 = scmp.ne.s32.totalorder %s11252_s30, 0  ;;  %s5952_s4 = scalar_lea.sflag [#allocation4], %s5951_s0 }
0x1fae   : > { %p8146_p8 = pnand %p8153_p0, %p11410_p7 }
0x1fb0   : > { %p8147_p11 = pneg %p8146_p8 }
0x1fb2   : > { %8293 = dma.done.wait (%p8147_p11), %s5952_s4, 128  }
0x1fb3   : > { %8295 = vsyncadd (%p8147_p11), %s5952_s4, 4294967168  ;;  %s11411_s25 = sld [smem:[#allocation13_spill]]  ;;  %s11414_s23 = smov %s8302_s24 }
0x1fb4   : > { %s11412_s7 = sld [smem:[#allocation12_spill]] }
0x1fb5   : > { %s11413_s2 = sld [smem:[#allocation14_spill]] }
0x1fb9   : > { %p33_p13 = scmp.ge.s32.totalorder %s11411_s25, 4  }
0x1fba   : > { %s11415_s24 = smov %s11412_s7 }
0x1fbb   :  { %35 = sbr.rel (!%p33_p13) target bundleno = 14 (0xe), region = 182 }
0x1fc0   :  { %5957 = vsyncpa [#allocation4], 1 }
0x1fc1   :  { %5959 = vsyncpa [#allocation4 + $0x1], 1 }
0x1fc2   :  { %5960 = vsyncpa [#allocation5], 1 }
0x1fc3   :  { %5962 = vsyncpa [#allocation5 + $0x1], 1 }
0x1fc4   :  { %5963 = vsyncpa [#allocation7], 1 }

</bundles_post_ra>
